<compile_context>
chip_gen: v5e
topology: v5e:2x2
jax: 0.10.0
libtpu: 0.0.40
codegen_flags: <defaults>
</compile_context>

<pallas_src>
import functools

import jax
import jax.numpy as jnp
from jax.experimental import pallas as pl
from jax.experimental.pallas import tpu as pltpu


def _fused_kernel(xa_ref, xb_ref, wa_ref, ba_ref, wb_ref, bb_ref,
                  wa9_ref, wb9_ref, mask_ref, scale_ref, shift_ref,
                  o_ref, *, n, w_pix, cout, cout_pad):
    f32 = jnp.float32
    bf16 = jnp.bfloat16
    std = (((1,), (0,)), ((), ()))      # plain (M,K) x (K,N)
    t_lhs = (((0,), (0,)), ((), ()))    # contract axis 0 of both (transposed-LHS form)

    xa = xa_ref[0]                      # (Ca, N)  channels on sublanes, pixels on lanes
    xb = xb_ref[0]                      # (Cb, N)
    xa16 = xa.astype(bf16)
    xb16 = xb.astype(bf16)

    # linear_a / linear_b (nn.Linear (out,in) layout -> plain matmuls), bf16 MXU inputs.
    ma = jax.lax.dot_general(wa_ref[...].astype(bf16), xa16, std,
                             preferred_element_type=f32) + ba_ref[...]      # (hidden, N)
    mb = jax.lax.dot_general(wb_ref[...].astype(bf16), xb16, std,
                             preferred_element_type=f32) + bb_ref[...]      # (hidden, N)

    # scores[i, j] = mapped_a[i] . mapped_b[j]   (i: a-pixel, j: b-pixel)
    s = jax.lax.dot_general(ma.astype(bf16), mb.astype(bf16), t_lhs,
                            preferred_element_type=f32)                     # (N, N) f32

    # ------------- branch a (finish completely before branch b starts) -------------
    # attentions_a = softmax(scores, -1);  out_a[c, j] = sum_i attn_a[i, j] * xa[c, i]
    rmax = jnp.max(s, axis=1, keepdims=True)                                # (N, 1)
    e_r = jnp.exp(s - rmax)
    inv_r = pl.reciprocal(jnp.sum(e_r, axis=1, keepdims=True), approx=True)  # (N, 1)
    # NOTE: the row normalizer indexes the matmul *contraction* dim, so folding it into
    # xa would need a (N,1)->(1,N) cross-layout move; keep the natural sublane
    # broadcast on e_r (one (N,N) VPU multiply) and drop e_r right after.
    p_a = (e_r * inv_r).astype(bf16)                                        # == attn_a
    out_a = jax.lax.dot_general(xa16, p_a, std, preferred_element_type=f32)   # (Ca, N)

    # ------------------------------- branch b --------------------------------------
    # attentions_b = softmax(scores^T, -1); its normalizer indexes the FREE dim, so it
    # folds AFTER the matmul: out_b = (xb @ e_c) * (1 / colsum) -- attn_b never built.
    cmax = jnp.max(s, axis=0, keepdims=True)                                # (1, N)
    e_c = jnp.exp(s - cmax)
    inv_c = pl.reciprocal(jnp.sum(e_c, axis=0, keepdims=True), approx=True)  # (1, N)
    out_b = jax.lax.dot_general(xb16, e_c.astype(bf16), std,
                                preferred_element_type=f32) * inv_c          # (Cb, N)

    # -------- 3x3 conv (padding=1) + BatchNorm(eval) + ReLU on concat(out_a, out_b) ----
    # Weight-first formulation: y[t*Cp + o, p] = sum_c w[t, o, c] * feat[c, p]
    # (channel concat folded into the a/b weight split -> 2 matmuls total); each tap is
    # then a lane rotation of the product plus the precomputed 0/1 border mask:
    #   conv[o, p] = sum_t mask_t[p] * y_t[o, p + off_t]
    y = (jax.lax.dot_general(wa9_ref[...].astype(bf16), out_a.astype(bf16), std,
                             preferred_element_type=f32)
         + jax.lax.dot_general(wb9_ref[...].astype(bf16), out_b.astype(bf16), std,
                               preferred_element_type=f32))                  # (9*Cp, N)

    # TODO(synk): for larger Cout*H*W accumulate into a VMEM f32 scratch / tile N
    # instead of a live vreg accumulator.
    acc = jnp.zeros((cout_pad, n), f32)
    for dy in (-1, 0, 1):
        for dx in (-1, 0, 1):
            t = (dy + 1) * 3 + (dx + 1)
            off = dy * w_pix + dx
            y_t = y[t * cout_pad:(t + 1) * cout_pad, :]                      # 8-aligned slice
            # rolled[p] = y_t[(p + off) mod N]; lanes that would wrap or cross a row
            # border are exactly the ones mask_t zeroes.
            rolled = y_t if off == 0 else pltpu.roll(y_t, (-off) % n, 1)
            acc = acc + rolled * mask_ref[t]

    # eval-mode BN folded to scale/shift, then ReLU; lane-dense (Cout, N) store.
    o_ref[0] = jnp.maximum(acc[:cout] * scale_ref[...] + shift_ref[...], 0.0)


def attention_branch_fusion(input_a, input_b, params):
    """input_a: (B, Ca, H, W)   input_b: (B, Cb, H, W)   (PyTorch NCHW)."""
    B, Ca, H, W = input_a.shape
    Cb = input_b.shape[1]
    N = H * W
    hidden = params["wa"].shape[0]
    Cin = Ca + Cb
    Cout = Ca
    Cp = ((Cout + 7) // 8) * 8          # pad per-tap out-channel block to a sublane tile

    # NCHW -> (B, C, N): pure reshape, no transpose / extra HBM pass.
    xa = input_a.reshape(B, Ca, N)
    xb = input_b.reshape(B, Cb, N)

    ba = params["ba"].reshape(hidden, 1)
    bb = params["bb"].reshape(hidden, 1)

    # conv weight (Cout, Cin, 3, 3) -> tap-major (9, Cout, Cin), out-channels padded to Cp
    # so every per-tap slice of the in-kernel product is sublane-tile aligned; split into
    # the out_a / out_b channel halves (the channel concat is folded into this split).
    w_taps = jnp.transpose(params["conv_w"], (2, 3, 0, 1)).reshape(9, Cout, Cin)
    w_taps = jnp.pad(w_taps, ((0, 0), (0, Cp - Cout), (0, 0)))
    wa9 = w_taps[:, :, :Ca].reshape(9 * Cp, Ca)
    wb9 = w_taps[:, :, Ca:].reshape(9 * Cp, Cb)

    # BatchNorm folded to scale/shift (eval mode).
    # TODO(synk): train-mode batch statistics are not reproduced here.
    inv = params["bn_gamma"] * jax.lax.rsqrt(params["bn_var"] + 1e-5)
    bn_scale = inv.reshape(Cout, 1)
    bn_shift = (params["bn_beta"] - params["bn_mean"] * inv).reshape(Cout, 1)

    # Per-tap 0/1 masks for the conv borders; with the roll-based conv these also kill
    # the lanes that would wrap around the flattened (H*W) axis.
    yy = jnp.arange(N, dtype=jnp.int32) // W
    xx = jnp.arange(N, dtype=jnp.int32) % W
    masks = []
    for dy in (-1, 0, 1):
        for dx in (-1, 0, 1):
            ok = (yy + dy >= 0) & (yy + dy < H) & (xx + dx >= 0) & (xx + dx < W)
            masks.append(ok.astype(jnp.float32))
    tap_mask = jnp.stack(masks).reshape(9, 1, N)

    # Scoped-VMEM budget with headroom (raises v5e's 16 MiB default, stays <= 64 MiB).
    vmem_est = (3 * 4 * N * N
                + 4 * N * (9 * Cp + 4 * Cin + 4 * hidden)
                + (2 << 20))
    vmem_limit = int(min(64 * 1024 * 1024, max(32 * 1024 * 1024, 2 * vmem_est)))

    kernel = functools.partial(_fused_kernel, n=N, w_pix=W, cout=Cout, cout_pad=Cp)
    out = pl.pallas_call(
        kernel,
        out_shape=jax.ShapeDtypeStruct((B, Cout, N), jnp.float32),
        grid=(B,),
        in_specs=[
            pl.BlockSpec((1, Ca, N), lambda b: (b, 0, 0)),
            pl.BlockSpec((1, Cb, N), lambda b: (b, 0, 0)),
            pl.BlockSpec((hidden, Ca), lambda b: (0, 0)),
            pl.BlockSpec((hidden, 1), lambda b: (0, 0)),
            pl.BlockSpec((hidden, Cb), lambda b: (0, 0)),
            pl.BlockSpec((hidden, 1), lambda b: (0, 0)),
            pl.BlockSpec((9 * Cp, Ca), lambda b: (0, 0)),
            pl.BlockSpec((9 * Cp, Cb), lambda b: (0, 0)),
            pl.BlockSpec((9, 1, N), lambda b: (0, 0, 0)),
            pl.BlockSpec((Cout, 1), lambda b: (0, 0)),
            pl.BlockSpec((Cout, 1), lambda b: (0, 0)),
        ],
        out_specs=pl.BlockSpec((1, Cout, N), lambda b: (b, 0, 0)),
        compiler_params=pltpu.CompilerParams(
            # TODO(synk): on v7x verify the batch axis is actually split across both
            # TensorCores; if not, switch to CORE_PARALLEL / pl.core_map.
            dimension_semantics=("parallel",),
            vmem_limit_bytes=vmem_limit),
    )(xa, xb, params["wa"], ba, params["wb"], bb, wa9, wb9, tap_mask,
      bn_scale, bn_shift)

    # (B, Cout, N) already holds NCHW-ordered data: reshape only.
    return out.reshape(B, Cout, H, W)


def make_params(key, input_dim_a, input_dim_b, hidden_dim):
    ks = jax.random.split(key, 5)
    Cin = input_dim_a + input_dim_b
    Cout = input_dim_a
    return {
        # nn.Linear layout: weight (out_features, in_features), bias (out_features,)
        "wa": jax.random.normal(ks[0], (hidden_dim, input_dim_a), jnp.float32) * 0.05,
        "ba": jax.random.normal(ks[1], (hidden_dim,), jnp.float32) * 0.05,
        "wb": jax.random.normal(ks[2], (hidden_dim, input_dim_b), jnp.float32) * 0.05,
        "bb": jax.random.normal(ks[3], (hidden_dim,), jnp.float32) * 0.05,
        # nn.Conv2d layout: (Cout, Cin, 3, 3), bias=False
        "conv_w": jax.random.normal(ks[4], (Cout, Cin, 3, 3), jnp.float32) * 0.05,
        # BatchNorm2d (eval-mode running stats)
        "bn_gamma": 1.0 + 0.01 * jnp.arange(Cout, dtype=jnp.float32),
        "bn_beta": 0.01 * jnp.arange(Cout, dtype=jnp.float32),
        "bn_mean": jnp.zeros((Cout,), jnp.float32),
        "bn_var": jnp.ones((Cout,), jnp.float32),
    }


def _reference(input_a, input_b, params):
    """Pure-JAX re-implementation of the PyTorch forward (eval-mode BN)."""
    B, Ca, H, W = input_a.shape
    Cb = input_b.shape[1]
    N = H * W
    with jax.default_matmul_precision("highest"):
        xa = jnp.transpose(input_a.reshape(B, Ca, N), (0, 2, 1))      # (B, N, Ca)
        xb = jnp.transpose(input_b.reshape(B, Cb, N), (0, 2, 1))
        ma = xa @ params["wa"].T + params["ba"]
        mb = xb @ params["wb"].T + params["bb"]
        scores = jnp.einsum("bnh,bmh->bnm", ma, mb)
        attn_a = jax.nn.softmax(scores, axis=-1)
        attn_b = jax.nn.softmax(jnp.swapaxes(scores, 1, 2), axis=-1)
        out_a = jnp.einsum("bnm,bnc->bmc", attn_a, xa)
        out_b = jnp.einsum("bnm,bmc->bnc", attn_b, xb)
        feat = jnp.concatenate(
            [jnp.transpose(out_a.reshape(B, H, W, Ca), (0, 3, 1, 2)),
             jnp.transpose(out_b.reshape(B, H, W, Cb), (0, 3, 1, 2))], axis=1)
        conv = jax.lax.conv_general_dilated(
            feat, params["conv_w"], window_strides=(1, 1),
            padding=((1, 1), (1, 1)),
            dimension_numbers=("NCHW", "OIHW", "NCHW"),
            precision=jax.lax.Precision.HIGHEST)
        inv = params["bn_gamma"] / jnp.sqrt(params["bn_var"] + 1e-5)
        y = conv * inv[None, :, None, None] + (
            params["bn_beta"] - params["bn_mean"] * inv)[None, :, None, None]
        return jnp.maximum(y, 0.0)


if __name__ == "__main__":
    B, Ca, Cb, H, W, hidden = 2, 4, 8, 16, 16, 32

    key = jax.random.PRNGKey(0)
    k_a, k_b, k_p = jax.random.split(key, 3)
    input_a = jax.random.normal(k_a, (B, Ca, H, W), jnp.float32)
    input_b = jax.random.normal(k_b, (B, Cb, H, W), jnp.float32)
    params = make_params(k_p, Ca, Cb, hidden)

    out = attention_branch_fusion(input_a, input_b, params)
    jax.block_until_ready(out)
    assert out.shape == (B, Ca, H, W), out.shape

    ref = _reference(input_a, input_b, params)
    err = float(jnp.max(jnp.abs(out - ref)))
    assert err < 5e-3, f"kernel/reference mismatch, max abs err = {err}"
    print("KERNEL_OK")
</pallas_src>

<mosaic_0001>
module attributes {stable_mosaic.version = 11 : i64} {
  func.func @_fused_kernel(%arg0: i32, %arg1: memref<1x4x256xf32, #tpu.memory_space<vmem>>, %arg2: memref<1x8x256xf32, #tpu.memory_space<vmem>>, %arg3: memref<32x4xf32, #tpu.memory_space<vmem>>, %arg4: memref<32x1xf32, #tpu.memory_space<vmem>>, %arg5: memref<32x8xf32, #tpu.memory_space<vmem>>, %arg6: memref<32x1xf32, #tpu.memory_space<vmem>>, %arg7: memref<72x4xf32, #tpu.memory_space<vmem>>, %arg8: memref<72x8xf32, #tpu.memory_space<vmem>>, %arg9: memref<9x1x256xf32, #tpu.memory_space<vmem>>, %arg10: memref<4x1xf32, #tpu.memory_space<vmem>>, %arg11: memref<4x1xf32, #tpu.memory_space<vmem>>, %arg12: memref<1x4x256xf32, #tpu.memory_space<vmem>>) attributes {dimension_semantics = [#tpu.dimension_semantics<parallel>], iteration_bounds = array<i64: 2>, scalar_prefetch = 0 : i64, scratch_operands = 0 : i64, tpu.core_type = #tpu.core_type<tc>, window_params = [{transform_indices = @transform_0, window_bounds = array<i64: 1, 4, 256>}, {transform_indices = @transform_1, window_bounds = array<i64: 1, 8, 256>}, {pipeline_mode = #tpu.pipeline_mode<synchronous>, transform_indices = @transform_2, window_bounds = array<i64: 32, 4>}, {pipeline_mode = #tpu.pipeline_mode<synchronous>, transform_indices = @transform_3, window_bounds = array<i64: 32, 1>}, {pipeline_mode = #tpu.pipeline_mode<synchronous>, transform_indices = @transform_4, window_bounds = array<i64: 32, 8>}, {pipeline_mode = #tpu.pipeline_mode<synchronous>, transform_indices = @transform_5, window_bounds = array<i64: 32, 1>}, {pipeline_mode = #tpu.pipeline_mode<synchronous>, transform_indices = @transform_6, window_bounds = array<i64: 72, 4>}, {pipeline_mode = #tpu.pipeline_mode<synchronous>, transform_indices = @transform_7, window_bounds = array<i64: 72, 8>}, {pipeline_mode = #tpu.pipeline_mode<synchronous>, transform_indices = @transform_8, window_bounds = array<i64: 9, 1, 256>}, {pipeline_mode = #tpu.pipeline_mode<synchronous>, transform_indices = @transform_9, window_bounds = array<i64: 4, 1>}, {pipeline_mode = #tpu.pipeline_mode<synchronous>, transform_indices = @transform_10, window_bounds = array<i64: 4, 1>}, {transform_indices = @transform_11, window_bounds = array<i64: 1, 4, 256>}]} {
    %c0 = arith.constant 0 : index
    %c0_0 = arith.constant 0 : index
    %c0_1 = arith.constant 0 : index
    %0 = vector.load %arg1[%c0, %c0_0, %c0_1] : memref<1x4x256xf32, #tpu.memory_space<vmem>>, vector<1x4x256xf32>
    %1 = vector.shape_cast %0 : vector<1x4x256xf32> to vector<4x256xf32>
    %c0_2 = arith.constant 0 : index
    %c0_3 = arith.constant 0 : index
    %c0_4 = arith.constant 0 : index
    %2 = vector.load %arg2[%c0_2, %c0_3, %c0_4] : memref<1x8x256xf32, #tpu.memory_space<vmem>>, vector<1x8x256xf32>
    %3 = vector.shape_cast %2 : vector<1x8x256xf32> to vector<8x256xf32>
    %4 = arith.truncf %1 : vector<4x256xf32> to vector<4x256xbf16>
    %5 = arith.truncf %3 : vector<8x256xf32> to vector<8x256xbf16>
    %c0_5 = arith.constant 0 : index
    %c0_6 = arith.constant 0 : index
    %6 = vector.load %arg3[%c0_5, %c0_6] : memref<32x4xf32, #tpu.memory_space<vmem>>, vector<32x4xf32>
    %7 = arith.truncf %6 : vector<32x4xf32> to vector<32x4xbf16>
    %cst = arith.constant dense<0.000000e+00> : vector<32x256xf32>
    %8 = tpu.matmul %7, %4, %cst {dimension_numbers = #tpu.dot_dimension_numbers<[1], [0], [0], [1], [0, 0, 1, 1], [], []>} : vector<32x4xbf16>, vector<4x256xbf16>, vector<32x256xf32> -> vector<32x256xf32>
    %c0_7 = arith.constant 0 : index
    %c0_8 = arith.constant 0 : index
    %9 = vector.load %arg4[%c0_7, %c0_8] : memref<32x1xf32, #tpu.memory_space<vmem>>, vector<32x1xf32>
    %10 = vector.broadcast %9 : vector<32x1xf32> to vector<32x256xf32>
    %11 = arith.addf %8, %10 : vector<32x256xf32>
    %c0_9 = arith.constant 0 : index
    %c0_10 = arith.constant 0 : index
    %12 = vector.load %arg5[%c0_9, %c0_10] : memref<32x8xf32, #tpu.memory_space<vmem>>, vector<32x8xf32>
    %13 = arith.truncf %12 : vector<32x8xf32> to vector<32x8xbf16>
    %cst_11 = arith.constant dense<0.000000e+00> : vector<32x256xf32>
    %14 = tpu.matmul %13, %5, %cst_11 {dimension_numbers = #tpu.dot_dimension_numbers<[1], [0], [0], [1], [0, 0, 1, 1], [], []>} : vector<32x8xbf16>, vector<8x256xbf16>, vector<32x256xf32> -> vector<32x256xf32>
    %c0_12 = arith.constant 0 : index
    %c0_13 = arith.constant 0 : index
    %15 = vector.load %arg6[%c0_12, %c0_13] : memref<32x1xf32, #tpu.memory_space<vmem>>, vector<32x1xf32>
    %16 = vector.broadcast %15 : vector<32x1xf32> to vector<32x256xf32>
    %17 = arith.addf %14, %16 : vector<32x256xf32>
    %18 = arith.truncf %11 : vector<32x256xf32> to vector<32x256xbf16>
    %19 = arith.truncf %17 : vector<32x256xf32> to vector<32x256xbf16>
    %cst_14 = arith.constant dense<0.000000e+00> : vector<256x256xf32>
    %20 = tpu.matmul %18, %19, %cst_14 {dimension_numbers = #tpu.dot_dimension_numbers<[0], [0], [1], [1], [0, 1, 1, 1], [], []>} : vector<32x256xbf16>, vector<32x256xbf16>, vector<256x256xf32> -> vector<256x256xf32>
    %cst_15 = arith.constant dense<0xFF800000> : vector<256xf32>
    %21 = vector.multi_reduction <maximumf>, %20, %cst_15 [1] : vector<256x256xf32> to vector<256xf32>
    %22 = vector.shape_cast %21 : vector<256xf32> to vector<256x1xf32>
    %23 = vector.broadcast %22 : vector<256x1xf32> to vector<256x256xf32>
    %24 = arith.subf %20, %23 : vector<256x256xf32>
    %25 = math.exp %24 : vector<256x256xf32>
    %cst_16 = arith.constant dense<0.000000e+00> : vector<256xf32>
    %26 = vector.multi_reduction <add>, %25, %cst_16 [1] : vector<256x256xf32> to vector<256xf32>
    %27 = vector.shape_cast %26 : vector<256xf32> to vector<256x1xf32>
    %28 = tpu.reciprocal %27 {approx = true} : vector<256x1xf32> -> vector<256x1xf32>
    %29 = vector.broadcast %28 : vector<256x1xf32> to vector<256x256xf32>
    %30 = arith.mulf %25, %29 : vector<256x256xf32>
    %31 = arith.truncf %30 : vector<256x256xf32> to vector<256x256xbf16>
    %cst_17 = arith.constant dense<0.000000e+00> : vector<4x256xf32>
    %32 = tpu.matmul %4, %31, %cst_17 {dimension_numbers = #tpu.dot_dimension_numbers<[1], [0], [0], [1], [0, 0, 1, 1], [], []>} : vector<4x256xbf16>, vector<256x256xbf16>, vector<4x256xf32> -> vector<4x256xf32>
    %cst_18 = arith.constant dense<0xFF800000> : vector<256xf32>
    %33 = vector.multi_reduction <maximumf>, %20, %cst_18 [0] : vector<256x256xf32> to vector<256xf32>
    %34 = vector.shape_cast %33 : vector<256xf32> to vector<1x256xf32>
    %35 = vector.broadcast %34 : vector<1x256xf32> to vector<256x256xf32>
    %36 = arith.subf %20, %35 : vector<256x256xf32>
    %37 = math.exp %36 : vector<256x256xf32>
    %cst_19 = arith.constant dense<0.000000e+00> : vector<256xf32>
    %38 = vector.multi_reduction <add>, %37, %cst_19 [0] : vector<256x256xf32> to vector<256xf32>
    %39 = vector.shape_cast %38 : vector<256xf32> to vector<1x256xf32>
    %40 = tpu.reciprocal %39 {approx = true} : vector<1x256xf32> -> vector<1x256xf32>
    %41 = arith.truncf %37 : vector<256x256xf32> to vector<256x256xbf16>
    %cst_20 = arith.constant dense<0.000000e+00> : vector<8x256xf32>
    %42 = tpu.matmul %5, %41, %cst_20 {dimension_numbers = #tpu.dot_dimension_numbers<[1], [0], [0], [1], [0, 0, 1, 1], [], []>} : vector<8x256xbf16>, vector<256x256xbf16>, vector<8x256xf32> -> vector<8x256xf32>
    %43 = vector.broadcast %40 : vector<1x256xf32> to vector<8x256xf32>
    %44 = arith.mulf %42, %43 : vector<8x256xf32>
    %c0_21 = arith.constant 0 : index
    %c0_22 = arith.constant 0 : index
    %45 = vector.load %arg7[%c0_21, %c0_22] : memref<72x4xf32, #tpu.memory_space<vmem>>, vector<72x4xf32>
    %46 = arith.truncf %45 : vector<72x4xf32> to vector<72x4xbf16>
    %47 = arith.truncf %32 : vector<4x256xf32> to vector<4x256xbf16>
    %cst_23 = arith.constant dense<0.000000e+00> : vector<72x256xf32>
    %48 = tpu.matmul %46, %47, %cst_23 {dimension_numbers = #tpu.dot_dimension_numbers<[1], [0], [0], [1], [0, 0, 1, 1], [], []>} : vector<72x4xbf16>, vector<4x256xbf16>, vector<72x256xf32> -> vector<72x256xf32>
    %c0_24 = arith.constant 0 : index
    %c0_25 = arith.constant 0 : index
    %49 = vector.load %arg8[%c0_24, %c0_25] : memref<72x8xf32, #tpu.memory_space<vmem>>, vector<72x8xf32>
    %50 = arith.truncf %49 : vector<72x8xf32> to vector<72x8xbf16>
    %51 = arith.truncf %44 : vector<8x256xf32> to vector<8x256xbf16>
    %cst_26 = arith.constant dense<0.000000e+00> : vector<72x256xf32>
    %52 = tpu.matmul %50, %51, %cst_26 {dimension_numbers = #tpu.dot_dimension_numbers<[1], [0], [0], [1], [0, 0, 1, 1], [], []>} : vector<72x8xbf16>, vector<8x256xbf16>, vector<72x256xf32> -> vector<72x256xf32>
    %53 = arith.addf %48, %52 : vector<72x256xf32>
    %cst_27 = arith.constant 0.000000e+00 : f32
    %54 = vector.broadcast %cst_27 : f32 to vector<8x256xf32>
    %55 = vector.extract_strided_slice %53 {offsets = [0, 0], sizes = [8, 256], strides = [1, 1]} : vector<72x256xf32> to vector<8x256xf32>
    %c17_i32 = arith.constant 17 : i32
    %56 = tpu.dynamic_rotate %55 by %c17_i32 dim 1 : vector<8x256xf32>, i32 -> vector<8x256xf32>
    %c0_28 = arith.constant 0 : index
    %c0_29 = arith.constant 0 : index
    %c0_30 = arith.constant 0 : index
    %57 = vector.load %arg9[%c0_28, %c0_29, %c0_30] : memref<9x1x256xf32, #tpu.memory_space<vmem>>, vector<1x1x256xf32>
    %58 = vector.shape_cast %57 : vector<1x1x256xf32> to vector<1x256xf32>
    %59 = vector.broadcast %58 : vector<1x256xf32> to vector<8x256xf32>
    %60 = arith.mulf %56, %59 : vector<8x256xf32>
    %61 = arith.addf %54, %60 : vector<8x256xf32>
    %62 = vector.extract_strided_slice %53 {offsets = [8, 0], sizes = [8, 256], strides = [1, 1]} : vector<72x256xf32> to vector<8x256xf32>
    %c16_i32 = arith.constant 16 : i32
    %63 = tpu.dynamic_rotate %62 by %c16_i32 dim 1 : vector<8x256xf32>, i32 -> vector<8x256xf32>
    %c1 = arith.constant 1 : index
    %c0_31 = arith.constant 0 : index
    %c0_32 = arith.constant 0 : index
    %64 = vector.load %arg9[%c1, %c0_31, %c0_32] : memref<9x1x256xf32, #tpu.memory_space<vmem>>, vector<1x1x256xf32>
    %65 = vector.shape_cast %64 : vector<1x1x256xf32> to vector<1x256xf32>
    %66 = vector.broadcast %65 : vector<1x256xf32> to vector<8x256xf32>
    %67 = arith.mulf %63, %66 : vector<8x256xf32>
    %68 = arith.addf %61, %67 : vector<8x256xf32>
    %69 = vector.extract_strided_slice %53 {offsets = [16, 0], sizes = [8, 256], strides = [1, 1]} : vector<72x256xf32> to vector<8x256xf32>
    %c15_i32 = arith.constant 15 : i32
    %70 = tpu.dynamic_rotate %69 by %c15_i32 dim 1 : vector<8x256xf32>, i32 -> vector<8x256xf32>
    %c2 = arith.constant 2 : index
    %c0_33 = arith.constant 0 : index
    %c0_34 = arith.constant 0 : index
    %71 = vector.load %arg9[%c2, %c0_33, %c0_34] : memref<9x1x256xf32, #tpu.memory_space<vmem>>, vector<1x1x256xf32>
    %72 = vector.shape_cast %71 : vector<1x1x256xf32> to vector<1x256xf32>
    %73 = vector.broadcast %72 : vector<1x256xf32> to vector<8x256xf32>
    %74 = arith.mulf %70, %73 : vector<8x256xf32>
    %75 = arith.addf %68, %74 : vector<8x256xf32>
    %76 = vector.extract_strided_slice %53 {offsets = [24, 0], sizes = [8, 256], strides = [1, 1]} : vector<72x256xf32> to vector<8x256xf32>
    %c1_i32 = arith.constant 1 : i32
    %77 = tpu.dynamic_rotate %76 by %c1_i32 dim 1 : vector<8x256xf32>, i32 -> vector<8x256xf32>
    %c3 = arith.constant 3 : index
    %c0_35 = arith.constant 0 : index
    %c0_36 = arith.constant 0 : index
    %78 = vector.load %arg9[%c3, %c0_35, %c0_36] : memref<9x1x256xf32, #tpu.memory_space<vmem>>, vector<1x1x256xf32>
    %79 = vector.shape_cast %78 : vector<1x1x256xf32> to vector<1x256xf32>
    %80 = vector.broadcast %79 : vector<1x256xf32> to vector<8x256xf32>
    %81 = arith.mulf %77, %80 : vector<8x256xf32>
    %82 = arith.addf %75, %81 : vector<8x256xf32>
    %83 = vector.extract_strided_slice %53 {offsets = [32, 0], sizes = [8, 256], strides = [1, 1]} : vector<72x256xf32> to vector<8x256xf32>
    %c4 = arith.constant 4 : index
    %c0_37 = arith.constant 0 : index
    %c0_38 = arith.constant 0 : index
    %84 = vector.load %arg9[%c4, %c0_37, %c0_38] : memref<9x1x256xf32, #tpu.memory_space<vmem>>, vector<1x1x256xf32>
    %85 = vector.shape_cast %84 : vector<1x1x256xf32> to vector<1x256xf32>
    %86 = vector.broadcast %85 : vector<1x256xf32> to vector<8x256xf32>
    %87 = arith.mulf %83, %86 : vector<8x256xf32>
    %88 = arith.addf %82, %87 : vector<8x256xf32>
    %89 = vector.extract_strided_slice %53 {offsets = [40, 0], sizes = [8, 256], strides = [1, 1]} : vector<72x256xf32> to vector<8x256xf32>
    %c255_i32 = arith.constant 255 : i32
    %90 = tpu.dynamic_rotate %89 by %c255_i32 dim 1 : vector<8x256xf32>, i32 -> vector<8x256xf32>
    %c5 = arith.constant 5 : index
    %c0_39 = arith.constant 0 : index
    %c0_40 = arith.constant 0 : index
    %91 = vector.load %arg9[%c5, %c0_39, %c0_40] : memref<9x1x256xf32, #tpu.memory_space<vmem>>, vector<1x1x256xf32>
    %92 = vector.shape_cast %91 : vector<1x1x256xf32> to vector<1x256xf32>
    %93 = vector.broadcast %92 : vector<1x256xf32> to vector<8x256xf32>
    %94 = arith.mulf %90, %93 : vector<8x256xf32>
    %95 = arith.addf %88, %94 : vector<8x256xf32>
    %96 = vector.extract_strided_slice %53 {offsets = [48, 0], sizes = [8, 256], strides = [1, 1]} : vector<72x256xf32> to vector<8x256xf32>
    %c241_i32 = arith.constant 241 : i32
    %97 = tpu.dynamic_rotate %96 by %c241_i32 dim 1 : vector<8x256xf32>, i32 -> vector<8x256xf32>
    %c6 = arith.constant 6 : index
    %c0_41 = arith.constant 0 : index
    %c0_42 = arith.constant 0 : index
    %98 = vector.load %arg9[%c6, %c0_41, %c0_42] : memref<9x1x256xf32, #tpu.memory_space<vmem>>, vector<1x1x256xf32>
    %99 = vector.shape_cast %98 : vector<1x1x256xf32> to vector<1x256xf32>
    %100 = vector.broadcast %99 : vector<1x256xf32> to vector<8x256xf32>
    %101 = arith.mulf %97, %100 : vector<8x256xf32>
    %102 = arith.addf %95, %101 : vector<8x256xf32>
    %103 = vector.extract_strided_slice %53 {offsets = [56, 0], sizes = [8, 256], strides = [1, 1]} : vector<72x256xf32> to vector<8x256xf32>
    %c240_i32 = arith.constant 240 : i32
    %104 = tpu.dynamic_rotate %103 by %c240_i32 dim 1 : vector<8x256xf32>, i32 -> vector<8x256xf32>
    %c7 = arith.constant 7 : index
    %c0_43 = arith.constant 0 : index
    %c0_44 = arith.constant 0 : index
    %105 = vector.load %arg9[%c7, %c0_43, %c0_44] : memref<9x1x256xf32, #tpu.memory_space<vmem>>, vector<1x1x256xf32>
    %106 = vector.shape_cast %105 : vector<1x1x256xf32> to vector<1x256xf32>
    %107 = vector.broadcast %106 : vector<1x256xf32> to vector<8x256xf32>
    %108 = arith.mulf %104, %107 : vector<8x256xf32>
    %109 = arith.addf %102, %108 : vector<8x256xf32>
    %110 = vector.extract_strided_slice %53 {offsets = [64, 0], sizes = [8, 256], strides = [1, 1]} : vector<72x256xf32> to vector<8x256xf32>
    %c239_i32 = arith.constant 239 : i32
    %111 = tpu.dynamic_rotate %110 by %c239_i32 dim 1 : vector<8x256xf32>, i32 -> vector<8x256xf32>
    %c8 = arith.constant 8 : index
    %c0_45 = arith.constant 0 : index
    %c0_46 = arith.constant 0 : index
    %112 = vector.load %arg9[%c8, %c0_45, %c0_46] : memref<9x1x256xf32, #tpu.memory_space<vmem>>, vector<1x1x256xf32>
    %113 = vector.shape_cast %112 : vector<1x1x256xf32> to vector<1x256xf32>
    %114 = vector.broadcast %113 : vector<1x256xf32> to vector<8x256xf32>
    %115 = arith.mulf %111, %114 : vector<8x256xf32>
    %116 = arith.addf %109, %115 : vector<8x256xf32>
    %117 = vector.extract_strided_slice %116 {offsets = [0, 0], sizes = [4, 256], strides = [1, 1]} : vector<8x256xf32> to vector<4x256xf32>
    %c0_47 = arith.constant 0 : index
    %c0_48 = arith.constant 0 : index
    %118 = vector.load %arg10[%c0_47, %c0_48] : memref<4x1xf32, #tpu.memory_space<vmem>>, vector<4x1xf32>
    %119 = vector.broadcast %118 : vector<4x1xf32> to vector<4x256xf32>
    %120 = arith.mulf %117, %119 : vector<4x256xf32>
    %c0_49 = arith.constant 0 : index
    %c0_50 = arith.constant 0 : index
    %121 = vector.load %arg11[%c0_49, %c0_50] : memref<4x1xf32, #tpu.memory_space<vmem>>, vector<4x1xf32>
    %122 = vector.broadcast %121 : vector<4x1xf32> to vector<4x256xf32>
    %123 = arith.addf %120, %122 : vector<4x256xf32>
    %cst_51 = arith.constant 0.000000e+00 : f32
    %124 = vector.broadcast %cst_51 : f32 to vector<4x256xf32>
    %125 = arith.maximumf %123, %124 : vector<4x256xf32>
    %c0_52 = arith.constant 0 : index
    %c0_53 = arith.constant 0 : index
    %c0_54 = arith.constant 0 : index
    %126 = vector.load %arg12[%c0_52, %c0_53, %c0_54] : memref<1x4x256xf32, #tpu.memory_space<vmem>>, vector<1x4x256xf32>
    %127 = vector.shape_cast %126 : vector<1x4x256xf32> to vector<4x256xf32>
    %128 = vector.shape_cast %125 : vector<4x256xf32> to vector<1x4x256xf32>
    tpu.vector_store %arg12[%c0_52, %c0_53, %c0_54], %128 {strides = array<i32>} : memref<1x4x256xf32, #tpu.memory_space<vmem>>, vector<1x4x256xf32>,
    return
  }
  func.func @transform_0(%arg0: i32) -> (i32, i32, i32) {
    %c0_i32 = arith.constant 0 : i32
    %c0_i32_0 = arith.constant 0 : i32
    %c0_i32_1 = arith.constant 0 : i32
    return %arg0, %c0_i32, %c0_i32_0 : i32, i32, i32
  }
  func.func @transform_1(%arg0: i32) -> (i32, i32, i32) {
    %c0_i32 = arith.constant 0 : i32
    %c0_i32_0 = arith.constant 0 : i32
    %c0_i32_1 = arith.constant 0 : i32
    return %arg0, %c0_i32, %c0_i32_0 : i32, i32, i32
  }
  func.func @transform_2(%arg0: i32) -> (i32, i32) {
    %c0_i32 = arith.constant 0 : i32
    %c0_i32_0 = arith.constant 0 : i32
    %c0_i32_1 = arith.constant 0 : i32
    return %c0_i32, %c0_i32_0 : i32, i32
  }
  func.func @transform_3(%arg0: i32) -> (i32, i32) {
    %c0_i32 = arith.constant 0 : i32
    %c0_i32_0 = arith.constant 0 : i32
    %c0_i32_1 = arith.constant 0 : i32
    return %c0_i32, %c0_i32_0 : i32, i32
  }
  func.func @transform_4(%arg0: i32) -> (i32, i32) {
    %c0_i32 = arith.constant 0 : i32
    %c0_i32_0 = arith.constant 0 : i32
    %c0_i32_1 = arith.constant 0 : i32
    return %c0_i32, %c0_i32_0 : i32, i32
  }
  func.func @transform_5(%arg0: i32) -> (i32, i32) {
    %c0_i32 = arith.constant 0 : i32
    %c0_i32_0 = arith.constant 0 : i32
    %c0_i32_1 = arith.constant 0 : i32
    return %c0_i32, %c0_i32_0 : i32, i32
  }
  func.func @transform_6(%arg0: i32) -> (i32, i32) {
    %c0_i32 = arith.constant 0 : i32
    %c0_i32_0 = arith.constant 0 : i32
    %c0_i32_1 = arith.constant 0 : i32
    return %c0_i32, %c0_i32_0 : i32, i32
  }
  func.func @transform_7(%arg0: i32) -> (i32, i32) {
    %c0_i32 = arith.constant 0 : i32
    %c0_i32_0 = arith.constant 0 : i32
    %c0_i32_1 = arith.constant 0 : i32
    return %c0_i32, %c0_i32_0 : i32, i32
  }
  func.func @transform_8(%arg0: i32) -> (i32, i32, i32) {
    %c0_i32 = arith.constant 0 : i32
    %c0_i32_0 = arith.constant 0 : i32
    %c0_i32_1 = arith.constant 0 : i32
    %c0_i32_2 = arith.constant 0 : i32
    return %c0_i32, %c0_i32_0, %c0_i32_1 : i32, i32, i32
  }
  func.func @transform_9(%arg0: i32) -> (i32, i32) {
    %c0_i32 = arith.constant 0 : i32
    %c0_i32_0 = arith.constant 0 : i32
    %c0_i32_1 = arith.constant 0 : i32
    return %c0_i32, %c0_i32_0 : i32, i32
  }
  func.func @transform_10(%arg0: i32) -> (i32, i32) {
    %c0_i32 = arith.constant 0 : i32
    %c0_i32_0 = arith.constant 0 : i32
    %c0_i32_1 = arith.constant 0 : i32
    return %c0_i32, %c0_i32_0 : i32, i32
  }
  func.func @transform_11(%arg0: i32) -> (i32, i32, i32) {
    %c0_i32 = arith.constant 0 : i32
    %c0_i32_0 = arith.constant 0 : i32
    %c0_i32_1 = arith.constant 0 : i32
    return %arg0, %c0_i32, %c0_i32_0 : i32, i32, i32
  }
}

</mosaic_0001>

<bundles_post_ra>
// kernel: tpu_custom_call.1
= control target key start
LH: loop header
LB: loop body
LE: loop exit
PB: predicated region body
PF: predicated region fallthrough
CT: control target
= control target key end

     0   :  { %16 = vsyncpa [#allocation3], 0  ;;  %s4435_s0 = inlined_call_operand.vmem [shape: f32[2,4,256], index: 0, kind: input, shape index: {}]   ;;  %s4436_s1 = inlined_call_operand.vmem [shape: f32[2,8,256], index: 1, kind: input, shape index: {}]   ;;  %s4437_s2 = inlined_call_operand.vmem [shape: f32[32,4], index: 2, kind: input, shape index: {}]   ;;  %s4438_s3 = inlined_call_operand.vmem [shape: f32[32,1], index: 3, kind: input, shape index: {}]   ;;  %s4439_s4 = inlined_call_operand.vmem [shape: f32[32,8], index: 4, kind: input, shape index: {}]   ;;  %s4440_s5 = inlined_call_operand.vmem [shape: f32[32,1], index: 5, kind: input, shape index: {}]   ;;  %s4441_s6 = inlined_call_operand.vmem [shape: f32[72,4], index: 6, kind: input, shape index: {}]   ;;  %s4442_s7 = inlined_call_operand.vmem [shape: f32[72,8], index: 7, kind: input, shape index: {}]   ;;  %s4443_s8 = inlined_call_operand.vmem [shape: f32[9,1,256], index: 8, kind: input, shape index: {}]   ;;  %s4444_s9 = inlined_call_operand.vmem [shape: f32[4,1], index: 9, kind: input, shape index: {}]   ;;  %s4445_s10 = inlined_call_operand.vmem [shape: f32[4,1], index: 10, kind: input, shape index: {}]   ;;  %s4446_s11 = inlined_call_operand.hbm [shape: f32[2,4,256], index: 11, kind: output, shape index: {}]  }
   0x1   :  { %18 = vsyncpa [#allocation3 + $0x1], 0  ;;  %s2901_s17 = smov 0   ;;  %s2903_s18 = smov 0  }
   0x2   :  { %s2905_s19 = smov 0   ;;  %s2907_s20 = smov 0  }
   0x3 LB: > { %4610 = sst [smem:[#allocation5_spill]] %s2818_s17  ;;  %s2922_s21 = sadd.s32 4294967295, %s2830_s20   ;;  %s2830_s20 = sphi %s2907_s20, %s4889_s20   ;;  %s2826_s19 = sphi %s2905_s19, %s4891_s19   ;;  %s2822_s18 = sphi %s2903_s18, %s4893_s18   ;;  %s2818_s17 = sphi %s2901_s17, %s4892_s17  }
   0x4   : > { %4611 = sst [smem:[#allocation6_spill]] %s2826_s19  ;;  %s2308_s22 = sadd.s32 4294967294, %s2830_s20  }
   0x5   : > { %s2926_s23 = sadd.s32 1, %s2830_s20   ;;  %s272_s24 = sadd.s32 1, %s2826_s19 }
   0x6   : > { %4612 = sst [smem:[#allocation7_spill]] %s2926_s23  ;;  %s269_s25 = ssub.s32 %s2830_s20, %s2926_s23 }
   0x7   : > { %p282_p0 = scmp.ne.s32.totalorder %s2826_s19, %s2822_s18  ;;  %p270_p1 = scmp.eq.s32.totalorder %s269_s25, 0 }
   0x8   : > { %p283_p2 = scmp.eq.s32.totalorder %s2922_s21, 1  ;;  %p288_p3 = scmp.ne.s32.totalorder %s2822_s18, %s2818_s17 }
   0x9   : > { %p289_p4 = scmp.eq.s32.totalorder %s2308_s22, 1  ;;  %p2311_p7 = scmp.ge.s32.totalorder %s2830_s20, 1 }
   0xa   : > { %s2937_s26 = scalar_select %p270_p1, %s2826_s19, %s272_s24  }
   0xb   : > { %p2939_p5 = por %p283_p2, %p282_p0  ;;  %p2943_p6 = por %p289_p4, %p288_p3 }
   0xc   : > { %4613 = sst [smem:[#allocation8_spill]] %s2937_s26  ;;  %p350_p8 = scmp.lt.s32.totalorder %s2830_s20, 3 }
   0xd   : > { %s4615_s28 = scalar_select %p2943_p6, 1, 0 }
   0xe   : > { %p351_p9 = pnand %p2311_p7, %p350_p8 }
   0xf   : > { %4616 = sst [smem:[#allocation9_spill]] %s4615_s28 }
  0x10   : > { %354 = sbr.rel (%p351_p9) target bundleno = 1757 (0x6dd), region = 64 }
  0x15   : > { %p395_p10 = scmp.lt.s32.totalorder %s2922_s21, 1  ;;  %v2832_v0 = vmov 0   ;;  %v425_v1 = vld [vmem:[%s4438_s3] sm:$0xff]  ;;  %v427_v2 = vld [vmem:[%s4438_s3 + $0x10] sm:$0xff]  ;;  %v502_v4 = vld [vmem:[%s4439_s4 + $0x8] sm:$0xff]  ;;  %vm538_vm0 = vcmask 1043456  }
  0x16   : > { %2441 = vset.pattern.permute.xlu0 %v2832_v0  ;;  %2442 = vset.pattern.permute.xlu1 %v2832_v0  ;;  %v501_v3 = vld [vmem:[%s4439_s4] sm:$0xff]  ;;  %v509_v5 = vld [vmem:[%s4440_s5 + $0x10] sm:$0xff]  ;;  %v426_v11 = vld [vmem:[%s4438_s3 + $0x8] sm:$0xff]  ;;  %vm531_vm1 = vcmask 64512   ;;  %vm456_vm2 = vcmask 1041408   ;;  %vm449_vm3 = vcmask 31744  }
  0x17   : > { %s396_s12 = scalar_select %p395_p10, %s2922_s21, 1  ;;  %431 = vperm.xlu0 %2441, %v425_v1   ;;  %2443 = vset.pattern.permute.xlu2 %v2832_v0  ;;  %v428_v12 = vld [vmem:[%s4438_s3 + $0x18] sm:$0xff]  ;;  %v505_v15 = vpack.c.bf16 %v502_v4, %v501_v3  ;;  %v419_v17 = vld [vmem:[%s4437_s2] sm:$0xff]  ;;  %v420_v18 = vld [vmem:[%s4437_s2 + $0x8] sm:$0xff]  ;;  %vm615_vm4 = vcmask 261120  }
  0x18   : > { %441 = vperm.xlu1 %2442, %v427_v2   ;;  %523 = vperm.xlu2 %2443, %v509_v5   ;;  %v510_v16 = vld [vmem:[%s4440_s5 + $0x18] sm:$0xff]  ;;  %v507_v23 = vld [vmem:[%s4440_s5] sm:$0xff]  ;;  %v508_v24 = vld [vmem:[%s4440_s5 + $0x8] sm:$0xff]  ;;  %v423_v27 = vpack.c.bf16 %v420_v18, %v419_v17  ;;  %s2833_s13 = smov 17   ;;  %s2834_s14 = smov 16  }
  0x19   : > { %s2390_s15 = sshll.u32 %s396_s12, 3  ;;  %s2391_s16 = sshll.u32 %s396_s12, 4  ;;  %v503_v28 = vld [vmem:[%s4439_s4 + $0x10] sm:$0xff]  ;;  %v504_v29 = vld [vmem:[%s4439_s4 + $0x18] sm:$0xff] }
  0x1a   : > { %s399_s25 = scalar_lea.vmem %s4435_s0, %s2390_s15  ;;  %s404_s29 = scalar_lea.vmem %s4436_s1, %s2391_s16  ;;  %v506_v30 = vpack.c.bf16 %v504_v29, %v503_v28  ;;  %v421_v31 = vld [vmem:[%s4437_s2 + $0x10] sm:$0xff]  ;;  %v422_v32 = vld [vmem:[%s4437_s2 + $0x18] sm:$0xff] }
  0x1b   : > { %v406_v6 = vld [vmem:[%s399_s25] sm:$0xff]  ;;  %v408_v8 = vld [vmem:[%s404_s29 + $0x8] sm:$0xff]  ;;  %v424_v33 = vpack.c.bf16 %v422_v32, %v421_v31  ;;  %s2835_s19 = smov 1   ;;  %s2836_s23 = smov 15  }
  0x1c   : > { %v407_v7 = vld [vmem:[%s404_s29] sm:$0xff]  ;;  %410 = vst [vmem:[#allocation1] ss:$2 sm:$0xff] %v406_v6  ;;  %v2974_v10 = vpack.c.bf16 %v408_v8, %v408_v8  ;;  %s2837_s17 = smov 127   ;;  %s2838_s26 = smov 113  }
  0x1d   : > { %v2972_v9 = vpack.c.bf16 %v407_v7, %v407_v7  ;;  %s2839_s28 = smov 112   ;;  %s2840_s12 = smov 111  }
  0x1e   : > { %4618 = vst [vmem:[#allocation11_spill] sm:$0xff] %v2974_v10  ;;  %v543_v14 = vsel %vm538_vm0, %v2974_v10, 0  ;;  %s2788_s29 = scalar_lea.hbm %s4446_s11, 16 }
  0x1f   : > { %4617 = vst [vmem:[#allocation10_spill] sm:$0xff] %v2972_v9  ;;  %v540_v13 = vsel %vm538_vm0, %v2972_v9, 0  ;;  %571 = vmatpush.bf16.msra.mxu3 %v543_v14  ;;  %436 = vperm.xlu0 %2441, %v426_v11  }
  0x20   : > { %552 = vmatpush.bf16.msra.mxu2 %v540_v13  ;;  %446 = vperm.xlu1 %2442, %v428_v12  }
  0x21   : > { %528 = vperm.xlu2 %2443, %v510_v16  }
  0x22   : > { %2323 = vmatmul.msk.bf16.vlgmr.msra.gmra.mxu3 %vm531_vm1, %v505_v15 }
  0x23   : > { %2321 = vmatmul.msk.bf16.vlgmr.msra.gmra.mxu2 %vm531_vm1, %v505_v15  ;;  %v411_v19 = vld.sshfl [vmem:[#allocation1] sm:$0xff pattern:$0x75316420]  ;;  %v412_v20 = vld.sshfl [vmem:[#allocation1 + $0x8] sm:$0xff pattern:$0x75316420] }
  0x24   : > { %v2997_v21 = vpack.c.bf16 %v411_v19, %v411_v19  ;;  %v2999_v22 = vpack.c.bf16 %v412_v20, %v412_v20 }
  0x26   : > { %4619 = vst [vmem:[#allocation12_spill] sm:$0xff] %v2997_v21  ;;  %v458_v25 = vsel %vm456_vm2, %v2997_v21, 0  ;;  %v461_v26 = vsel %vm456_vm2, %v2999_v22, 0 }
  0x27   : > { %4620 = vst [vmem:[#allocation13_spill] sm:$0xff] %v2999_v22  ;;  %470 = vmatpush.bf16.msra.mxu0 %v458_v25  ;;  %489 = vmatpush.bf16.msra.mxu1 %v461_v26 }
  0x28   : > { %513 = vperm.xlu0 %2441, %v507_v23   ;;  %518 = vperm.xlu1 %2442, %v508_v24  }
  0x2a   : > { %2317 = vmatmul.msk.bf16.vlgmr.msra.gmra.mxu0 %vm449_vm3, %v423_v27  ;;  %2319 = vmatmul.msk.bf16.vlgmr.msra.gmra.mxu1 %vm449_vm3, %v423_v27 }
  0x32   : > { %2324 = vmatmul.msk.bf16.gmra.mxu3 %vm531_vm1, %v506_v30 }
  0x33   : > { %2322 = vmatmul.msk.bf16.gmra.mxu2 %vm531_vm1, %v506_v30 }
  0x3a   : > { %2318 = vmatmul.msk.bf16.gmra.mxu0 %vm449_vm3, %v424_v33  ;;  %2320 = vmatmul.msk.bf16.gmra.mxu1 %vm449_vm3, %v424_v33 }
  0x72   : > { %v524_v49 = vpop.permute.xlu2 %523 }
  0x7b   : > { %v529_v57 = vpop.permute.xlu2 %528 }
  0x89   : > { %v432_v34 = vpop.permute.xlu0 %431 }
  0x8a   : > { %v442_v39 = vpop.permute.xlu1 %441 }
  0x91   : > { %v437_v42 = vpop.permute.xlu0 %436 }
  0x92   : > { %v447_v50 = vpop.permute.xlu1 %446 }
  0x9a   : > { %v519_v58 = vpop.permute.xlu1 %518  ;;  %v514_v63 = vpop.permute.xlu0 %513 }
  0xa5   : > { %v573_v36 = vpop.f32.mrf.mxu3 }
  0xa6   : > { %v554_v35 = vpop.f32.mrf.mxu2  ;;  %v574_v15 = vadd.f32 %v573_v36, %v514_v63 }
  0xa7   : > { %v472_v37 = vpop.f32.mrf.mxu0  ;;  %v491_v38 = vpop.f32.mrf.mxu1  ;;  %v555_v14 = vadd.f32 %v554_v35, %v514_v63 }
  0xa8   : > { %v473_v45 = vadd.f32 %v472_v37, %v432_v34  ;;  %v492_v46 = vadd.f32 %v491_v38, %v432_v34 }
  0xad   : > { %v575_v41 = vpop.f32.mrf.mxu3 }
  0xae   : > { %v556_v40 = vpop.f32.mrf.mxu2  ;;  %v576_v3 = vadd.f32 %v575_v41, %v519_v58 }
  0xaf   : > { %v474_v43 = vpop.f32.mrf.mxu0  ;;  %v493_v44 = vpop.f32.mrf.mxu1  ;;  %v557_v2 = vadd.f32 %v556_v40, %v519_v58 }
  0xb0   : > { %v475_v47 = vadd.f32 %v474_v43, %v437_v42  ;;  %v494_v48 = vadd.f32 %v493_v44, %v437_v42  ;;  %v588_v19 = vpack.c.bf16 %v576_v3, %v574_v15 }
  0xb1   : > { %v587_v18 = vpack.c.bf16 %v557_v2, %v555_v14 }
  0xb2   : > { %v583_v51 = vpack.c.bf16 %v475_v47, %v473_v45  ;;  %v584_v52 = vpack.c.bf16 %v494_v48, %v492_v46 }
  0xb4   : > { %591 = vxpose.binary.xlu2.c.b16.start [1/4] (short) %v584_v52, %v583_v51, 128 }
  0xb5   : > { %v578_v54 = vpop.f32.mrf.mxu3 }
  0xb6   : > { %v559_v53 = vpop.f32.mrf.mxu2  ;;  %v579_v60 = vadd.f32 %v578_v54, %v524_v49 }
  0xb7   : > { %v477_v55 = vpop.f32.mrf.mxu0  ;;  %v496_v56 = vpop.f32.mrf.mxu1  ;;  %v560_v59 = vadd.f32 %v559_v53, %v524_v49 }
  0xb8   : > { %v478_v4 = vadd.f32 %v477_v55, %v442_v39  ;;  %v497_v5 = vadd.f32 %v496_v56, %v442_v39 }
  0xbd   : > { %v580_v62 = vpop.f32.mrf.mxu3 }
  0xbe   : > { %v561_v61 = vpop.f32.mrf.mxu2  ;;  %v581_v1 = vadd.f32 %v580_v62, %v529_v57 }
  0xbf   : > { %v562_v0 = vadd.f32 %v561_v61, %v529_v57  ;;  %v479_v6 = vpop.f32.mrf.mxu0  ;;  %v498_v7 = vpop.f32.mrf.mxu1 }
  0xc0   : > { %v480_v8 = vadd.f32 %v479_v6, %v447_v50  ;;  %v499_v11 = vadd.f32 %v498_v7, %v447_v50  ;;  %v590_v13 = vpack.c.bf16 %v581_v1, %v579_v60 }
  0xc1   : > { %v589_v12 = vpack.c.bf16 %v562_v0, %v560_v59 }
  0xc2   : > { %v585_v16 = vpack.c.bf16 %v480_v8, %v478_v4  ;;  %v586_v17 = vpack.c.bf16 %v499_v11, %v497_v5  ;;  %759 = vmatpush.bf16.msrb.mxu1 %v590_v13 }
  0xc3   : > { %670 = vmatpush.bf16.msrb.mxu0 %v589_v12 }
  0xc4   : > { %592 = vxpose.binary.xlu2.c.b16.end [2/4] (short) %v586_v17, %v585_v16, 128 }
  0xc6   : > { %760 = vmatpush.bf16.msrb.mxu1 %v588_v19 }
  0xc7   : > { %671 = vmatpush.bf16.msrb.mxu0 %v587_v18 }
 0x155   : > { %v599_v20 = vpop.trf.xlu2 }
 0x156   : > { %2325 = vmatmul.msk.bf16.vlgmr.msrb.gmra.mxu0 %vm615_vm4, %v599_v20  ;;  %2341 = vmatmul.msk.bf16.vlgmr.msrb.gmra.mxu1 %vm615_vm4, %v599_v20 }
 0x15d   : > { %v600_v23 = vpop.trf.xlu2 }
 0x165   : > { %v601_v24 = vpop.trf.xlu2 }
 0x166   : > { %2326 = vmatmul.msk.bf16.gmra.mxu0 %vm615_vm4, %v601_v24  ;;  %2342 = vmatmul.msk.bf16.gmra.mxu1 %vm615_vm4, %v601_v24 }
 0x16d   : > { %v602_v25 = vpop.trf.xlu2 }
 0x175   : > { %v603_v26 = vpop.trf.xlu2 }
 0x176   : > { %2327 = vmatmul.msk.bf16.gmra.mxu0 %vm615_vm4, %v603_v26  ;;  %2343 = vmatmul.msk.bf16.gmra.mxu1 %vm615_vm4, %v603_v26 }
 0x17d   : > { %v604_v27 = vpop.trf.xlu2 }
 0x185   : > { %v605_v28 = vpop.trf.xlu2 }
 0x186   : > { %2328 = vmatmul.msk.bf16.gmra.mxu0 %vm615_vm4, %v605_v28  ;;  %2344 = vmatmul.msk.bf16.gmra.mxu1 %vm615_vm4, %v605_v28 }
 0x18d   : > { %v606_v29 = vpop.trf.xlu2 }
 0x195   : > { %v607_v30 = vpop.trf.xlu2 }
 0x196   : > { %2329 = vmatmul.msk.bf16.gmra.mxu0 %vm615_vm4, %v607_v30  ;;  %2345 = vmatmul.msk.bf16.gmra.mxu1 %vm615_vm4, %v607_v30 }
 0x19d   : > { %v608_v31 = vpop.trf.xlu2 }
 0x1a5   : > { %v609_v32 = vpop.trf.xlu2 }
 0x1a6   : > { %2330 = vmatmul.msk.bf16.gmra.mxu0 %vm615_vm4, %v609_v32  ;;  %2346 = vmatmul.msk.bf16.gmra.mxu1 %vm615_vm4, %v609_v32 }
 0x1ad   : > { %v610_v33 = vpop.trf.xlu2 }
 0x1b5   : > { %v611_v34 = vpop.trf.xlu2 }
 0x1b6   : > { %2331 = vmatmul.msk.bf16.gmra.mxu0 %vm615_vm4, %v611_v34  ;;  %2347 = vmatmul.msk.bf16.gmra.mxu1 %vm615_vm4, %v611_v34 }
 0x1bd   : > { %v612_v35 = vpop.trf.xlu2 }
 0x1c5   : > { %v613_v36 = vpop.trf.xlu2 }
 0x1c6   : > { %2332 = vmatmul.msk.bf16.gmra.mxu0 %vm615_vm4, %v613_v36  ;;  %2348 = vmatmul.msk.bf16.gmra.mxu1 %vm615_vm4, %v613_v36 }
 0x1cd   : > { %v614_v13 = vpop.trf.xlu2 }
 0x1d3   : > { %v3045_v37 = vpop.f32.mrf.mxu0  ;;  %v3047_v38 = vpop.f32.mrf.mxu1 }
 0x1d4   : > { %v842_v18 = vmax.f32 %v3045_v37, %v3047_v38 }
 0x1d6   : > { %2333 = vmatmul.msk.bf16.gmra.mxu0 %vm615_vm4, %v600_v23  ;;  %2349 = vmatmul.msk.bf16.gmra.mxu1 %vm615_vm4, %v600_v23 }
 0x1db   : > { %v3051_v39 = vpop.f32.mrf.mxu0  ;;  %v3053_v40 = vpop.f32.mrf.mxu1 }
 0x1dc   : > { %4621 = vst [vmem:[#allocation14_spill] sm:$0xff] %v3051_v39 }
 0x1dd   : > { %4622 = vst [vmem:[#allocation15_spill] sm:$0xff] %v3053_v40 }
 0x1e3   : > { %v3055_v41 = vpop.f32.mrf.mxu0  ;;  %v3057_v42 = vpop.f32.mrf.mxu1 }
 0x1e4   : > { %4623 = vst [vmem:[#allocation16_spill] sm:$0xff] %v3055_v41  ;;  %v848_v14 = vmax.f32 %v3055_v41, %v3057_v42 }
 0x1e5   : > { %4624 = vst [vmem:[#allocation17_spill] sm:$0xff] %v3057_v42 }
 0x1e6   : > { %2334 = vmatmul.msk.bf16.gmra.mxu0 %vm615_vm4, %v602_v25  ;;  %2350 = vmatmul.msk.bf16.gmra.mxu1 %vm615_vm4, %v602_v25  ;;  %v845_v25 = vmax.f32 %v3051_v39, %v3053_v40 }
 0x1eb   : > { %v3061_v43 = vpop.f32.mrf.mxu0  ;;  %v3063_v44 = vpop.f32.mrf.mxu1 }
 0x1ec   : > { %v851_v19 = vmax.f32 %v3061_v43, %v3063_v44 }
 0x1f3   : > { %v3065_v45 = vpop.f32.mrf.mxu0  ;;  %v3067_v46 = vpop.f32.mrf.mxu1 }
 0x1f4   : > { %v854_v7 = vmax.f32 %v3065_v45, %v3067_v46 }
 0x1f6   : > { %2335 = vmatmul.msk.bf16.gmra.mxu0 %vm615_vm4, %v604_v27  ;;  %2351 = vmatmul.msk.bf16.gmra.mxu1 %vm615_vm4, %v604_v27 }
 0x1fb   : > { %v3071_v47 = vpop.f32.mrf.mxu0  ;;  %v3073_v48 = vpop.f32.mrf.mxu1 }
 0x1fc   : > { %4625 = vst [vmem:[#allocation18_spill] sm:$0xff] %v3071_v47  ;;  %v857_v15 = vmax.f32 %v3071_v47, %v3073_v48 }
 0x1fd   : > { %4626 = vst [vmem:[#allocation19_spill] sm:$0xff] %v3073_v48 }
 0x203   : > { %v3075_v49 = vpop.f32.mrf.mxu0  ;;  %v3077_v50 = vpop.f32.mrf.mxu1 }
 0x204   : > { %4627 = vst [vmem:[#allocation20_spill] sm:$0xff] %v3075_v49  ;;  %v860_v2 = vmax.f32 %v3075_v49, %v3077_v50 }
 0x206   : > { %2336 = vmatmul.msk.bf16.gmra.mxu0 %vm615_vm4, %v606_v29  ;;  %2352 = vmatmul.msk.bf16.gmra.mxu1 %vm615_vm4, %v606_v29 }
 0x20b   : > { %v3081_v51 = vpop.f32.mrf.mxu0  ;;  %v3083_v52 = vpop.f32.mrf.mxu1 }
 0x20c   : > { %4628 = vst [vmem:[#allocation21_spill] sm:$0xff] %v3081_v51  ;;  %v863_v8 = vmax.f32 %v3081_v51, %v3083_v52 }
 0x213   : > { %v3085_v53 = vpop.f32.mrf.mxu0  ;;  %v3087_v54 = vpop.f32.mrf.mxu1 }
 0x214   : > { %v866_v62 = vmax.f32 %v3085_v53, %v3087_v54 }
 0x216   : > { %2337 = vmatmul.msk.bf16.gmra.mxu0 %vm615_vm4, %v608_v31  ;;  %2353 = vmatmul.msk.bf16.gmra.mxu1 %vm615_vm4, %v608_v31 }
 0x21b   : > { %v3091_v55 = vpop.f32.mrf.mxu0  ;;  %v3093_v56 = vpop.f32.mrf.mxu1 }
 0x21c   : > { %4629 = vst [vmem:[#allocation22_spill] sm:$0xff] %v3091_v55  ;;  %v869_v3 = vmax.f32 %v3091_v55, %v3093_v56 }
 0x223   : > { %v3095_v57 = vpop.f32.mrf.mxu0  ;;  %v3097_v58 = vpop.f32.mrf.mxu1 }
 0x224   : > { %v872_v59 = vmax.f32 %v3095_v57, %v3097_v58 }
 0x226   : > { %873 = vmax.xlane.f32.xlu1 %v872_v59  ;;  %2338 = vmatmul.msk.bf16.gmra.mxu0 %vm615_vm4, %v610_v33 }
 0x227   : > { %2354 = vmatmul.msk.bf16.gmra.mxu1 %vm615_vm4, %v610_v33 }
 0x22b   : > { %v3103_v60 = vpop.f32.mrf.mxu0  ;;  %v3105_v61 = vpop.f32.mrf.mxu1 }
 0x22c   : > { %4630 = vst [vmem:[#allocation23_spill] sm:$0xff] %v3105_v61  ;;  %v875_v63 = vmax.f32 %v3103_v60, %v3105_v61 }
 0x22e   : > { %867 = vmax.xlane.f32.xlu1 %v866_v62  ;;  %876 = vmax.xlane.f32.xlu0 %v875_v63 }
 0x233   : > { %v3111_v0 = vpop.f32.mrf.mxu0  ;;  %v3113_v1 = vpop.f32.mrf.mxu1 }
 0x234   : > { %v878_v4 = vmax.f32 %v3111_v0, %v3113_v1 }
 0x236   : > { %861 = vmax.xlane.f32.xlu1 %v860_v2  ;;  %870 = vmax.xlane.f32.xlu0 %v869_v3 }
 0x237   : > { %879 = vmax.xlane.f32.xlu2 %v878_v4  ;;  %2339 = vmatmul.msk.bf16.gmra.mxu0 %vm615_vm4, %v612_v35 }
 0x238   : > { %2355 = vmatmul.msk.bf16.gmra.mxu1 %vm615_vm4, %v612_v35 }
 0x23b   : > { %v3123_v5 = vpop.f32.mrf.mxu0  ;;  %v3125_v6 = vpop.f32.mrf.mxu1 }
 0x23c   : > { %v881_v28 = vmax.f32 %v3123_v5, %v3125_v6 }
 0x23e   : > { %855 = vmax.xlane.f32.xlu1 %v854_v7  ;;  %864 = vmax.xlane.f32.xlu0 %v863_v8 }
 0x243   : > { %v3131_v11 = vpop.f32.mrf.mxu0  ;;  %v3133_v12 = vpop.f32.mrf.mxu1 }
 0x244   : > { %4631 = vst [vmem:[#allocation24_spill] sm:$0xff] %v3133_v12  ;;  %v884_v30 = vmax.f32 %v3131_v11, %v3133_v12 }
 0x246   : > { %849 = vmax.xlane.f32.xlu1 %v848_v14  ;;  %858 = vmax.xlane.f32.xlu0 %v857_v15 }
 0x247   : > { %2340 = vmatmul.msk.bf16.gmra.mxu0 %vm615_vm4, %v614_v13 }
 0x248   : > { %2356 = vmatmul.msk.bf16.gmra.mxu1 %vm615_vm4, %v614_v13 }
 0x24b   : > { %v3141_v16 = vpop.f32.mrf.mxu0  ;;  %v3143_v17 = vpop.f32.mrf.mxu1 }
 0x24c   : > { %4632 = vst [vmem:[#allocation25_spill] sm:$0xff] %v3143_v17  ;;  %v887_v20 = vmax.f32 %v3141_v16, %v3143_v17 }
 0x24e   : > { %843 = vmax.xlane.f32.xlu1 %v842_v18  ;;  %852 = vmax.xlane.f32.xlu0 %v851_v19 }
 0x253   : > { %v3151_v23 = vpop.f32.mrf.mxu0  ;;  %v3153_v24 = vpop.f32.mrf.mxu1 }
 0x254   : > { %4633 = vst [vmem:[#allocation26_spill] sm:$0xff] %v3151_v23  ;;  %v890_v29 = vmax.f32 %v3151_v23, %v3153_v24 }
 0x255   : > { %4634 = vst [vmem:[#allocation27_spill] sm:$0xff] %v3153_v24 }
 0x256   : > { %846 = vmax.xlane.f32.xlu0 %v845_v25  ;;  %888 = vmax.xlane.f32.xlu1 %v887_v20 }
 0x25b   : > { %v3157_v26 = vpop.f32.mrf.mxu0  ;;  %v3159_v27 = vpop.f32.mrf.mxu1 }
 0x25c   : > { %4635 = vst [vmem:[#allocation28_spill] sm:$0xff] %v3159_v27  ;;  %v893_v36 = vmax.f32 %v3157_v26, %v3159_v27 }
 0x25e   : > { %882 = vmax.xlane.f32.xlu0 %v881_v28  ;;  %891 = vmax.xlane.f32.xlu1 %v890_v29 }
 0x263   : > { %v3167_v31 = vpop.f32.mrf.mxu0  ;;  %v3169_v32 = vpop.f32.mrf.mxu1 }
 0x264   : > { %4636 = vst [vmem:[#allocation29_spill] sm:$0xff] %v3167_v31  ;;  %v896_v33 = vmax.f32 %v3167_v31, %v3169_v32 }
 0x265   : > { %4637 = vst [vmem:[#allocation30_spill] sm:$0xff] %v3169_v32 }
 0x266   : > { %885 = vmax.xlane.f32.xlu0 %v884_v30  ;;  %897 = vmax.xlane.f32.xlu1 %v896_v33 }
 0x26b   : > { %v3173_v34 = vpop.f32.mrf.mxu0  ;;  %v3175_v35 = vpop.f32.mrf.mxu1 }
 0x26c   : > { %4638 = vst [vmem:[#allocation31_spill] sm:$0xff] %v3173_v34  ;;  %v899_v63 = vmax.f32 %v3173_v34, %v3175_v35 }
 0x26d   : > { %4639 = vst [vmem:[#allocation32_spill] sm:$0xff] %v3175_v35 }
 0x26e   : > { %894 = vmax.xlane.f32.xlu0 %v893_v36 }
 0x273   : > { %v3179_v59 = vpop.f32.mrf.mxu0  ;;  %v3181_v62 = vpop.f32.mrf.mxu1 }
 0x274   : > { %4640 = vst [vmem:[#allocation33_spill] sm:$0xff] %v3179_v59  ;;  %v902_v2 = vmax.f32 %v3179_v59, %v3181_v62 }
 0x275   : > { %4641 = vst [vmem:[#allocation34_spill] sm:$0xff] %v3181_v62  ;;  %v1407_v62 = vmax.f32 %v3051_v39, %v3061_v43 }
 0x276   : > { %900 = vmax.xlane.f32.xlu0 %v899_v63  ;;  %903 = vmax.xlane.f32.xlu1 %v902_v2 }
 0x277   : > { %v1409_v32 = vmax.f32 %v1407_v62, %v3071_v47 }
 0x27b   : > { %v3187_v3 = vpop.f32.mrf.mxu0  ;;  %v3189_v4 = vpop.f32.mrf.mxu1 }
 0x27c   : > { %4642 = vst [vmem:[#allocation35_spill] sm:$0xff] %v3187_v3  ;;  %v905_v7 = vmax.f32 %v3187_v3, %v3189_v4 }
 0x27d   : > { %4643 = vst [vmem:[#allocation36_spill] sm:$0xff] %v3189_v4 }
 0x27e   : > { %906 = vmax.xlane.f32.xlu0 %v905_v7 }
 0x283   : > { %v3193_v8 = vpop.f32.mrf.mxu0  ;;  %v3195_v13 = vpop.f32.mrf.mxu1 }
 0x284   : > { %4644 = vst [vmem:[#allocation37_spill] sm:$0xff] %v3195_v13  ;;  %v908_v14 = vmax.f32 %v3193_v8, %v3195_v13 }
 0x286   : > { %909 = vmax.xlane.f32.xlu1 %v908_v14 }
 0x28b   : > { %v3199_v15 = vpop.f32.mrf.mxu0  ;;  %v3201_v18 = vpop.f32.mrf.mxu1 }
 0x28c   : > { %4645 = vst [vmem:[#allocation38_spill] sm:$0xff] %v3201_v18  ;;  %v911_v19 = vmax.f32 %v3199_v15, %v3201_v18 }
 0x28e   : > { %912 = vmax.xlane.f32.xlu0 %v911_v19 }
 0x293   : > { %v3205_v20 = vpop.f32.mrf.mxu0  ;;  %v3207_v25 = vpop.f32.mrf.mxu1 }
 0x294   : > { %4646 = vst [vmem:[#allocation39_spill] sm:$0xff] %v3207_v25  ;;  %v914_v28 = vmax.f32 %v3205_v20, %v3207_v25 }
 0x296   : > { %915 = vmax.xlane.f32.xlu1 %v914_v28 }
 0x299   : > { %v874_v29 = vpop.xlane.xlu1 %873 }
 0x29a   : > { %v958_v13 = vsub.f32 %v3095_v57, %v874_v29 }
 0x29b   : > { %v3211_v30 = vpop.f32.mrf.mxu0  ;;  %v3213_v33 = vpop.f32.mrf.mxu1 }
 0x29c   : > { %4647 = vst [vmem:[#allocation40_spill] sm:$0xff] %v3211_v30  ;;  %v917_v36 = vmax.f32 %v3211_v30, %v3213_v33 }
 0x29d   : > { %4648 = vst [vmem:[#allocation41_spill] sm:$0xff] %v3213_v33 }
 0x29e   : > { %918 = vmax.xlane.f32.xlu0 %v917_v36 }
 0x2a1   : > { %v868_v63 = vpop.xlane.xlu1 %867  ;;  %v877_v2 = vpop.xlane.xlu0 %876 }
 0x2a2   : > { %v954_v7 = vsub.f32 %v3085_v53, %v868_v63  ;;  %v955_v14 = vsub.f32 %v3087_v54, %v868_v63 }
 0x2a3   : > { %v3219_v19 = vpop.f32.mrf.mxu0 }
 0x2a4   : > { %v1034_v9 = vmul.f32 1.442695, %v954_v7  ;;  %v1036_v10 = vmul.f32 1.442695, %v955_v14  ;;  %v3221_v21 = vpop.f32.mrf.mxu1  ;;  %v959_v7 = vsub.f32 %v3097_v58, %v874_v29  ;;  %v1042_v14 = vmul.f32 1.442695, %v958_v13 }
 0x2a6   : > { %2444 = vpow2.f32 %v1034_v9  ;;  %v1044_v4 = vmul.f32 1.442695, %v959_v7  ;;  %v920_v7 = vmax.f32 %v3219_v19, %v3221_v21 }
 0x2a7   : > { %2446 = vpow2.f32 %v1036_v10 }
 0x2a9   : > { %v871_v28 = vpop.xlane.xlu0 %870 }
 0x2aa   : > { %v956_v22 = vsub.f32 %v3091_v55, %v871_v28  ;;  %v957_v25 = vsub.f32 %v3093_v56, %v871_v28  ;;  %v1406_v28 = vmax.f32 %v3045_v37, %v3055_v41 }
 0x2ab   : > { %v3225_v36 = vpop.f32.mrf.mxu0 }
 0x2ac   : > { %4649 = vst [vmem:[#allocation42_spill] sm:$0xff] %v3225_v36  ;;  %v3227_v33 = vpop.eup %2444  ;;  %v1038_v63 = vmul.f32 1.442695, %v956_v22  ;;  %v1040_v9 = vmul.f32 1.442695, %v957_v25  ;;  %v1408_v22 = vmax.f32 %v1406_v28, %v3065_v45  ;;  %v3241_v25 = vpop.f32.mrf.mxu1  ;;  %v961_v28 = vsub.f32 %v3105_v61, %v877_v2 }
 0x2ad   : > { %4650 = vst [vmem:[#allocation43_spill] sm:$0xff] %v3227_v33  ;;  %v3230_v18 = vpop.eup %2446 }
 0x2ae   : > { %4651 = vst [vmem:[#allocation44_spill] sm:$0xff] %v3230_v18  ;;  %v1154_v10 = vadd.f32 %v3230_v18, %v3227_v33  ;;  %2448 = vpow2.f32 %v1038_v63  ;;  %v1410_v13 = vmax.f32 %v1408_v22, %v3075_v49  ;;  %v1411_v63 = vmax.f32 %v1409_v32, %v3081_v51 }
 0x2af   : > { %2450 = vpow2.f32 %v1040_v9  ;;  %4652 = vst [vmem:[#allocation45_spill] sm:$0xff] %v3241_v25  ;;  %v960_v18 = vsub.f32 %v3103_v60, %v877_v2 }
 0x2b0   : > { %1155 = vadd.xlane.f32.xlu1 %v1154_v10  ;;  %2452 = vpow2.f32 %v1042_v14  ;;  %v1412_v62 = vmax.f32 %v1410_v13, %v3085_v53  ;;  %v1413_v14 = vmax.f32 %v1411_v63, %v3091_v55  ;;  %v1048_v55 = vmul.f32 1.442695, %v961_v28 }
 0x2b1   : > { %2454 = vpow2.f32 %v1044_v4  ;;  %v1046_v51 = vmul.f32 1.442695, %v960_v18  ;;  %v923_v28 = vmax.f32 %v3225_v36, %v3241_v25 }
 0x2b2   : > { %v1414_v32 = vmax.f32 %v1412_v62, %v3095_v57  ;;  %v1415_v4 = vmax.f32 %v1413_v14, %v3103_v60 }
 0x2b3   : > { %2456 = vpow2.f32 %v1046_v51  ;;  %v1444_v51 = vmax.f32 %v3053_v40, %v3063_v44 }
 0x2b4   : > { %v3243_v29 = vpop.f32.mrf.mxu0  ;;  %v3247_v10 = vpop.eup %2448  ;;  %v1416_v13 = vmax.f32 %v1414_v32, %v3111_v0  ;;  %v1417_v63 = vmax.f32 %v1415_v4, %v3123_v5  ;;  %2458 = vpow2.f32 %v1048_v55  ;;  %v1443_v55 = vmax.f32 %v3047_v38, %v3057_v42 }
 0x2b5   : > { %4653 = vst [vmem:[#allocation46_spill] sm:$0xff] %v3247_v10  ;;  %v3252_v9 = vpop.eup %2450  ;;  %v3271_v62 = vpop.f32.mrf.mxu1 }
 0x2b6   : > { %4654 = vst [vmem:[#allocation47_spill] sm:$0xff] %v3252_v9  ;;  %v1157_v22 = vadd.f32 %v3252_v9, %v3247_v10  ;;  %v3261_v33 = vpop.eup %2452  ;;  %v1418_v9 = vmax.f32 %v1416_v13, %v3131_v11 }
 0x2b7   : > { %4655 = vst [vmem:[#allocation48_spill] sm:$0xff] %v3261_v33  ;;  %v3263_v49 = vpop.eup %2454 }
 0x2b8   : > { %921 = vmax.xlane.f32.xlu1 %v920_v7  ;;  %1158 = vadd.xlane.f32.xlu0 %v1157_v22  ;;  %4656 = vst [vmem:[#allocation49_spill] sm:$0xff] %v3263_v49  ;;  %v1419_v7 = vmax.f32 %v1417_v63, %v3141_v16  ;;  %v1160_v18 = vadd.f32 %v3263_v49, %v3261_v33 }
 0x2b9   : > { %4657 = vst [vmem:[#allocation50_spill] sm:$0xff] %v3271_v62  ;;  %v1420_v14 = vmax.f32 %v1418_v9, %v3151_v23  ;;  %v3285_v9 = vpop.eup %2456  ;;  %v1445_v49 = vmax.f32 %v1443_v55, %v3067_v46 }
 0x2ba   : > { %v1421_v22 = vmax.f32 %v1419_v7, %v3157_v26  ;;  %4658 = vst [vmem:[#allocation51_spill] sm:$0xff] %v3285_v9 }
 0x2bb   : > { %v1422_v32 = vmax.f32 %v1420_v14, %v3167_v31  ;;  %v1446_v14 = vmax.f32 %v1444_v51, %v3073_v48  ;;  %v1447_v51 = vmax.f32 %v1445_v49, %v3077_v50 }
 0x2bc   : > { %v3267_v2 = vpop.f32.mrf.mxu0  ;;  %v1423_v4 = vmax.f32 %v1421_v22, %v3173_v34 }
 0x2bd   : > { %v1424_v13 = vmax.f32 %v1422_v32, %v3179_v59  ;;  %v880_v32 = vpop.xlane.xlu2 %879  ;;  %v1448_v33 = vmax.f32 %v1446_v14, %v3083_v52  ;;  %v3302_v59 = vpop.xlane.xlu0 %864 }
 0x2be   : > { %v1425_v63 = vmax.f32 %v1423_v4, %v3187_v3  ;;  %v926_v4 = vmax.f32 %v3243_v29, %v3271_v62  ;;  %4660 = vst [vmem:[#allocation53_spill] sm:$0xff] %v3302_v59  ;;  %v3305_v48 = vpop.f32.mrf.mxu1  ;;  %v962_v14 = vsub.f32 %v3111_v0, %v880_v32  ;;  %v963_v59 = vsub.f32 %v3113_v1, %v880_v32 }
 0x2bf   : > { %v1426_v22 = vmax.f32 %v1424_v13, %v3193_v8  ;;  %4661 = vst [vmem:[#allocation54_spill] sm:$0xff] %v3305_v48 }
 0x2c0   : > { %1161 = vadd.xlane.f32.xlu1 %v1160_v18  ;;  %924 = vmax.xlane.f32.xlu0 %v923_v28  ;;  %v3291_v18 = vpop.eup %2458  ;;  %v1427_v28 = vmax.f32 %v1425_v63, %v3199_v15  ;;  %v1450_v63 = vmax.f32 %v1448_v33, %v3093_v56 }
 0x2c1   : > { %4659 = vst [vmem:[#allocation52_spill] sm:$0xff] %v3291_v18  ;;  %v1428_v10 = vmax.f32 %v1426_v22, %v3205_v20  ;;  %v1163_v13 = vadd.f32 %v3291_v18, %v3285_v9  ;;  %v1050_v9 = vmul.f32 1.442695, %v962_v14 }
 0x2c2   : > { %v1429_v3 = vmax.f32 %v1427_v28, %v3211_v30  ;;  %v1449_v28 = vmax.f32 %v1447_v51, %v3087_v54  ;;  %v1452_v49 = vmax.f32 %v1450_v63, %v3105_v61 }
 0x2c3   : > { %v1430_v55 = vmax.f32 %v1428_v10, %v3219_v19  ;;  %2460 = vpow2.f32 %v1050_v9 }
 0x2c4   : > { %v3289_v7 = vpop.f32.mrf.mxu0  ;;  %v1431_v22 = vmax.f32 %v1429_v3, %v3225_v36  ;;  %v1454_v10 = vmax.f32 %v1452_v49, %v3125_v6  ;;  %v1052_v36 = vmul.f32 1.442695, %v963_v59  ;;  %v4664_v49 = vld [vmem:[#allocation30_spill] sm:$0xff] }
 0x2c5   : > { %v1432_v30 = vmax.f32 %v1430_v55, %v3243_v29 }
 0x2c6   : > { %v1433_v18 = vmax.f32 %v1431_v22, %v3267_v2  ;;  %2462 = vpow2.f32 %v1052_v36  ;;  %v3330_v14 = vpop.f32.mrf.mxu1 }
 0x2c7   : > { %v1434_v3 = vmax.f32 %v1432_v30, %v3289_v7  ;;  %4663 = vst [vmem:[#allocation56_spill] sm:$0xff] %v3330_v14 }
 0x2c8   : > { %927 = vmax.xlane.f32.xlu1 %v926_v4  ;;  %1164 = vadd.xlane.f32.xlu0 %v1163_v13  ;;  %v1451_v4 = vmax.f32 %v1449_v28, %v3097_v58  ;;  %v1456_v13 = vmax.f32 %v1454_v10, %v3143_v17  ;;  %v3328_v28 = vpop.xlane.xlu0 %858  ;;  %v4665_v10 = vld [vmem:[#allocation36_spill] sm:$0xff] }
 0x2c9   : > { %4662 = vst [vmem:[#allocation55_spill] sm:$0xff] %v3328_v28 }
 0x2ca   : > { %v1453_v32 = vmax.f32 %v1451_v4, %v3113_v1  ;;  %v1458_v22 = vmax.f32 %v1456_v13, %v3159_v27  ;;  %v4667_v13 = vld [vmem:[#allocation34_spill] sm:$0xff] }
 0x2cb   : > { %v4668_v27 = vld [vmem:[#allocation38_spill] sm:$0xff] }
 0x2cc   : > { %v3319_v33 = vpop.f32.mrf.mxu0  ;;  %v1455_v55 = vmax.f32 %v1453_v32, %v3133_v12  ;;  %v1460_v59 = vmax.f32 %v1458_v22, %v3175_v35  ;;  %v3336_v32 = vpop.eup %2460  ;;  %v4671_v22 = vld [vmem:[#allocation41_spill] sm:$0xff] }
 0x2cd   : > { %v1435_v51 = vmax.f32 %v1433_v18, %v3319_v33  ;;  %4666 = vst [vmem:[#allocation30_spill] sm:$0xff] %v3336_v32  ;;  %v3340_v36 = vpop.eup %2462  ;;  %v3342_v12 = vpop.xlane.xlu1 %861 }
 0x2ce   : > { %v1457_v30 = vmax.f32 %v1455_v55, %v3153_v24  ;;  %4669 = vst [vmem:[#allocation38_spill] sm:$0xff] %v3340_v36  ;;  %v4670_v55 = vld [vmem:[#allocation37_spill] sm:$0xff] }
 0x2cf   : > { %v1436_v63 = vmax.f32 %v1434_v3, %v1435_v51  ;;  %v1462_v3 = vmax.f32 %v1460_v59, %v4665_v10 }
 0x2d0   : > { %v1459_v4 = vmax.f32 %v1457_v30, %v4664_v49  ;;  %v4672_v30 = vld [vmem:[#allocation39_spill] sm:$0xff]  ;;  %v853_v10 = vpop.xlane.xlu0 %852 }
 0x2d1   : > { %v1437_v61 = vrot.slane %v1436_v63, 4  ;;  %v1464_v28 = vmax.f32 %v1462_v3, %v4668_v27 }
 0x2d2   : > { %v1461_v9 = vmax.f32 %v1459_v4, %v4667_v13  ;;  %v1166_v4 = vadd.f32 %v3340_v36, %v3336_v32  ;;  %v3350_v13 = vpop.f32.mrf.mxu1 }
 0x2d3   : > { %v1438_v18 = vmax.f32 %v1436_v63, %v1437_v61  ;;  %v1466_v61 = vmax.f32 %v1464_v28, %v4671_v22  ;;  %4673 = vst [vmem:[#allocation37_spill] sm:$0xff] %v3350_v13  ;;  %v944_v28 = vsub.f32 %v3061_v43, %v853_v10 }
 0x2d4   : > { %v1463_v24 = vmax.f32 %v1461_v9, %v4670_v55  ;;  %1167 = vadd.xlane.f32.xlu1 %v1166_v4 }
 0x2d5   : > { %v1439_v51 = vrot.slane %v1438_v18, 2  ;;  %v1468_v59 = vmax.f32 %v1466_v61, %v3241_v25  ;;  %v945_v61 = vsub.f32 %v3063_v44, %v853_v10 }
 0x2d6   : > { %v1465_v35 = vmax.f32 %v1463_v24, %v4672_v30 }
 0x2d7   : > { %v1440_v17 = vmax.f32 %v1438_v18, %v1439_v51  ;;  %v1470_v51 = vmax.f32 %v1468_v59, %v3305_v48 }
 0x2d8   : > { %v1467_v18 = vmax.f32 %v1465_v35, %v3221_v21  ;;  %v3365_v35 = vpop.xlane.xlu1 %855 }
 0x2d9   : > { %v1441_v63 = vrot.slane %v1440_v17, 1  ;;  %v1472_v24 = vmax.f32 %v1470_v51, %v3350_v13  ;;  %v1016_v51 = vmul.f32 1.442695, %v945_v61 }
 0x2da   : > { %v1469_v9 = vmax.f32 %v1467_v18, %v3271_v62 }
 0x2db   : > { %v3353_v3 = vmax.f32 %v1440_v17, %v1441_v63  ;;  %v1014_v63 = vmul.f32 1.442695, %v944_v28 }
 0x2dc   : > { %v1471_v25 = vmax.f32 %v1469_v9, %v3330_v14  ;;  %v929_v9 = vmax.f32 %v3267_v2, %v3305_v48 }
 0x2dd   : > { %v1480_v32 = vsub.f32 %v3045_v37, %v3353_v3  ;;  %v1482_v17 = vsub.f32 %v3051_v39, %v3353_v3  ;;  %v1484_v59 = vsub.f32 %v3055_v41, %v3353_v3  ;;  %v1486_v18 = vsub.f32 %v3061_v43, %v3353_v3  ;;  %v4674_v43 = vld [vmem:[#allocation20_spill] sm:$0xff] }
 0x2de   : > { %v1473_v4 = vmax.f32 %v1471_v25, %v1472_v24  ;;  %2464 = vpow2.f32 %v1014_v63  ;;  %v1488_v39 = vsub.f32 %v3065_v45, %v3353_v3  ;;  %930 = vmax.xlane.f32.xlu0 %v929_v9  ;;  %v1490_v25 = vsub.f32 %v3071_v47, %v3353_v3 }
 0x2df   : > { %v1544_v10 = vmul.f32 1.442695, %v1480_v32  ;;  %v1548_v36 = vmul.f32 1.442695, %v1482_v17  ;;  %v1552_v13 = vmul.f32 1.442695, %v1484_v59  ;;  %v1492_v32 = vsub.f32 %v4674_v43, %v3353_v3 }
 0x2e0   : > { %v1474_v28 = vrot.slane %v1473_v4, 4  ;;  %v1556_v24 = vmul.f32 1.442695, %v1486_v18  ;;  %v1560_v61 = vmul.f32 1.442695, %v1488_v39  ;;  %v3381_v41 = vpop.xlane.xlu1 %849  ;;  %v4677_v59 = vld [vmem:[#allocation21_spill] sm:$0xff]  ;;  %v1496_v18 = vsub.f32 %v3085_v53, %v3353_v3 }
 0x2e1   : > { %2466 = vpow2.f32 %v1544_v10  ;;  %4676 = vst [vmem:[#allocation39_spill] sm:$0xff] %v3381_v41  ;;  %v1494_v10 = vsub.f32 %v4677_v59, %v3353_v3  ;;  %v1564_v9 = vmul.f32 1.442695, %v1490_v25  ;;  %v1500_v53 = vsub.f32 %v3095_v57, %v3353_v3 }
 0x2e2   : > { %2468 = vpow2.f32 %v1548_v36  ;;  %v1475_v17 = vmax.f32 %v1473_v4, %v1474_v28 }
 0x2e3   : > { %2470 = vpow2.f32 %v1016_v51  ;;  %v1572_v41 = vmul.f32 1.442695, %v1494_v10  ;;  %v1502_v10 = vsub.f32 %v3103_v60, %v3353_v3 }
 0x2e4   : > { %2472 = vpow2.f32 %v1552_v13  ;;  %v3379_v63 = vpop.eup %2464  ;;  %v1568_v13 = vmul.f32 1.442695, %v1492_v32  ;;  %v1476_v51 = vrot.slane %v1475_v17, 2  ;;  %v1576_v32 = vmul.f32 1.442695, %v1496_v18 }
 0x2e5   : > { %4675 = vst [vmem:[#allocation41_spill] sm:$0xff] %v3379_v63  ;;  %2474 = vpow2.f32 %v1556_v24  ;;  %v4682_v24 = vld [vmem:[#allocation22_spill] sm:$0xff]  ;;  %v950_v18 = vsub.f32 %v4674_v43, %v3342_v12  ;;  %v1508_v43 = vsub.f32 %v3131_v11, %v3353_v3 }
 0x2e6   : > { %2476 = vpow2.f32 %v1560_v61  ;;  %v1498_v25 = vsub.f32 %v4682_v24, %v3353_v3 }
 0x2e7   : > { %v3385_v48 = vpop.eup %2466  ;;  %2478 = vpow2.f32 %v1564_v9 }
 0x2e8   : > { %4678 = vst [vmem:[#allocation20_spill] sm:$0xff] %v3385_v48  ;;  %v3387_v36 = vpop.eup %2468  ;;  %2480 = vpow2.f32 %v1568_v13  ;;  %v1580_v9 = vmul.f32 1.442695, %v1498_v25  ;;  %v844_v57 = vpop.xlane.xlu1 %843 }
 0x2e9   : > { %4679 = vst [vmem:[#allocation21_spill] sm:$0xff] %v3387_v36  ;;  %v3391_v39 = vpop.eup %2470  ;;  %v1672_v4 = vadd.f32 %v3387_v36, %v3385_v48  ;;  %v1477_v36 = vmax.f32 %v1475_v17, %v1476_v51  ;;  %2482 = vpow2.f32 %v1572_v41  ;;  %v1584_v17 = vmul.f32 1.442695, %v1500_v53 }
 0x2ea   : > { %4680 = vst [vmem:[#allocation57_spill] sm:$0xff] %v3391_v39  ;;  %v3395_v28 = vpop.eup %2472  ;;  %v1139_v48 = vadd.f32 %v3391_v39, %v3379_v63  ;;  %2484 = vpow2.f32 %v1576_v32  ;;  %v1506_v41 = vsub.f32 %v3123_v5, %v3353_v3  ;;  %v938_v25 = vsub.f32 %v3045_v37, %v844_v57 }
 0x2eb   : > { %4681 = vst [vmem:[#allocation58_spill] sm:$0xff] %v3395_v28  ;;  %v1673_v47 = vadd.f32 %v3395_v28, %v1672_v4  ;;  %v3400_v62 = vpop.eup %2474  ;;  %v1478_v51 = vrot.slane %v1477_v36, 1  ;;  %2486 = vpow2.f32 %v1580_v9  ;;  %v1510_v37 = vsub.f32 %v3141_v16, %v3353_v3 }
 0x2ec   : > { %4683 = vst [vmem:[#allocation22_spill] sm:$0xff] %v3400_v62  ;;  %v3407_v14 = vpop.eup %2476  ;;  %1140 = vadd.xlane.f32.xlu2 %v1139_v48  ;;  %v1588_v48 = vmul.f32 1.442695, %v1502_v10  ;;  %2488 = vpow2.f32 %v1584_v17 }
 0x2ed   : > { %v1674_v61 = vadd.f32 %v3400_v62, %v1673_v47  ;;  %4684 = vst [vmem:[#allocation59_spill] sm:$0xff] %v3407_v14  ;;  %v3412_v24 = vpop.eup %2478  ;;  %v1504_v47 = vsub.f32 %v3111_v0, %v3353_v3  ;;  %v939_v62 = vsub.f32 %v3047_v38, %v844_v57  ;;  %v3433_v9 = vmax.f32 %v1477_v36, %v1478_v51 }
 0x2ee   : > { %4685 = vst [vmem:[#allocation60_spill] sm:$0xff] %v3412_v24  ;;  %v3419_v60 = vpop.eup %2480  ;;  %2490 = vpow2.f32 %v1588_v48  ;;  %v1514_v57 = vsub.f32 %v3157_v26, %v3353_v3  ;;  %v1600_v36 = vmul.f32 1.442695, %v1508_v43 }
 0x2ef   : > { %v1675_v4 = vadd.f32 %v3407_v14, %v1674_v61  ;;  %4686 = vst [vmem:[#allocation61_spill] sm:$0xff] %v3419_v60  ;;  %v3424_v61 = vpop.xlane.xlu0 %846  ;;  %v3427_v53 = vpop.eup %2482  ;;  %v1592_v32 = vmul.f32 1.442695, %v1504_v47  ;;  %v1512_v14 = vsub.f32 %v3151_v23, %v3353_v3 }
 0x2f0   : > { %4687 = vst [vmem:[#allocation62_spill] sm:$0xff] %v3424_v61  ;;  %v3435_v10 = vpop.eup %2484  ;;  %v3489_v39 = vpop.xlane.xlu1 %888 }
 0x2f1   : > { %v1676_v13 = vadd.f32 %v3412_v24, %v1675_v4  ;;  %4688 = vst [vmem:[#allocation63_spill] sm:$0xff] %v3427_v53  ;;  %v1026_v4 = vmul.f32 1.442695, %v950_v18  ;;  %v1002_v24 = vmul.f32 1.442695, %v938_v25  ;;  %v3442_v17 = vpop.eup %2486  ;;  %2492 = vpow2.f32 %v1592_v32 }
 0x2f2   : > { %4689 = vst [vmem:[#allocation64_spill] sm:$0xff] %v3435_v10  ;;  %v1004_v18 = vmul.f32 1.442695, %v939_v62  ;;  %v3449_v48 = vpop.eup %2488  ;;  %v1604_v25 = vmul.f32 1.442695, %v1510_v37  ;;  %v1518_v37 = vsub.f32 %v3173_v34, %v3353_v3 }
 0x2f3   : > { %v1677_v0 = vadd.f32 %v3419_v60, %v1676_v13  ;;  %v1596_v13 = vmul.f32 1.442695, %v1506_v41  ;;  %4690 = vst [vmem:[#allocation65_spill] sm:$0xff] %v3442_v17  ;;  %2494 = vpow2.f32 %v1026_v4  ;;  %v1481_v41 = vsub.f32 %v3047_v38, %v3433_v9 }
 0x2f4   : > { %4691 = vst [vmem:[#allocation66_spill] sm:$0xff] %v3449_v48  ;;  %v1608_v32 = vmul.f32 1.442695, %v1512_v14  ;;  %v3456_v62 = vpop.eup %2490  ;;  %v1612_v4 = vmul.f32 1.442695, %v1514_v57  ;;  %v1485_v38 = vsub.f32 %v3057_v42, %v3433_v9  ;;  %v1487_v14 = vsub.f32 %v3063_v44, %v3433_v9  ;;  %v4697_v44 = vld [vmem:[#allocation35_spill] sm:$0xff] }
 0x2f5   : > { %v1678_v28 = vadd.f32 %v3427_v53, %v1677_v0  ;;  %2496 = vpow2.f32 %v1596_v13  ;;  %v1516_v0 = vsub.f32 %v3167_v31, %v3353_v3  ;;  %4692 = vst [vmem:[#allocation67_spill] sm:$0xff] %v3456_v62  ;;  %v1532_v31 = vsub.f32 %v3219_v19, %v3353_v3 }
 0x2f6   : > { %2498 = vpow2.f32 %v1002_v24  ;;  %v1546_v24 = vmul.f32 1.442695, %v1481_v41  ;;  %v1489_v41 = vsub.f32 %v3067_v46, %v3433_v9  ;;  %v1499_v42 = vsub.f32 %v3093_v56, %v3433_v9 }
 0x2f7   : > { %v1679_v47 = vadd.f32 %v3435_v10, %v1678_v28  ;;  %v1483_v28 = vsub.f32 %v3053_v40, %v3433_v9  ;;  %2500 = vpow2.f32 %v1600_v36  ;;  %v3465_v53 = vpop.eup %2492  ;;  %v1616_v60 = vmul.f32 1.442695, %v1516_v0  ;;  %v4699_v0 = vld [vmem:[#allocation19_spill] sm:$0xff] }
 0x2f8   : > { %2502 = vpow2.f32 %v1004_v18  ;;  %4693 = vst [vmem:[#allocation68_spill] sm:$0xff] %v3465_v53  ;;  %v1501_v56 = vsub.f32 %v3097_v58, %v3433_v9  ;;  %v4714_v58 = vld [vmem:[#allocation23_spill] sm:$0xff] }
 0x2f9   : > { %v1680_v51 = vadd.f32 %v3442_v17, %v1679_v47  ;;  %v3463_v47 = vpop.xlane.xlu0 %882  ;;  %2504 = vpow2.f32 %v1604_v25  ;;  %v1550_v36 = vmul.f32 1.442695, %v1483_v28  ;;  %v3469_v57 = vpop.eup %2494  ;;  %v1554_v25 = vmul.f32 1.442695, %v1485_v38 }
 0x2fa   : > { %2506 = vpow2.f32 %v1608_v32  ;;  %v1522_v28 = vsub.f32 %v4697_v44, %v3353_v3  ;;  %v1524_v38 = vsub.f32 %v3193_v8, %v3353_v3 }
 0x2fb   : > { %v1681_v43 = vadd.f32 %v3449_v48, %v1680_v51  ;;  %v4694_v51 = vld [vmem:[#allocation33_spill] sm:$0xff]  ;;  %2508 = vpow2.f32 %v1612_v4  ;;  %v1558_v4 = vmul.f32 1.442695, %v1487_v14  ;;  %v1526_v14 = vsub.f32 %v3199_v15, %v3353_v3 }
 0x2fc   : > { %v1520_v18 = vsub.f32 %v4694_v51, %v3353_v3  ;;  %2510 = vpow2.f32 %v1546_v24  ;;  %v1493_v24 = vsub.f32 %v3077_v50, %v3433_v9  ;;  %v1628_v40 = vmul.f32 1.442695, %v1522_v28 }
 0x2fd   : > { %v1682_v13 = vadd.f32 %v3456_v62, %v1681_v43  ;;  %v3474_v43 = vpop.eup %2496  ;;  %v1620_v62 = vmul.f32 1.442695, %v1518_v37  ;;  %2512 = vpow2.f32 %v1550_v36  ;;  %v1636_v44 = vmul.f32 1.442695, %v1526_v14 }
 0x2fe   : > { %4695 = vst [vmem:[#allocation33_spill] sm:$0xff] %v3474_v43  ;;  %v3478_v10 = vpop.eup %2498  ;;  %2514 = vpow2.f32 %v1616_v60  ;;  %v1624_v63 = vmul.f32 1.442695, %v1520_v18  ;;  %v1495_v18 = vsub.f32 %v3083_v52, %v3433_v9 }
 0x2ff   : > { %v1683_v17 = vadd.f32 %v3465_v53, %v1682_v13  ;;  %4696 = vst [vmem:[#allocation69_spill] sm:$0xff] %v3478_v10  ;;  %v3483_v32 = vpop.eup %2500  ;;  %v1491_v13 = vsub.f32 %v4699_v0, %v3433_v9  ;;  %2516 = vpow2.f32 %v1554_v25 }
 0x300   : > { %4698 = vst [vmem:[#allocation70_spill] sm:$0xff] %v3483_v32  ;;  %v3487_v53 = vpop.eup %2502  ;;  %2518 = vpow2.f32 %v1620_v62  ;;  %v1632_v62 = vmul.f32 1.442695, %v1524_v38  ;;  %v1574_v0 = vmul.f32 1.442695, %v1495_v18 }
 0x301   : > { %v1684_v48 = vadd.f32 %v3474_v43, %v1683_v17  ;;  %4700 = vst [vmem:[#allocation71_spill] sm:$0xff] %v3487_v53  ;;  %v3494_v17 = vpop.eup %2504  ;;  %v1562_v43 = vmul.f32 1.442695, %v1489_v41  ;;  %2520 = vpow2.f32 %v1558_v4  ;;  %v1566_v25 = vmul.f32 1.442695, %v1491_v13 }
 0x302   : > { %4701 = vst [vmem:[#allocation72_spill] sm:$0xff] %v3494_v17  ;;  %v3498_v36 = vpop.eup %2506  ;;  %2522 = vpow2.f32 %v1624_v63  ;;  %v1497_v4 = vsub.f32 %v3087_v54, %v3433_v9  ;;  %v1570_v13 = vmul.f32 1.442695, %v1493_v24  ;;  %v1130_v24 = vadd.f32 %v3487_v53, %v3478_v10 }
 0x303   : > { %v1685_v37 = vadd.f32 %v3483_v32, %v1684_v48  ;;  %4702 = vst [vmem:[#allocation73_spill] sm:$0xff] %v3498_v36  ;;  %v3503_v60 = vpop.eup %2508  ;;  %v1528_v48 = vsub.f32 %v3205_v20, %v3353_v3  ;;  %v4705_v32 = vld [vmem:[#allocation40_spill] sm:$0xff]  ;;  %2524 = vpow2.f32 %v1562_v43 }
 0x304   : > { %4703 = vst [vmem:[#allocation74_spill] sm:$0xff] %v3503_v60  ;;  %v3509_v41 = vpop.eup %2510  ;;  %v1530_v23 = vsub.f32 %v4705_v32, %v3353_v3  ;;  %2526 = vpow2.f32 %v1628_v40  ;;  %v1578_v18 = vmul.f32 1.442695, %v1497_v4  ;;  %1131 = vadd.xlane.f32.xlu2 %v1130_v24  ;;  %v1582_v4 = vmul.f32 1.442695, %v1499_v42 }
 0x305   : > { %v1686_v61 = vadd.f32 %v3494_v17, %v1685_v37  ;;  %4704 = vst [vmem:[#allocation75_spill] sm:$0xff] %v3509_v41  ;;  %v3514_v37 = vpop.xlane.xlu0 %885  ;;  %v3516_v17 = vpop.eup %2512  ;;  %2528 = vpow2.f32 %v1566_v25  ;;  %v1586_v42 = vmul.f32 1.442695, %v1501_v56 }
 0x306   : > { %4706 = vst [vmem:[#allocation40_spill] sm:$0xff] %v3516_v17  ;;  %v3522_v34 = vpop.eup %2514  ;;  %2530 = vpow2.f32 %v1632_v62  ;;  %v1644_v62 = vmul.f32 1.442695, %v1530_v23  ;;  %v1648_v23 = vmul.f32 1.442695, %v1532_v31 }
 0x307   : > { %v1687_v28 = vadd.f32 %v3498_v36, %v1686_v61  ;;  %4707 = vst [vmem:[#allocation76_spill] sm:$0xff] %v3522_v34  ;;  %v1709_v61 = vadd.f32 %v3516_v17, %v3509_v41  ;;  %v3527_v38 = vpop.eup %2516  ;;  %v1640_v36 = vmul.f32 1.442695, %v1528_v48  ;;  %2532 = vpow2.f32 %v1570_v13  ;;  %v3547_v17 = vpop.xlane.xlu1 %891 }
 0x308   : > { %4708 = vst [vmem:[#allocation77_spill] sm:$0xff] %v3527_v38  ;;  %v3531_v54 = vpop.eup %2518  ;;  %2534 = vpow2.f32 %v1636_v44  ;;  %v1503_v13 = vsub.f32 %v4714_v58, %v3433_v9  ;;  %v1505_v58 = vsub.f32 %v3113_v1, %v3433_v9 }
 0x309   : > { %v1688_v63 = vadd.f32 %v3503_v60, %v1687_v28  ;;  %4709 = vst [vmem:[#allocation78_spill] sm:$0xff] %v3531_v54  ;;  %v1710_v40 = vadd.f32 %v3527_v38, %v1709_v61  ;;  %v3537_v14 = vpop.eup %2520  ;;  %v4711_v28 = vld [vmem:[#allocation42_spill] sm:$0xff]  ;;  %v1536_v38 = vsub.f32 %v3243_v29, %v3353_v3  ;;  %2536 = vpow2.f32 %v1574_v0 }
 0x30a   : > { %4710 = vst [vmem:[#allocation79_spill] sm:$0xff] %v3537_v14  ;;  %v1534_v48 = vsub.f32 %v4711_v28, %v3353_v3  ;;  %v3543_v25 = vpop.eup %2522  ;;  %2538 = vpow2.f32 %v1640_v36  ;;  %v1590_v1 = vmul.f32 1.442695, %v1503_v13 }
 0x30b   : > { %v1689_v43 = vadd.f32 %v3522_v34, %v1688_v63  ;;  %4712 = vst [vmem:[#allocation42_spill] sm:$0xff] %v3543_v25  ;;  %v1711_v61 = vadd.f32 %v3537_v14, %v1710_v40  ;;  %v3549_v41 = vpop.eup %2524  ;;  %v1538_v14 = vsub.f32 %v3267_v2, %v3353_v3  ;;  %2540 = vpow2.f32 %v1578_v18 }
 0x30c   : > { %4713 = vst [vmem:[#allocation80_spill] sm:$0xff] %v3549_v41  ;;  %v3555_v60 = vpop.eup %2526  ;;  %2542 = vpow2.f32 %v1644_v62  ;;  %v1652_v31 = vmul.f32 1.442695, %v1534_v48  ;;  %v1656_v56 = vmul.f32 1.442695, %v1536_v38 }
 0x30d   : > { %v1690_v63 = vadd.f32 %v3531_v54, %v1689_v43  ;;  %4715 = vst [vmem:[#allocation23_spill] sm:$0xff] %v3555_v60  ;;  %v1712_v43 = vadd.f32 %v3549_v41, %v1711_v61  ;;  %v3559_v40 = vpop.xlane.xlu0 %894  ;;  %v3561_v24 = vpop.eup %2528  ;;  %v1540_v41 = vsub.f32 %v3289_v7, %v3353_v3  ;;  %v1507_v54 = vsub.f32 %v3125_v6, %v3433_v9 }
 0x30e   : > { %4716 = vst [vmem:[#allocation81_spill] sm:$0xff] %v3561_v24  ;;  %v3567_v0 = vpop.eup %2530  ;;  %2544 = vpow2.f32 %v1582_v4  ;;  %v1660_v13 = vmul.f32 1.442695, %v1538_v14 }
 0x30f   : > { %v1691_v44 = vadd.f32 %v3543_v25, %v1690_v63  ;;  %4717 = vst [vmem:[#allocation82_spill] sm:$0xff] %v3567_v0  ;;  %v1713_v63 = vadd.f32 %v3561_v24, %v1712_v43  ;;  %v3571_v61 = vpop.eup %2532  ;;  %2546 = vpow2.f32 %v1648_v23  ;;  %v1542_v43 = vsub.f32 %v3319_v33, %v3353_v3  ;;  %v4721_v24 = vld [vmem:[#allocation24_spill] sm:$0xff] }
 0x310   : > { %4718 = vst [vmem:[#allocation83_spill] sm:$0xff] %v3571_v61  ;;  %v3577_v18 = vpop.eup %2534  ;;  %v1509_v34 = vsub.f32 %v4721_v24, %v3433_v9  ;;  %2548 = vpow2.f32 %v1586_v42  ;;  %v1598_v3 = vmul.f32 1.442695, %v1507_v54  ;;  %v4726_v42 = vld [vmem:[#allocation27_spill] sm:$0xff] }
 0x311   : > { %v1692_v36 = vadd.f32 %v3555_v60, %v1691_v44  ;;  %4719 = vst [vmem:[#allocation84_spill] sm:$0xff] %v3577_v18  ;;  %v1714_v62 = vadd.f32 %v3571_v61, %v1713_v63  ;;  %v3581_v44 = vpop.eup %2536  ;;  %v1594_v60 = vmul.f32 1.442695, %v1505_v58  ;;  %2550 = vpow2.f32 %v1652_v31  ;;  %v4724_v61 = vld [vmem:[#allocation25_spill] sm:$0xff] }
 0x312   : > { %4720 = vst [vmem:[#allocation85_spill] sm:$0xff] %v3581_v44  ;;  %v3587_v4 = vpop.eup %2538  ;;  %v1664_v63 = vmul.f32 1.442695, %v1540_v41  ;;  %v1511_v25 = vsub.f32 %v4724_v61, %v3433_v9  ;;  %2552 = vpow2.f32 %v1590_v1  ;;  %v1513_v14 = vsub.f32 %v4726_v42, %v3433_v9  ;;  %v4728_v1 = vld [vmem:[#allocation28_spill] sm:$0xff] }
 0x313   : > { %v1693_v48 = vadd.f32 %v3567_v0, %v1692_v36  ;;  %4722 = vst [vmem:[#allocation24_spill] sm:$0xff] %v3587_v4  ;;  %v1715_v23 = vadd.f32 %v3581_v44, %v1714_v62  ;;  %v3591_v36 = vpop.eup %2540  ;;  %2554 = vpow2.f32 %v1656_v56  ;;  %v1668_v44 = vmul.f32 1.442695, %v1542_v43 }
 0x314   : > { %4723 = vst [vmem:[#allocation86_spill] sm:$0xff] %v3591_v36  ;;  %v3595_v0 = vpop.eup %2542  ;;  %v1515_v54 = vsub.f32 %v4728_v1, %v3433_v9  ;;  %2556 = vpow2.f32 %v1594_v60  ;;  %v1517_v43 = vsub.f32 %v4664_v49, %v3433_v9  ;;  %v1606_v53 = vmul.f32 1.442695, %v1511_v25 }
 0x315   : > { %v1694_v38 = vadd.f32 %v3577_v18, %v1693_v48  ;;  %4725 = vst [vmem:[#allocation25_spill] sm:$0xff] %v3595_v0  ;;  %v1716_v31 = vadd.f32 %v3591_v36, %v1715_v23  ;;  %v3601_v48 = vpop.xlane.xlu1 %897  ;;  %v3603_v62 = vpop.xlane.xlu0 %900  ;;  %v1602_v18 = vmul.f32 1.442695, %v1509_v34  ;;  %2558 = vpow2.f32 %v1660_v13 }
 0x316   : > { %v3605_v41 = vpop.eup %2544  ;;  %v964_v23 = vsub.f32 %v3123_v5, %v3463_v47  ;;  %2560 = vpow2.f32 %v1598_v3  ;;  %v965_v34 = vsub.f32 %v3125_v6, %v3463_v47  ;;  %v4733_v5 = vld [vmem:[#allocation32_spill] sm:$0xff]  ;;  %v1614_v10 = vmul.f32 1.442695, %v1515_v54 }
 0x317   : > { %v1695_v58 = vadd.f32 %v3587_v4, %v1694_v38  ;;  %4727 = vst [vmem:[#allocation27_spill] sm:$0xff] %v3605_v41  ;;  %v3609_v56 = vpop.eup %2546  ;;  %v1717_v4 = vadd.f32 %v3605_v41, %v1716_v31  ;;  %2562 = vpow2.f32 %v1664_v63  ;;  %v966_v25 = vsub.f32 %v3131_v11, %v3514_v37 }
 0x318   : > { %4729 = vst [vmem:[#allocation28_spill] sm:$0xff] %v3609_v56  ;;  %v3615_v36 = vpop.eup %2548  ;;  %2564 = vpow2.f32 %v1602_v18  ;;  %v1054_v63 = vmul.f32 1.442695, %v964_v23  ;;  %v967_v18 = vsub.f32 %v4721_v24, %v3514_v37 }
 0x319   : > { %v1696_v38 = vadd.f32 %v3595_v0, %v1695_v58  ;;  %4730 = vst [vmem:[#allocation87_spill] sm:$0xff] %v3615_v36  ;;  %v3621_v60 = vpop.eup %2550  ;;  %v1610_v58 = vmul.f32 1.442695, %v1513_v14  ;;  %v1718_v31 = vadd.f32 %v3615_v36, %v1717_v4  ;;  %v1519_v0 = vsub.f32 %v4733_v5, %v3433_v9  ;;  %v4736_v4 = vld [vmem:[#allocation34_spill] sm:$0xff] }
 0x31a   : > { %4731 = vst [vmem:[#allocation88_spill] sm:$0xff] %v3621_v60  ;;  %v3625_v41 = vpop.eup %2552  ;;  %2566 = vpow2.f32 %v1668_v44  ;;  %v1056_v36 = vmul.f32 1.442695, %v965_v34  ;;  %v1618_v44 = vmul.f32 1.442695, %v1517_v43  ;;  %v972_v43 = vsub.f32 %v3157_v26, %v3559_v40 }
 0x31b   : > { %v1697_v13 = vadd.f32 %v3609_v56, %v1696_v38  ;;  %4732 = vst [vmem:[#allocation89_spill] sm:$0xff] %v3625_v41  ;;  %v3631_v3 = vpop.eup %2554  ;;  %v1719_v47 = vadd.f32 %v3625_v41, %v1718_v31  ;;  %v1521_v38 = vsub.f32 %v4736_v4, %v3433_v9  ;;  %2568 = vpow2.f32 %v1606_v53  ;;  %v4739_v41 = vld [vmem:[#allocation36_spill] sm:$0xff] }
 0x31c   : > { %4734 = vst [vmem:[#allocation32_spill] sm:$0xff] %v3631_v3  ;;  %v3635_v14 = vpop.eup %2556  ;;  %2570 = vpow2.f32 %v1610_v58  ;;  %v1622_v53 = vmul.f32 1.442695, %v1519_v0  ;;  %v1058_v34 = vmul.f32 1.442695, %v966_v25  ;;  %v973_v0 = vsub.f32 %v4728_v1, %v3559_v40 }
 0x31d   : > { %v1698_v6 = vadd.f32 %v3621_v60, %v1697_v13  ;;  %4735 = vst [vmem:[#allocation90_spill] sm:$0xff] %v3635_v14  ;;  %v3641_v54 = vpop.eup %2558  ;;  %v1720_v13 = vadd.f32 %v3635_v14, %v1719_v47  ;;  %v3645_v31 = vpop.xlane.xlu1 %903  ;;  %v1523_v60 = vsub.f32 %v4739_v41, %v3433_v9  ;;  %2572 = vpow2.f32 %v1614_v10 }
 0x31e   : > { %4737 = vst [vmem:[#allocation34_spill] sm:$0xff] %v3641_v54  ;;  %v3647_v23 = vpop.eup %2560  ;;  %2574 = vpow2.f32 %v1054_v63  ;;  %v3657_v58 = vpop.xlane.xlu0 %906  ;;  %v951_v47 = vsub.f32 %v3077_v50, %v3342_v12  ;;  %v1060_v10 = vmul.f32 1.442695, %v967_v18  ;;  %v1626_v63 = vmul.f32 1.442695, %v1521_v38 }
 0x31f   : > { %v1699_v11 = vadd.f32 %v3631_v3, %v1698_v6  ;;  %4738 = vst [vmem:[#allocation91_spill] sm:$0xff] %v3647_v23  ;;  %v3651_v56 = vpop.eup %2562  ;;  %v1721_v24 = vadd.f32 %v3647_v23, %v1720_v13  ;;  %2576 = vpow2.f32 %v1056_v36  ;;  %v4744_v23 = vld [vmem:[#allocation53_spill] sm:$0xff]  ;;  %v1525_v50 = vsub.f32 %v4670_v55, %v3433_v9 }
 0x320   : > { %4740 = vst [vmem:[#allocation36_spill] sm:$0xff] %v3651_v56  ;;  %v3659_v6 = vpop.eup %2564  ;;  %2578 = vpow2.f32 %v1618_v44  ;;  %v952_v14 = vsub.f32 %v4677_v59, %v4744_v23  ;;  %v1630_v12 = vmul.f32 1.442695, %v1523_v60  ;;  %v1070_v38 = vmul.f32 1.442695, %v972_v43 }
 0x321   : > { %v1700_v37 = vadd.f32 %v3641_v54, %v1699_v11  ;;  %4741 = vst [vmem:[#allocation92_spill] sm:$0xff] %v3659_v6  ;;  %v3665_v25 = vpop.eup %2566  ;;  %v1722_v26 = vadd.f32 %v3659_v6, %v1721_v24  ;;  %2580 = vpow2.f32 %v1622_v53  ;;  %v1527_v44 = vsub.f32 %v4668_v27, %v3433_v9 }
 0x322   : > { %4742 = vst [vmem:[#allocation93_spill] sm:$0xff] %v3665_v25  ;;  %v3669_v13 = vpop.eup %2568  ;;  %2582 = vpow2.f32 %v1058_v34  ;;  %v1072_v59 = vmul.f32 1.442695, %v973_v0  ;;  %v1028_v53 = vmul.f32 1.442695, %v951_v47  ;;  %v953_v60 = vsub.f32 %v3083_v52, %v4744_v23 }
 0x323   : > { %v1701_v11 = vadd.f32 %v3651_v56, %v1700_v37  ;;  %4743 = vst [vmem:[#allocation94_spill] sm:$0xff] %v3669_v13  ;;  %v3675_v36 = vpop.eup %2570  ;;  %v1723_v1 = vadd.f32 %v3669_v13, %v1722_v26  ;;  %2584 = vpow2.f32 %v1060_v10  ;;  %v946_v43 = vsub.f32 %v3065_v45, %v3365_v35  ;;  %v4755_v13 = vld [vmem:[#allocation50_spill] sm:$0xff] }
 0x324   : > { %4745 = vst [vmem:[#allocation53_spill] sm:$0xff] %v3675_v36  ;;  %v3681_v18 = vpop.eup %2572  ;;  %2586 = vpow2.f32 %v1626_v63  ;;  %v1529_v10 = vsub.f32 %v4672_v30, %v3433_v9  ;;  %v1634_v0 = vmul.f32 1.442695, %v1525_v50  ;;  %v1030_v47 = vmul.f32 1.442695, %v952_v14 }
 0x325   : > { %v3678_v40 = vadd.f32 %v3665_v25, %v1701_v11  ;;  %4747 = vst [vmem:[#allocation96_spill] sm:$0xff] %v3681_v18  ;;  %v3685_v37 = vpop.eup %2574  ;;  %v1724_v24 = vadd.f32 %v3675_v36, %v1723_v1  ;;  %v3690_v11 = vpop.xlane.xlu1 %909  ;;  %2588 = vpow2.f32 %v1630_v12  ;;  %v947_v45 = vsub.f32 %v3067_v46, %v3365_v35 }
 0x326   : > { %v3692_v34 = vpop.eup %2576  ;;  %2590 = vpow2.f32 %v1070_v38  ;;  %v3703_v63 = vpop.xlane.xlu0 %912  ;;  %v1531_v12 = vsub.f32 %v4671_v22, %v3433_v9  ;;  %v1638_v50 = vmul.f32 1.442695, %v1527_v44  ;;  %v1032_v14 = vmul.f32 1.442695, %v953_v60 }
 0x327   : > { %4746 = vst [vmem:[#allocation95_spill] sm:$0xff] %v3678_v40  ;;  %v3698_v26 = vpop.eup %2578  ;;  %v1725_v52 = vadd.f32 %v3681_v18, %v1724_v24  ;;  %v1169_v23 = vadd.f32 %v3692_v34, %v3685_v37  ;;  %2592 = vpow2.f32 %v1072_v59  ;;  %v1018_v18 = vmul.f32 1.442695, %v946_v43  ;;  %v4752_v43 = vld [vmem:[#allocation45_spill] sm:$0xff] }
 0x328   : > { %4748 = vst [vmem:[#allocation97_spill] sm:$0xff] %v3698_v26  ;;  %v3705_v1 = vpop.eup %2580  ;;  %2594 = vpow2.f32 %v1028_v53  ;;  %v1533_v36 = vsub.f32 %v3221_v21, %v3433_v9  ;;  %v1642_v46 = vmul.f32 1.442695, %v1529_v10  ;;  %v968_v44 = vsub.f32 %v3141_v16, %v3489_v39 }
 0x329   : > { %4749 = vst [vmem:[#allocation98_spill] sm:$0xff] %v3705_v1  ;;  %v3711_v40 = vpop.eup %2582  ;;  %v1726_v24 = vadd.f32 %v3698_v26, %v1725_v52  ;;  %1170 = vadd.xlane.f32.xlu0 %v1169_v23  ;;  %2596 = vpow2.f32 %v1634_v0  ;;  %v1020_v52 = vmul.f32 1.442695, %v947_v45  ;;  %v1535_v23 = vsub.f32 %v4752_v43, %v3433_v9 }
 0x32a   : > { %v3714_v38 = vpop.eup %2584  ;;  %2598 = vpow2.f32 %v1030_v47  ;;  %v1646_v0 = vmul.f32 1.442695, %v1531_v12  ;;  %v969_v47 = vsub.f32 %v4724_v61, %v3489_v39  ;;  %v1650_v12 = vmul.f32 1.442695, %v1533_v36 }
 0x32b   : > { %v3718_v35 = vpop.eup %2586  ;;  %v1727_v59 = vadd.f32 %v3705_v1, %v1726_v24  ;;  %v1172_v53 = vadd.f32 %v3714_v38, %v3711_v40  ;;  %2600 = vpow2.f32 %v1638_v50  ;;  %v4753_v24 = vld [vmem:[#allocation56_spill] sm:$0xff]  ;;  %v1537_v50 = vsub.f32 %v4755_v13, %v3433_v9 }
 0x32c   : > { %4750 = vst [vmem:[#allocation99_spill] sm:$0xff] %v3718_v35  ;;  %v3725_v60 = vpop.eup %2588  ;;  %2602 = vpow2.f32 %v1032_v14  ;;  %v932_v1 = vmax.f32 %v3289_v7, %v4753_v24  ;;  %v1062_v14 = vmul.f32 1.442695, %v968_v44  ;;  %v1654_v3 = vmul.f32 1.442695, %v1535_v23 }
 0x32d   : > { %4751 = vst [vmem:[#allocation100_spill] sm:$0xff] %v3725_v60  ;;  %v3729_v10 = vpop.eup %2590  ;;  %v1728_v16 = vadd.f32 %v3718_v35, %v1727_v59  ;;  %1173 = vadd.xlane.f32.xlu1 %v1172_v53  ;;  %v3736_v26 = vpop.xlane.xlu1 %915  ;;  %2604 = vpow2.f32 %v1642_v46  ;;  %v4757_v35 = vld [vmem:[#allocation54_spill] sm:$0xff]  ;;  %v1064_v36 = vmul.f32 1.442695, %v969_v47  ;;  %v1658_v56 = vmul.f32 1.442695, %v1537_v50 }
 0x32e   : > { %v3738_v45 = vpop.eup %2592  ;;  %2606 = vpow2.f32 %v1018_v18  ;;  %v3747_v59 = vpop.xlane.xlu0 %918  ;;  %v1539_v54 = vsub.f32 %v4757_v35, %v3433_v9  ;;  %v1541_v18 = vsub.f32 %v4753_v24, %v3433_v9  ;;  %v984_v47 = vsub.f32 %v3199_v15, %v3703_v63 }
 0x32f   : > { %4754 = vst [vmem:[#allocation45_spill] sm:$0xff] %v3738_v45  ;;  %v3742_v6 = vpop.eup %2594  ;;  %v1729_v39 = vadd.f32 %v3725_v60, %v1728_v16  ;;  %v1181_v61 = vadd.f32 %v3738_v45, %v3729_v10  ;;  %2608 = vpow2.f32 %v1646_v0  ;;  %v4759_v60 = vld [vmem:[#allocation37_spill] sm:$0xff] }
 0x330   : > { %v3749_v53 = vpop.eup %2596  ;;  %2610 = vpow2.f32 %v1020_v52  ;;  %v1543_v25 = vsub.f32 %v4759_v60, %v3433_v9  ;;  %v935_v23 = vmax.f32 %v3319_v33, %v4759_v60  ;;  %v985_v9 = vsub.f32 %v4668_v27, %v3703_v63 }
 0x331   : > { %4756 = vst [vmem:[#allocation56_spill] sm:$0xff] %v3749_v53  ;;  %v3753_v46 = vpop.eup %2598  ;;  %v1730_v44 = vadd.f32 %v3749_v53, %v1729_v39  ;;  %933 = vmax.xlane.f32.xlu0 %v932_v1  ;;  %1182 = vadd.xlane.f32.xlu2 %v1181_v61  ;;  %2612 = vpow2.f32 %v1650_v12  ;;  %v1662_v39 = vmul.f32 1.442695, %v1539_v54  ;;  %v1666_v50 = vmul.f32 1.442695, %v1541_v18 }
 0x332   : > { %v3758_v16 = vpop.eup %2600  ;;  %2614 = vpow2.f32 %v1062_v14  ;;  %v1670_v15 = vmul.f32 1.442695, %v1543_v25  ;;  %v982_v54 = vsub.f32 %v3193_v8, %v3690_v11  ;;  %v1094_v63 = vmul.f32 1.442695, %v984_v47 }
 0x333   : > { %4758 = vst [vmem:[#allocation50_spill] sm:$0xff] %v3758_v16  ;;  %v3762_v0 = vpop.eup %2602  ;;  %v1731_v52 = vadd.f32 %v3758_v16, %v1730_v44  ;;  %2616 = vpow2.f32 %v1654_v3  ;;  %v1096_v25 = vmul.f32 1.442695, %v985_v9  ;;  %v1148_v8 = vadd.f32 %v3742_v6, %v3469_v57 }
 0x334   : > { %v3769_v1 = vpop.eup %2604  ;;  %2618 = vpow2.f32 %v1064_v36  ;;  %v1151_v27 = vadd.f32 %v3762_v0, %v3753_v46  ;;  %v1090_v53 = vmul.f32 1.442695, %v982_v54 }
 0x335   : > { %4760 = vst [vmem:[#allocation54_spill] sm:$0xff] %v3769_v1  ;;  %v3773_v12 = vpop.eup %2606  ;;  %v1732_v14 = vadd.f32 %v3769_v1, %v1731_v52  ;;  %936 = vmax.xlane.f32.xlu1 %v935_v23  ;;  %v3776_v61 = vpop.xlane.xlu1 %1155  ;;  %2620 = vpow2.f32 %v1658_v56  ;;  %v983_v56 = vsub.f32 %v4670_v55, %v3690_v11  ;;  %v988_v55 = vsub.f32 %v4705_v32, %v3747_v59 }
 0x336   : > { %v3778_v44 = vpop.eup %2608  ;;  %v3787_v36 = vpop.xlane.xlu0 %1158  ;;  %2622 = vpow2.f32 %v1662_v39 }
 0x337   : > { %4761 = vst [vmem:[#allocation37_spill] sm:$0xff] %v3778_v44  ;;  %v3780_v16 = vpop.eup %2610  ;;  %v1733_v3 = vadd.f32 %v3778_v44, %v1732_v14  ;;  %2624 = vpow2.f32 %v1666_v50  ;;  %v1092_v9 = vmul.f32 1.442695, %v983_v56  ;;  %v989_v50 = vsub.f32 %v4671_v22, %v3747_v59 }
 0x338   : > { %4762 = vst [vmem:[#allocation101_spill] sm:$0xff] %v3780_v16  ;;  %v3789_v18 = vpop.eup %2612  ;;  %2626 = vpow2.f32 %v1670_v15  ;;  %v986_v56 = vsub.f32 %v3205_v20, %v3736_v26  ;;  %v987_v59 = vsub.f32 %v4672_v30, %v3736_v26 }
 0x339   : > { %4763 = vst [vmem:[#allocation102_spill] sm:$0xff] %v3789_v18  ;;  %v3793_v52 = vpop.eup %2614  ;;  %v1734_v23 = vadd.f32 %v3789_v18, %v1733_v3  ;;  %1152 = vadd.xlane.f32.xlu0 %v1151_v27  ;;  %2628 = vpow2.f32 %v1094_v63  ;;  %v4781_v18 = vld [vmem:[#allocation52_spill] sm:$0xff] }
 0x33a   : > { %v3796_v14 = vpop.eup %2616  ;;  %2630 = vpow2.f32 %v1096_v25  ;;  %v1102_v25 = vmul.f32 1.442695, %v988_v55  ;;  %v1098_v55 = vmul.f32 1.442695, %v986_v56 }
 0x33b   : > { %4764 = vst [vmem:[#allocation103_spill] sm:$0xff] %v3796_v14  ;;  %v3800_v47 = vpop.eup %2618  ;;  %v1735_v39 = vadd.f32 %v3796_v14, %v1734_v23  ;;  %2632 = vpow2.f32 %v1090_v53  ;;  %v1142_v53 = vadd.f32 %v3780_v16, %v3773_v12 }
 0x33c   : > { %v3805_v11 = vpop.eup %2620  ;;  %v1175_v54 = vadd.f32 %v3800_v47, %v3793_v52  ;;  %2634 = vpow2.f32 %v1092_v9 }
 0x33d   : > { %4765 = vst [vmem:[#allocation104_spill] sm:$0xff] %v3805_v11  ;;  %v1736_v15 = vadd.f32 %v3805_v11, %v1735_v39  ;;  %1149 = vadd.xlane.f32.xlu1 %v1148_v8  ;;  %v922_v3 = vpop.xlane.xlu1 %921  ;;  %v3810_v27 = vpop.eup %2622  ;;  %v1104_v8 = vmul.f32 1.442695, %v989_v50  ;;  %2636 = vpow2.f32 %v1102_v25 }
 0x33e   : > { %4766 = vst [vmem:[#allocation105_spill] sm:$0xff] %v3810_v27  ;;  %v3814_v63 = vpop.eup %2624  ;;  %v925_v23 = vpop.xlane.xlu0 %924 }
 0x33f   : > { %4767 = vst [vmem:[#allocation106_spill] sm:$0xff] %v3814_v63  ;;  %v1737_v32 = vadd.f32 %v3810_v27, %v1736_v15  ;;  %v3819_v22 = vpop.eup %2626  ;;  %v992_v9 = vsub.f32 %v4711_v28, %v925_v23  ;;  %v1100_v15 = vmul.f32 1.442695, %v987_v59  ;;  %2638 = vpow2.f32 %v1104_v8 }
 0x340   : > { %4768 = vst [vmem:[#allocation107_spill] sm:$0xff] %v3819_v22  ;;  %v3823_v39 = vpop.eup %2628  ;;  %v993_v30 = vsub.f32 %v4752_v43, %v925_v23  ;;  %2640 = vpow2.f32 %v1098_v55  ;;  %v991_v28 = vsub.f32 %v3221_v21, %v922_v3 }
 0x341   : > { %v1738_v44 = vadd.f32 %v3814_v63, %v1737_v32  ;;  %1176 = vadd.xlane.f32.xlu0 %v1175_v54  ;;  %v3826_v1 = vpop.eup %2630  ;;  %v1110_v56 = vmul.f32 1.442695, %v992_v9  ;;  %2642 = vpow2.f32 %v1100_v15 }
 0x342   : > { %v3835_v26 = vpop.eup %2632  ;;  %v1199_v50 = vadd.f32 %v3826_v1, %v3823_v39  ;;  %v1112_v25 = vmul.f32 1.442695, %v993_v30 }
 0x343   : > { %v3831_v20 = vadd.f32 %v3819_v22, %v1738_v44  ;;  %v3841_v32 = vpop.eup %2634  ;;  %v990_v44 = vsub.f32 %v3219_v19, %v922_v3  ;;  %2644 = vpow2.f32 %v1110_v56 }
 0x344   : > { %4770 = vst [vmem:[#allocation109_spill] sm:$0xff] %v3841_v32  ;;  %v3845_v43 = vpop.eup %2636  ;;  %v1196_v23 = vadd.f32 %v3841_v32, %v3835_v26  ;;  %2646 = vpow2.f32 %v1112_v25  ;;  %v4784_v32 = vld [vmem:[#allocation55_spill] sm:$0xff] }
 0x345   : > { %4769 = vst [vmem:[#allocation108_spill] sm:$0xff] %v3831_v20  ;;  %1143 = vadd.xlane.f32.xlu1 %v1142_v53  ;;  %v3839_v54 = vpop.xlane.xlu1 %1161  ;;  %v3849_v8 = vpop.eup %2638  ;;  %v1106_v53 = vmul.f32 1.442695, %v990_v44  ;;  %v1108_v20 = vmul.f32 1.442695, %v991_v28 }
 0x346   : > { %v1165_v59 = vpop.xlane.xlu0 %1164  ;;  %v3851_v55 = vpop.eup %2640  ;;  %v1205_v21 = vadd.f32 %v3849_v8, %v3845_v43 }
 0x347   : > { %v3855_v3 = vpop.eup %2642  ;;  %2648 = vpow2.f32 %v1106_v53 }
 0x348   : > { %2650 = vpow2.f32 %v1108_v20 }
 0x349   : > { %1200 = vadd.xlane.f32.xlu0 %v1199_v50  ;;  %v3859_v30 = vpop.eup %2644  ;;  %v1202_v50 = vadd.f32 %v3855_v3, %v3851_v55  ;;  %2652 = vrcp.f32 %v3776_v61 }
 0x34a   : > { %v3863_v56 = vpop.eup %2646  ;;  %2654 = vrcp.f32 %v3787_v36 }
 0x34b   : > { %v1211_v20 = vadd.f32 %v3863_v56, %v3859_v30 }
 0x34d   : > { %1197 = vadd.xlane.f32.xlu1 %v1196_v23  ;;  %v928_v19 = vpop.xlane.xlu1 %927 }
 0x34e   : > { %v994_v9 = vsub.f32 %v3243_v29, %v928_v19  ;;  %v995_v15 = vsub.f32 %v4755_v13, %v928_v19  ;;  %v3869_v13 = vpop.eup %2648 }
 0x34f   : > { %v3873_v19 = vpop.eup %2650 }
 0x350   : > { %v1114_v44 = vmul.f32 1.442695, %v994_v9  ;;  %v1116_v28 = vmul.f32 1.442695, %v995_v15  ;;  %v2653_v61 = vpop.eup %2652 }
 0x351   : > { %1206 = vadd.xlane.f32.xlu0 %v1205_v21  ;;  %v931_v25 = vpop.xlane.xlu0 %930 }
 0x352   : > { %v996_v23 = vsub.f32 %v3267_v2, %v931_v25  ;;  %v997_v29 = vsub.f32 %v4757_v35, %v931_v25  ;;  %2656 = vpow2.f32 %v1114_v44  ;;  %v1208_v2 = vadd.f32 %v3873_v19, %v3869_v13  ;;  %v2655_v35 = vpop.eup %2654  ;;  %v4771_v44 = vld [vmem:[#allocation43_spill] sm:$0xff] }
 0x353   : > { %2658 = vpow2.f32 %v1116_v28  ;;  %v3886_v25 = vmul.f32 %v2653_v61, %v4771_v44  ;;  %v4772_v28 = vld [vmem:[#allocation46_spill] sm:$0xff] }
 0x354   : > { %v1118_v53 = vmul.f32 1.442695, %v996_v23  ;;  %v1120_v21 = vmul.f32 1.442695, %v997_v29  ;;  %v3889_v23 = vmul.f32 %v2655_v35, %v4772_v28  ;;  %v4773_v29 = vld [vmem:[#allocation44_spill] sm:$0xff] }
 0x355   : > { %1203 = vadd.xlane.f32.xlu1 %v1202_v50  ;;  %v4777_v28 = vld [vmem:[#allocation48_spill] sm:$0xff] }
 0x356   : > { %2660 = vpow2.f32 %v1118_v53  ;;  %v3892_v53 = vmul.f32 %v2653_v61, %v4773_v29 }
 0x357   : > { %2662 = vpow2.f32 %v1120_v21 }
 0x358   : > { %v3877_v36 = vpop.eup %2656  ;;  %4774 = vst [vmem:[#allocation43_spill] sm:$0xff] %v3892_v53  ;;  %2664 = vrcp.f32 %v3839_v54 }
 0x359   : > { %1212 = vadd.xlane.f32.xlu0 %v1211_v20  ;;  %v3879_v9 = vpop.eup %2658  ;;  %v4775_v20 = vld [vmem:[#allocation47_spill] sm:$0xff]  ;;  %2666 = vrcp.f32 %v1165_v59  ;;  %v1168_v59 = vpop.xlane.xlu1 %1167 }
 0x35a   : > { %v3895_v21 = vmul.f32 %v2655_v35, %v4775_v20  ;;  %v1214_v44 = vadd.f32 %v3879_v9, %v3877_v36  ;;  %v4778_v20 = vld [vmem:[#allocation51_spill] sm:$0xff]  ;;  %2668 = vrcp.f32 %v1168_v59 }
 0x35c   : > { %v3881_v15 = vpop.eup %2660  ;;  %4776 = vst [vmem:[#allocation46_spill] sm:$0xff] %v3895_v21 }
 0x35d   : > { %1209 = vadd.xlane.f32.xlu1 %v1208_v2  ;;  %v3883_v50 = vpop.eup %2662  ;;  %v4779_v2 = vld [vmem:[#allocation49_spill] sm:$0xff] }
 0x35e   : > { %v1217_v14 = vadd.f32 %v3883_v50, %v3881_v15  ;;  %v2665_v61 = vpop.eup %2664 }
 0x35f   : > { %v2667_v35 = vpop.eup %2666  ;;  %v3907_v29 = vmul.f32 %v2665_v61, %v4777_v28  ;;  %v3913_v11 = vmul.f32 %v2665_v61, %v4779_v2  ;;  %v978_v2 = vsub.f32 %v4694_v51, %v3645_v31  ;;  %v4783_v61 = vld [vmem:[#allocation38_spill] sm:$0xff]  ;;  %v979_v51 = vsub.f32 %v4736_v4, %v3645_v31 }
 0x360   : > { %v3910_v27 = vmul.f32 %v2667_v35, %v4778_v20  ;;  %v3916_v22 = vmul.f32 %v2667_v35, %v4781_v18  ;;  %v3922_v63 = vpop.eup %2668 }
 0x361   : > { %1218 = vadd.xlane.f32.xlu0 %v1217_v14  ;;  %4780 = vst [vmem:[#allocation44_spill] sm:$0xff] %v3913_v11  ;;  %v3930_v35 = vmul.f32 %v3922_v63, %v4783_v61  ;;  %v1082_v53 = vmul.f32 1.442695, %v978_v2  ;;  %v4785_v11 = vld [vmem:[#allocation18_spill] sm:$0xff]  ;;  %v4786_v14 = vld [vmem:[#allocation19_spill] sm:$0xff] }
 0x362   : > { %4782 = vst [vmem:[#allocation47_spill] sm:$0xff] %v3916_v22 }
 0x365   : > { %1215 = vadd.xlane.f32.xlu1 %v1214_v44 }
 0x39c   : > { %v1171_v44 = vpop.xlane.xlu0 %1170 }
 0x39d   : > { %2670 = vrcp.f32 %v1171_v44 }
 0x3a0   : > { %v1174_v28 = vpop.xlane.xlu1 %1173 }
 0x3a3   : > { %v3924_v20 = vpop.eup %2670 }
 0x3a4   : > { %v934_v18 = vpop.xlane.xlu0 %933  ;;  %v3934_v54 = vmul.f32 %v3924_v20, %v3692_v34 }
 0x3a5   : > { %v998_v59 = vsub.f32 %v3289_v7, %v934_v18  ;;  %v999_v44 = vsub.f32 %v4753_v24, %v934_v18  ;;  %v948_v7 = vsub.f32 %v4785_v11, %v4784_v32 }
 0x3a7   : > { %v1122_v45 = vmul.f32 1.442695, %v998_v59  ;;  %v1124_v16 = vmul.f32 1.442695, %v999_v44  ;;  %v949_v59 = vsub.f32 %v4786_v14, %v4784_v32  ;;  %v1084_v44 = vmul.f32 1.442695, %v979_v51 }
 0x3a8   : > { %v937_v21 = vpop.xlane.xlu1 %936  ;;  %v1022_v4 = vmul.f32 1.442695, %v948_v7 }
 0x3a9   : > { %2672 = vpow2.f32 %v1122_v45  ;;  %v1000_v61 = vsub.f32 %v3319_v33, %v937_v21  ;;  %v1001_v34 = vsub.f32 %v4759_v60, %v937_v21  ;;  %v4787_v33 = vld [vmem:[#allocation39_spill] sm:$0xff]  ;;  %v4788_v45 = vld [vmem:[#allocation16_spill] sm:$0xff]  ;;  %v1024_v2 = vmul.f32 1.442695, %v949_v59 }
 0x3aa   : > { %2674 = vpow2.f32 %v1124_v16  ;;  %v942_v60 = vsub.f32 %v4788_v45, %v4787_v33  ;;  %v4789_v16 = vld [vmem:[#allocation17_spill] sm:$0xff] }
 0x3ab   : > { %v1126_v24 = vmul.f32 1.442695, %v1000_v61  ;;  %v1128_v18 = vmul.f32 1.442695, %v1001_v34  ;;  %2676 = vpow2.f32 %v1082_v53  ;;  %v943_v11 = vsub.f32 %v4789_v16, %v4787_v33  ;;  %v4790_v61 = vld [vmem:[#allocation35_spill] sm:$0xff] }
 0x3ac   : > { %v1153_v22 = vpop.xlane.xlu0 %1152  ;;  %v1010_v51 = vmul.f32 1.442695, %v942_v60  ;;  %v980_v34 = vsub.f32 %v4790_v61, %v3657_v58  ;;  %v977_v16 = vsub.f32 %v4733_v5, %v3603_v62 }
 0x3ad   : > { %2678 = vrcp.f32 %v1153_v22 }
 0x3ae   : > { %2680 = vpow2.f32 %v1126_v24  ;;  %v1012_v24 = vmul.f32 1.442695, %v943_v11  ;;  %v1086_v11 = vmul.f32 1.442695, %v980_v34  ;;  %v4793_v34 = vld [vmem:[#allocation29_spill] sm:$0xff] }
 0x3af   : > { %v3948_v31 = vpop.eup %2672  ;;  %2682 = vpow2.f32 %v1128_v18 }
 0x3b0   : > { %v3952_v21 = vpop.eup %2674  ;;  %2684 = vpow2.f32 %v1084_v44  ;;  %v1150_v32 = vpop.xlane.xlu1 %1149  ;;  %v981_v44 = vsub.f32 %v4739_v41, %v3657_v58 }
 0x3b1   : > { %v1220_v53 = vadd.f32 %v3952_v21, %v3948_v31  ;;  %2686 = vrcp.f32 %v1150_v32  ;;  %v3958_v22 = vpop.eup %2676 }
 0x3b2   : > { %2688 = vpow2.f32 %v1022_v4 }
 0x3b3   : > { %v3960_v14 = vpop.eup %2678  ;;  %2690 = vrcp.f32 %v1174_v28  ;;  %1221 = vadd.xlane.f32.xlu1 %v1220_v53  ;;  %v4792_v28 = vld [vmem:[#allocation31_spill] sm:$0xff]  ;;  %v1088_v53 = vmul.f32 1.442695, %v981_v44 }
 0x3b4   : > { %v3964_v7 = vpop.eup %2680  ;;  %2692 = vpow2.f32 %v1024_v2  ;;  %v1177_v18 = vpop.xlane.xlu0 %1176  ;;  %v976_v60 = vsub.f32 %v4792_v28, %v3603_v62  ;;  %v3988_v58 = vmul.f32 %v3960_v14, %v3762_v0  ;;  %v975_v62 = vsub.f32 %v4664_v49, %v3601_v48 }
 0x3b5   : > { %v3966_v59 = vpop.eup %2682  ;;  %2694 = vrcp.f32 %v1177_v18  ;;  %v1080_v18 = vmul.f32 1.442695, %v977_v16  ;;  %v971_v49 = vsub.f32 %v4726_v42, %v3547_v17 }
 0x3b6   : > { %v3970_v4 = vpop.eup %2684  ;;  %v1223_v33 = vadd.f32 %v3966_v59, %v3964_v7  ;;  %2696 = vpow2.f32 %v1010_v51 }
 0x3b7   : > { %4791 = vst [vmem:[#allocation48_spill] sm:$0xff] %v3970_v4  ;;  %v3974_v45 = vpop.eup %2686  ;;  %2698 = vpow2.f32 %v1012_v24  ;;  %v1190_v51 = vadd.f32 %v3970_v4, %v3958_v22  ;;  %v974_v24 = vsub.f32 %v4793_v34, %v3601_v48 }
 0x3b8   : > { %v3980_v2 = vpop.eup %2688  ;;  %1224 = vadd.xlane.f32.xlu0 %v1223_v33  ;;  %v3984_v41 = vmul.f32 %v3974_v45, %v3742_v6  ;;  %v1078_v6 = vmul.f32 1.442695, %v976_v60  ;;  %2700 = vpow2.f32 %v1086_v11 }
 0x3b9   : > { %v2691_v32 = vpop.eup %2690  ;;  %2702 = vpow2.f32 %v1088_v53  ;;  %v1074_v48 = vmul.f32 1.442695, %v974_v24  ;;  %v1068_v24 = vmul.f32 1.442695, %v971_v49 }
 0x3ba   : > { %v3992_v61 = vpop.eup %2692  ;;  %v3999_v0 = vmul.f32 %v2691_v32, %v3714_v38  ;;  %v1286_v33 = vmul.f32 %v2691_v32, %v3711_v40  ;;  %2704 = vpow2.f32 %v1078_v6  ;;  %v4795_v32 = vld [vmem:[#allocation30_spill] sm:$0xff] }
 0x3bb   : > { %v2695_v5 = vpop.eup %2694  ;;  %1191 = vadd.xlane.f32.xlu1 %v1190_v51  ;;  %v1145_v38 = vadd.f32 %v3992_v61, %v3980_v2  ;;  %2706 = vpow2.f32 %v1080_v18  ;;  %v1282_v53 = vmul.f32 %v3922_v63, %v4795_v32  ;;  %v4798_v63 = vld [vmem:[#allocation15_spill] sm:$0xff] }
 0x3bc   : > { %v4002_v44 = vmul.f32 %v2695_v5, %v3800_v47  ;;  %v1288_v28 = vmul.f32 %v2695_v5, %v3793_v52  ;;  %v4006_v4 = vpop.eup %2696  ;;  %v1284_v47 = vmul.f32 %v3924_v20, %v3685_v37  ;;  %v4794_v52 = vld [vmem:[#allocation26_spill] sm:$0xff]  ;;  %v1076_v37 = vmul.f32 1.442695, %v975_v62 }
 0x3bd   : > { %v4010_v60 = vpop.eup %2698  ;;  %v970_v11 = vsub.f32 %v4794_v52, %v3547_v17  ;;  %v4797_v17 = vld [vmem:[#allocation14_spill] sm:$0xff]  ;;  %2708 = vpow2.f32 %v1074_v48  ;;  %v1270_v48 = vmul.f32 %v3974_v45, %v3469_v57 }
 0x3be   : > { %v1336_v16 = vpack.c.bf16 %v1288_v28, %v1286_v33  ;;  %v1337_v40 = vpack.c.bf16 %v4002_v44, %v3999_v0  ;;  %v4024_v51 = vpop.eup %2700  ;;  %v1136_v20 = vadd.f32 %v4010_v60, %v4006_v4  ;;  %v1334_v5 = vpack.c.bf16 %v1284_v47, %v1282_v53  ;;  %v4796_v33 = vld [vmem:[#allocation62_spill] sm:$0xff] }
 0x3bf   : > { %v4028_v34 = vpop.eup %2702  ;;  %v1066_v6 = vmul.f32 1.442695, %v970_v11  ;;  %v940_v42 = vsub.f32 %v4797_v17, %v4796_v33  ;;  %v941_v28 = vsub.f32 %v4798_v63, %v4796_v33  ;;  %2710 = vpow2.f32 %v1076_v37 }
 0x3c0   : > { %1354 = vmatpush.bf16.msrb.mxu2 %v1336_v16  ;;  %1146 = vadd.xlane.f32.xlu0 %v1145_v38  ;;  %v4032_v18 = vpop.eup %2704  ;;  %v1193_v16 = vadd.f32 %v4028_v34, %v4024_v51  ;;  %v4799_v47 = vpack.c.bf16 %v3910_v27, %v3907_v29  ;;  %v4800_v53 = vpack.c.bf16 %v3889_v23, %v3886_v25  ;;  %v1144_v23 = vpop.xlane.xlu1 %1143 }
 0x3c1   : > { %v4036_v62 = vpop.eup %2706  ;;  %2712 = vpow2.f32 %v1066_v6  ;;  %v1006_v38 = vmul.f32 1.442695, %v940_v42  ;;  %v1008_v52 = vmul.f32 1.442695, %v941_v28  ;;  %v1272_v27 = vmul.f32 %v3960_v14, %v3753_v46  ;;  %v1201_v6 = vpop.xlane.xlu0 %1200 }
 0x3c2   : > { %2714 = vpow2.f32 %v1068_v24  ;;  %v1187_v11 = vadd.f32 %v4036_v62, %v4032_v18 }
 0x3c3   : > { %1137 = vadd.xlane.f32.xlu1 %v1136_v20  ;;  %v4045_v49 = vpop.eup %2708  ;;  %2716 = vpow2.f32 %v1006_v38  ;;  %v1328_v20 = vpack.c.bf16 %v1272_v27, %v1270_v48  ;;  %v1141_v48 = vpop.xlane.xlu2 %1140 }
 0x3c4   : > { %1355 = vmatpush.bf16.msrb.mxu2 %v1334_v5  ;;  %2718 = vpow2.f32 %v1008_v52 }
 0x3c5   : > { %v4049_v32 = vpop.eup %2710 }
 0x3c6   : > { %v1184_v57 = vadd.f32 %v4049_v32, %v4045_v49 }
 0x3c7   : > { %v4056_v29 = vpop.eup %2712 }
 0x3c8   : > { %1356 = vmatpush.bf16.msrb.mxu2 %v4799_v47  ;;  %1194 = vadd.xlane.f32.xlu0 %v1193_v16  ;;  %v4058_v37 = vpop.eup %2714  ;;  %v1198_v14 = vpop.xlane.xlu1 %1197 }
 0x3c9   : > { %v1178_v45 = vadd.f32 %v4058_v37, %v4056_v29  ;;  %v4064_v5 = vpop.eup %2716  ;;  %v1207_v17 = vpop.xlane.xlu0 %1206 }
 0x3ca   : > { %v4066_v25 = vpop.eup %2718 }
 0x3cb   : > { %1188 = vadd.xlane.f32.xlu1 %v1187_v11  ;;  %v1133_v46 = vadd.f32 %v4066_v25, %v4064_v5 }
 0x3cc   : > { %1357 = vmatpush.bf16.msrb.mxu2 %v4800_v53 }
 0x3d0   : > { %1358 = vmatpush.bf16.msrb.mxu2 %v1328_v20  ;;  %1185 = vadd.xlane.f32.xlu0 %v1184_v57  ;;  %v1204_v33 = vpop.xlane.xlu1 %1203 }
 0x3d1   : > { %v1213_v24 = vpop.xlane.xlu0 %1212 }
 0x3d3   : > { %1179 = vadd.xlane.f32.xlu1 %v1178_v45 }
 0x3d8   : > { %1134 = vadd.xlane.f32.xlu0 %v1133_v46  ;;  %v1210_v42 = vpop.xlane.xlu1 %1209 }
 0x3d9   : > { %v1219_v28 = vpop.xlane.xlu0 %1218 }
 0x3e0   : > { %v1216_v63 = vpop.xlane.xlu1 %1215 }
 0x426   : > { %v1222_v16 = vpop.xlane.xlu1 %1221 }
 0x427   : > { %2720 = vrcp.f32 %v1222_v16 }
 0x428   : > { %2722 = vrcp.f32 %v1219_v28 }
 0x42b   : > { %v1225_v38 = vpop.xlane.xlu0 %1224 }
 0x42c   : > { %2724 = vrcp.f32 %v1225_v38  ;;  %v1132_v38 = vpop.xlane.xlu2 %1131 }
 0x42d   : > { %2726 = vrcp.f32 %v1216_v63  ;;  %v4070_v52 = vpop.eup %2720 }
 0x42e   : > { %v1192_v47 = vpop.xlane.xlu1 %1191  ;;  %2728 = vrcp.f32 %v1213_v24  ;;  %v4072_v11 = vpop.eup %2722  ;;  %v1318_v20 = vmul.f32 %v4070_v52, %v3948_v31 }
 0x42f   : > { %2730 = vrcp.f32 %v1144_v23  ;;  %v1316_v24 = vmul.f32 %v4072_v11, %v3881_v15 }
 0x430   : > { %2732 = vrcp.f32 %v1210_v42 }
 0x431   : > { %2734 = vrcp.f32 %v1207_v17 }
 0x432   : > { %v4074_v53 = vpop.eup %2724 }
 0x433   : > { %v1147_v27 = vpop.xlane.xlu0 %1146  ;;  %v1320_v57 = vmul.f32 %v4074_v53, %v3964_v7  ;;  %v4080_v45 = vpop.eup %2726 }
 0x434   : > { %2736 = vrcp.f32 %v1147_v27  ;;  %v4084_v23 = vpop.eup %2728  ;;  %v1314_v31 = vmul.f32 %v4080_v45, %v3877_v36 }
 0x435   : > { %2738 = vrcp.f32 %v1141_v48  ;;  %v1352_v46 = vpack.c.bf16 %v1320_v57, %v1318_v20  ;;  %v4086_v17 = vpop.eup %2730  ;;  %v1312_v15 = vmul.f32 %v4084_v23, %v3859_v30 }
 0x436   : > { %2740 = vrcp.f32 %v1204_v33  ;;  %v1138_v42 = vpop.xlane.xlu1 %1137  ;;  %v4090_v7 = vpop.eup %2732  ;;  %v1350_v28 = vpack.c.bf16 %v1316_v24, %v1314_v31  ;;  %v1266_v36 = vmul.f32 %v4086_v17, %v3773_v12 }
 0x437   : > { %2742 = vrcp.f32 %v1138_v42  ;;  %1367 = vmatpush.bf16.msrb.mxu3 %v1352_v46  ;;  %v4092_v63 = vpop.eup %2734  ;;  %v1310_v27 = vmul.f32 %v4090_v7, %v3869_v13  ;;  %v4801_v42 = vld [vmem:[#allocation41_spill] sm:$0xff] }
 0x438   : > { %2744 = vrcp.f32 %v1201_v6  ;;  %v1308_v46 = vmul.f32 %v4092_v63, %v3845_v43 }
 0x439   : > { %2746 = vrcp.f32 %v1198_v14  ;;  %v1348_v57 = vpack.c.bf16 %v1312_v15, %v1310_v27 }
 0x43a   : > { %v4096_v16 = vpop.eup %2736 }
 0x43b   : > { %v4098_v33 = vpop.eup %2738  ;;  %v1195_v48 = vpop.xlane.xlu0 %1194  ;;  %1368 = vmatpush.bf16.msrb.mxu3 %v1350_v28  ;;  %v1268_v6 = vmul.f32 %v4096_v16, %v3980_v2 }
 0x43c   : > { %v4106_v20 = vpop.eup %2740  ;;  %2748 = vrcp.f32 %v1195_v48  ;;  %v1264_v31 = vmul.f32 %v4098_v33, %v4801_v42 }
 0x43d   : > { %v4108_v30 = vpop.eup %2742  ;;  %v1326_v14 = vpack.c.bf16 %v1268_v6, %v1266_v36  ;;  %2750 = vrcp.f32 %v1192_v47  ;;  %v1306_v13 = vmul.f32 %v4106_v20, %v3851_v55  ;;  %v1183_v36 = vpop.xlane.xlu2 %1182 }
 0x43e   : > { %v4112_v24 = vpop.eup %2744  ;;  %v1189_v12 = vpop.xlane.xlu1 %1188  ;;  %v1262_v2 = vmul.f32 %v4108_v30, %v4006_v4 }
 0x43f   : > { %1359 = vmatpush.bf16.msrb.mxu2 %v1326_v14  ;;  %1369 = vmatpush.bf16.msrb.mxu3 %v1348_v57  ;;  %v4120_v28 = vpop.eup %2746  ;;  %v1346_v15 = vpack.c.bf16 %v1308_v46, %v1306_v13  ;;  %v1304_v43 = vmul.f32 %v4112_v24, %v3823_v39  ;;  %2752 = vrcp.f32 %v1189_v12  ;;  %v1305_v44 = vmul.f32 %v4112_v24, %v3826_v1 }
 0x440   : > { %v1324_v48 = vpack.c.bf16 %v1264_v31, %v1262_v2  ;;  %v1302_v55 = vmul.f32 %v4120_v28, %v3835_v26  ;;  %v1269_v24 = vmul.f32 %v4096_v16, %v3992_v61  ;;  %v4816_v61 = vld [vmem:[#allocation57_spill] sm:$0xff] }
 0x442   : > { %v4124_v47 = vpop.eup %2748  ;;  %v1344_v27 = vpack.c.bf16 %v1304_v43, %v1302_v55 }
 0x443   : > { %v1186_v4 = vpop.xlane.xlu0 %1185  ;;  %1370 = vmatpush.bf16.msrb.mxu3 %v1346_v15  ;;  %1360 = vmatpush.bf16.msrb.mxu2 %v1324_v48  ;;  %v2751_v6 = vpop.eup %2750  ;;  %v1300_v14 = vmul.f32 %v4124_v47, %v4024_v51  ;;  %v1321_v48 = vmul.f32 %v4074_v53, %v3966_v59 }
 0x444   : > { %2754 = vrcp.f32 %v1186_v4  ;;  %v1298_v39 = vmul.f32 %v2751_v6, %v3958_v22 }
 0x445   : > { %2756 = vrcp.f32 %v1183_v36  ;;  %v2753_v46 = vpop.eup %2752 }
 0x446   : > { %v1180_v57 = vpop.xlane.xlu1 %1179  ;;  %v1342_v12 = vpack.c.bf16 %v1300_v14, %v1298_v39  ;;  %v1296_v42 = vmul.f32 %v2753_v46, %v4032_v18  ;;  %v1317_v18 = vmul.f32 %v4072_v11, %v3883_v50  ;;  %v1311_v50 = vmul.f32 %v4090_v7, %v3873_v19  ;;  %v4804_v11 = vld [vmem:[#allocation12_spill] sm:$0xff] }
 0x447   : > { %2758 = vrcp.f32 %v1180_v57  ;;  %1371 = vmatpush.bf16.msrb.mxu3 %v1344_v27  ;;  %v4802_v27 = vld [vmem:[#allocation69_spill] sm:$0xff]  ;;  %v4807_v19 = vld [vmem:[#allocation44_spill] sm:$0xff]  ;;  %v4811_v57 = vld [vmem:[#allocation43_spill] sm:$0xff] }
 0x448   : > { %2760 = vrcp.f32 %v1132_v38  ;;  %v1319_v38 = vmul.f32 %v4070_v52, %v3952_v21  ;;  %v1313_v21 = vmul.f32 %v4084_v23, %v3863_v56  ;;  %v4803_v52 = vld [vmem:[#allocation13_spill] sm:$0xff]  ;;  %v4805_v56 = vpack.c.bf16 %v3934_v54, %v3930_v35  ;;  %v4810_v35 = vld [vmem:[#allocation46_spill] sm:$0xff] }
 0x449   : > { %v1301_v54 = vmul.f32 %v4124_v47, %v4028_v34  ;;  %v4812_v39 = vpack.c.bf16 %v4810_v35, %v4811_v57  ;;  %v1297_v47 = vmul.f32 %v2753_v46, %v4036_v62  ;;  %v4819_v62 = vld [vmem:[#allocation93_spill] sm:$0xff]  ;;  %v4845_v57 = vld [vmem:[#allocation58_spill] sm:$0xff] }
 0x44a   : > { %v2755_v2 = vpop.eup %2754  ;;  %v1353_v55 = vpack.c.bf16 %v1321_v48, %v1319_v38  ;;  %v4818_v48 = vld [vmem:[#allocation36_spill] sm:$0xff] }
 0x44b   : > { %v1135_v13 = vpop.xlane.xlu0 %1134  ;;  %1372 = vmatpush.bf16.msrb.mxu3 %v1342_v12  ;;  %v1294_v26 = vmul.f32 %v2755_v2, %v4045_v49  ;;  %v2757_v31 = vpop.eup %2756  ;;  %v1295_v12 = vmul.f32 %v2755_v2, %v4049_v32  ;;  %v1265_v32 = vmul.f32 %v4098_v33, %v4816_v61  ;;  %v1778_v46 = vpack.c.bf16 %v4819_v62, %v4818_v48  ;;  %v4823_v38 = vld [vmem:[#allocation32_spill] sm:$0xff]  ;;  %v4824_v33 = vld [vmem:[#allocation34_spill] sm:$0xff] }
 0x44c   : > { %2762 = vrcp.f32 %v1135_v13  ;;  %v1292_v22 = vmul.f32 %v2757_v31, %v3729_v10  ;;  %v4815_v13 = vld [vmem:[#allocation101_spill] sm:$0xff]  ;;  %v4855_v61 = vld [vmem:[#allocation104_spill] sm:$0xff]  ;;  %v4861_v62 = vld [vmem:[#allocation102_spill] sm:$0xff] }
 0x44d   : > { %v2759_v15 = vpop.eup %2758  ;;  %v1340_v51 = vpack.c.bf16 %v1296_v42, %v1294_v26  ;;  %v1267_v34 = vmul.f32 %v4086_v17, %v4815_v13  ;;  %v1341_v42 = vpack.c.bf16 %v1297_v47, %v1295_v12  ;;  %v4849_v12 = vld [vmem:[#allocation106_spill] sm:$0xff]  ;;  %v4852_v47 = vld [vmem:[#allocation21_spill] sm:$0xff] }
 0x44e   : > { %v1290_v43 = vmul.f32 %v2759_v15, %v4056_v29  ;;  %v2761_v36 = vpop.eup %2760  ;;  %v1315_v29 = vmul.f32 %v4080_v45, %v3879_v9  ;;  %v1309_v9 = vmul.f32 %v4092_v63, %v3849_v8  ;;  %v1307_v45 = vmul.f32 %v4106_v20, %v3855_v3  ;;  %v4809_v8 = vld [vmem:[#allocation109_spill] sm:$0xff]  ;;  %v4813_v3 = vld [vmem:[#allocation48_spill] sm:$0xff] }
 0x44f   : > { %1373 = vmatpush.bf16.msrb.mxu3 %v1340_v51  ;;  %v1258_v14 = vmul.f32 %v2761_v36, %v4802_v27  ;;  %v1303_v7 = vmul.f32 %v4120_v28, %v4809_v8  ;;  %v1299_v20 = vmul.f32 %v2751_v6, %v4813_v3  ;;  %v4814_v28 = vpack.c.bf16 %v3988_v58, %v3984_v41  ;;  %v4817_v41 = vld [vmem:[#allocation45_spill] sm:$0xff]  ;;  %v4842_v8 = vld [vmem:[#allocation60_spill] sm:$0xff] }
 0x450   : > { %v1338_v4 = vpack.c.bf16 %v1292_v22, %v1290_v43  ;;  %v1351_v53 = vpack.c.bf16 %v1317_v18, %v1315_v29  ;;  %v1347_v0 = vpack.c.bf16 %v1309_v9, %v1307_v45  ;;  %v1327_v26 = vpack.c.bf16 %v1269_v24, %v1267_v34  ;;  %v4820_v43 = vld [vmem:[#allocation71_spill] sm:$0xff]  ;;  %v4828_v18 = vld [vmem:[#allocation88_spill] sm:$0xff]  ;;  %v4837_v45 = vld [vmem:[#allocation61_spill] sm:$0xff] }
 0x451   : > { %v1345_v63 = vpack.c.bf16 %v1305_v44, %v1303_v7  ;;  %v1343_v1 = vpack.c.bf16 %v1301_v54, %v1299_v20  ;;  %v1263_v6 = vmul.f32 %v4108_v30, %v4010_v60  ;;  %v1291_v51 = vmul.f32 %v2759_v15, %v4058_v37  ;;  %v4821_v30 = vld [vmem:[#allocation70_spill] sm:$0xff]  ;;  %v4822_v15 = vld [vmem:[#allocation72_spill] sm:$0xff]  ;;  %v4847_v20 = vld [vmem:[#allocation73_spill] sm:$0xff] }
 0x452   : > { %v2763_v49 = vpop.eup %2762  ;;  %v1293_v58 = vmul.f32 %v2757_v31, %v4817_v41  ;;  %v1259_v60 = vmul.f32 %v2761_v36, %v4820_v43  ;;  %v1762_v22 = vpack.c.bf16 %v4822_v15, %v4821_v30  ;;  %v4826_v31 = vld [vmem:[#allocation33_spill] sm:$0xff]  ;;  %v4829_v36 = vld [vmem:[#allocation66_spill] sm:$0xff]  ;;  %v4831_v29 = vld [vmem:[#allocation24_spill] sm:$0xff] }
 0x453   : > { %1374 = vmatpush.bf16.msrb.mxu3 %v1338_v4  ;;  %v1260_v59 = vmul.f32 %v2763_v49, %v4064_v5  ;;  %v1349_v5 = vpack.c.bf16 %v1313_v21, %v1311_v50  ;;  %v1325_v16 = vpack.c.bf16 %v1265_v32, %v1263_v6  ;;  %v1261_v17 = vmul.f32 %v2763_v49, %v4066_v25  ;;  %v4825_v25 = vld [vmem:[#allocation68_spill] sm:$0xff]  ;;  %v4839_v44 = vld [vmem:[#allocation42_spill] sm:$0xff]  ;;  %v4856_v32 = vld [vmem:[#allocation105_spill] sm:$0xff] }
 0x454   : > { %v1339_v2 = vpack.c.bf16 %v1293_v58, %v1291_v51  ;;  %v1776_v4 = vpack.c.bf16 %v4824_v33, %v4823_v38  ;;  %v1760_v49 = vpack.c.bf16 %v4826_v31, %v4825_v25  ;;  %v4833_v21 = vld [vmem:[#allocation64_spill] sm:$0xff]  ;;  %v4844_v54 = vld [vmem:[#allocation78_spill] sm:$0xff]  ;;  %v1777_v41 = vpack.c.bf16 %v4856_v32, %v4855_v61  ;;  %v4857_v58 = vld [vmem:[#allocation11_spill] sm:$0xff] }
 0x455   : > { %v1322_v10 = vpack.c.bf16 %v1260_v59, %v1258_v14  ;;  %v1323_v37 = vpack.c.bf16 %v1261_v17, %v1259_v60  ;;  %v4830_v14 = vld [vmem:[#allocation67_spill] sm:$0xff]  ;;  %v4836_v9 = vld [vmem:[#allocation84_spill] sm:$0xff]  ;;  %v4854_v6 = vld [vmem:[#allocation94_spill] sm:$0xff] }
 0x456   : > { %1375 = vmatmul.bf16.vlgmr.msrb.gmra.mxu3 %v4803_v52  ;;  %v1758_v59 = vpack.c.bf16 %v4830_v14, %v4829_v36  ;;  %v4851_v34 = vld [vmem:[#allocation20_spill] sm:$0xff]  ;;  %v4860_v17 = vld [vmem:[#allocation91_spill] sm:$0xff]  ;;  %v4865_v15 = vld [vmem:[#allocation54_spill] sm:$0xff] }
 0x457   : > { %1393 = vmatpush.bf16.msra.mxu3 %v1353_v55  ;;  %1361 = vmatpush.bf16.msrb.mxu2 %v1322_v10  ;;  %v4827_v55 = vld [vmem:[#allocation28_spill] sm:$0xff]  ;;  %v4832_v10 = vld [vmem:[#allocation25_spill] sm:$0xff]  ;;  %v4863_v60 = vld [vmem:[#allocation87_spill] sm:$0xff] }
 0x458   : > { %v1774_v27 = vpack.c.bf16 %v4828_v18, %v4827_v55  ;;  %v4867_v33 = vld [vmem:[#allocation86_spill] sm:$0xff]  ;;  %v4869_v31 = vld [vmem:[#allocation56_spill] sm:$0xff]  ;;  %v4871_v18 = vld [vmem:[#allocation83_spill] sm:$0xff] }
 0x459   : > { %v4873_v14 = vld [vmem:[#allocation99_spill] sm:$0xff] }
 0x45a   : > { %1362 = vmatmul.bf16.vlgmr.msrb.gmra.mxu2 %v4804_v11 }
 0x45b   : > { %1380 = vmatpush.bf16.msra.mxu2 %v1337_v40  ;;  %1394 = vmatpush.bf16.msra.mxu3 %v1351_v53  ;;  %v4806_v40 = vld [vmem:[#allocation47_spill] sm:$0xff]  ;;  %v1772_v53 = vpack.c.bf16 %v4832_v10, %v4831_v29  ;;  %v4875_v10 = vld [vmem:[#allocation80_spill] sm:$0xff] }
 0x45c   : > { %v4808_v23 = vpack.c.bf16 %v4806_v40, %v4807_v19  ;;  %v4840_v40 = vld [vmem:[#allocation23_spill] sm:$0xff] }
 0x45d   : > { %v1768_v19 = vpack.c.bf16 %v4840_v40, %v4839_v44  ;;  %v4883_v40 = vld [vmem:[#allocation75_spill] sm:$0xff] }
 0x45f   : > { %1381 = vmatpush.bf16.msra.mxu2 %v4805_v56  ;;  %1395 = vmatpush.bf16.msra.mxu3 %v1349_v5  ;;  %v4835_v5 = vld [vmem:[#allocation82_spill] sm:$0xff] }
 0x460   : > { %v1770_v56 = vpack.c.bf16 %v4836_v9, %v4835_v5  ;;  %v4879_v9 = vld [vmem:[#allocation77_spill] sm:$0xff] }
 0x463   : > { %1382 = vmatpush.bf16.msra.mxu2 %v4808_v23  ;;  %1396 = vmatpush.bf16.msra.mxu3 %v1347_v0  ;;  %v4841_v23 = vld [vmem:[#allocation59_spill] sm:$0xff] }
 0x464   : > { %v1752_v7 = vpack.c.bf16 %v4842_v8, %v4841_v23 }
 0x467   : > { %1383 = vmatpush.bf16.msra.mxu2 %v4812_v39  ;;  %1397 = vmatpush.bf16.msra.mxu3 %v1345_v63  ;;  %v4843_v63 = vld [vmem:[#allocation76_spill] sm:$0xff]  ;;  %v4846_v39 = vld [vmem:[#allocation22_spill] sm:$0xff] }
 0x468   : > { %v1766_v35 = vpack.c.bf16 %v4844_v54, %v4843_v63  ;;  %v1750_v3 = vpack.c.bf16 %v4846_v39, %v4845_v57  ;;  %v4885_v39 = vld [vmem:[#allocation95_spill] sm:$0xff] }
 0x46b   : > { %1384 = vmatpush.bf16.msra.mxu2 %v4814_v28  ;;  %1398 = vmatpush.bf16.msra.mxu3 %v1343_v1  ;;  %v4848_v1 = vld [vmem:[#allocation74_spill] sm:$0xff]  ;;  %v4850_v28 = vld [vmem:[#allocation107_spill] sm:$0xff] }
 0x46c   : > { %v1764_v24 = vpack.c.bf16 %v4848_v1, %v4847_v20  ;;  %v1779_v13 = vpack.c.bf16 %v4850_v28, %v4849_v12 }
 0x46f   : > { %1385 = vmatpush.bf16.msra.mxu2 %v1327_v26  ;;  %1399 = vmatpush.bf16.msra.mxu3 %v1341_v42  ;;  %v1748_v26 = vpack.c.bf16 %v4852_v47, %v4851_v34  ;;  %v4853_v42 = vld [vmem:[#allocation92_spill] sm:$0xff] }
 0x470   : > { %v1763_v51 = vpack.c.bf16 %v4854_v6, %v4853_v42  ;;  %v4886_v6 = vld [vmem:[#allocation108_spill] sm:$0xff] }
 0x473   : > { %1386 = vmatpush.bf16.msra.mxu2 %v1325_v16  ;;  %1400 = vmatpush.bf16.msra.mxu3 %v1339_v2  ;;  %v4858_v16 = vld [vmem:[#allocation10_spill] sm:$0xff] }
 0x474   : > { %v4859_v2 = vld [vmem:[#allocation90_spill] sm:$0xff] }
 0x475   : > { %v1761_v48 = vpack.c.bf16 %v4860_v17, %v4859_v2  ;;  %v1851_v2 = vld [vmem:[%s4442_s7 + $0x8] sm:$0xff] }
 0x476   : > { %1401 = vmatmul.bf16.vlgmr.msra.gmra.mxu3 %v4803_v52  ;;  %v4834_v52 = vld [vmem:[#allocation65_spill] sm:$0xff] }
 0x477   : > { %1793 = vmatpush.bf16.msrb.mxu3 %v1778_v46  ;;  %1387 = vmatpush.bf16.msra.mxu2 %v1323_v37  ;;  %v1756_v50 = vpack.c.bf16 %v4834_v52, %v4833_v21  ;;  %v4862_v46 = vld [vmem:[#allocation103_spill] sm:$0xff]  ;;  %v4864_v37 = vld [vmem:[#allocation89_spill] sm:$0xff] }
 0x478   : > { %v1775_v43 = vpack.c.bf16 %v4862_v46, %v4861_v62  ;;  %v1759_v30 = vpack.c.bf16 %v4864_v37, %v4863_v60  ;;  %v4877_v52 = vld [vmem:[#allocation97_spill] sm:$0xff] }
 0x47a   : > { %1388 = vmatmul.bf16.vlgmr.msra.gmra.mxu2 %v4804_v11  ;;  %v4838_v11 = vld [vmem:[#allocation63_spill] sm:$0xff] }
 0x47b   : > { %1780 = vmatpush.bf16.msrb.mxu2 %v1762_v22  ;;  %1794 = vmatpush.bf16.msrb.mxu3 %v1776_v4  ;;  %v1754_v0 = vpack.c.bf16 %v4838_v11, %v4837_v45  ;;  %v4866_v22 = vld [vmem:[#allocation37_spill] sm:$0xff]  ;;  %v4868_v4 = vld [vmem:[#allocation27_spill] sm:$0xff] }
 0x47c   : > { %v1773_v38 = vpack.c.bf16 %v4866_v22, %v4865_v15  ;;  %v1757_v25 = vpack.c.bf16 %v4868_v4, %v4867_v33  ;;  %v4881_v11 = vld [vmem:[#allocation53_spill] sm:$0xff]  ;;  %v1853_v33 = vld [vmem:[%s4442_s7 + $0x18] sm:$0xff] }
 0x47f   : > { %1781 = vmatpush.bf16.msrb.mxu2 %v1760_v49  ;;  %1795 = vmatpush.bf16.msrb.mxu3 %v1774_v27  ;;  %v4870_v49 = vld [vmem:[#allocation50_spill] sm:$0xff]  ;;  %v4872_v27 = vld [vmem:[#allocation85_spill] sm:$0xff] }
 0x480   : > { %v1771_v55 = vpack.c.bf16 %v4870_v49, %v4869_v31  ;;  %v1755_v36 = vpack.c.bf16 %v4872_v27, %v4871_v18 }
 0x483   : > { %1782 = vmatpush.bf16.msrb.mxu2 %v1758_v59  ;;  %1796 = vmatpush.bf16.msrb.mxu3 %v1772_v53  ;;  %v4874_v59 = vld [vmem:[#allocation100_spill] sm:$0xff]  ;;  %v4876_v53 = vld [vmem:[#allocation81_spill] sm:$0xff] }
 0x484   : > { %v1769_v29 = vpack.c.bf16 %v4874_v59, %v4873_v14  ;;  %v1753_v21 = vpack.c.bf16 %v4876_v53, %v4875_v10  ;;  %v1854_v53 = vld [vmem:[%s4442_s7 + $0x20] sm:$0xff] }
 0x487   : > { %1783 = vmatpush.bf16.msrb.mxu2 %v1756_v50  ;;  %1797 = vmatpush.bf16.msrb.mxu3 %v1770_v56  ;;  %v4878_v50 = vld [vmem:[#allocation98_spill] sm:$0xff]  ;;  %v4880_v56 = vld [vmem:[#allocation79_spill] sm:$0xff] }
 0x488   : > { %v1767_v5 = vpack.c.bf16 %v4878_v50, %v4877_v52  ;;  %v1751_v45 = vpack.c.bf16 %v4880_v56, %v4879_v9  ;;  %v1856_v9 = vld [vmem:[%s4442_s7 + $0x30] sm:$0xff]  ;;  %v1857_v56 = vld [vmem:[%s4442_s7 + $0x38] sm:$0xff] }
 0x48b   : > { %1784 = vmatpush.bf16.msrb.mxu2 %v1754_v0  ;;  %1798 = vmatpush.bf16.msrb.mxu3 %v1768_v19  ;;  %v4882_v0 = vld [vmem:[#allocation96_spill] sm:$0xff] }
 0x48c   : > { %v1765_v44 = vpack.c.bf16 %v4882_v0, %v4881_v11  ;;  %v4884_v19 = vld [vmem:[#allocation40_spill] sm:$0xff]  ;;  %v1858_v11 = vld [vmem:[%s4442_s7 + $0x40] sm:$0xff] }
 0x48d   : > { %v1749_v23 = vpack.c.bf16 %v4884_v19, %v4883_v40  ;;  %v1863_v0 = vpack.c.bf16 %v1858_v11, %v1858_v11  ;;  %v1835_v40 = vld [vmem:[%s4441_s6 + $0x8] sm:$0xff] }
 0x48f   : > { %1785 = vmatpush.bf16.msrb.mxu2 %v1752_v7  ;;  %1799 = vmatpush.bf16.msrb.mxu3 %v1766_v35 }
 0x493   : > { %1786 = vmatpush.bf16.msrb.mxu2 %v1750_v3  ;;  %1800 = vmatpush.bf16.msrb.mxu3 %v1764_v24  ;;  %v1703_v3 = vrot.slane %v4885_v39, 4 }
 0x495   : > { %v1704_v1 = vadd.f32 %v1703_v3, %v4885_v39  ;;  %v1841_v39 = vld [vmem:[%s4441_s6 + $0x38] sm:$0xff] }
 0x496   : > { %1801 = vmatmul.bf16.vlgmr.msrb.gmra.mxu3 %v4857_v58 }
 0x497   : > { %1819 = vmatpush.bf16.msra.mxu3 %v1779_v13  ;;  %1787 = vmatpush.bf16.msrb.mxu2 %v1748_v26  ;;  %v1705_v12 = vrot.slane %v1704_v1, 2 }
 0x499   : > { %v1706_v28 = vadd.f32 %v1705_v12, %v1704_v1  ;;  %v1842_v1 = vld [vmem:[%s4441_s6 + $0x40] sm:$0xff] }
 0x49a   : > { %1788 = vmatmul.bf16.vlgmr.msrb.gmra.mxu2 %v4858_v16  ;;  %v1847_v12 = vpack.c.bf16 %v1842_v1, %v1842_v1 }
 0x49b   : > { %1806 = vmatpush.bf16.msra.mxu2 %v1763_v51  ;;  %1820 = vmatpush.bf16.msra.mxu3 %v1777_v41  ;;  %v1707_v13 = vrot.slane %v1706_v28, 1  ;;  %v1740_v51 = vrot.slane %v4886_v6, 4 }
 0x49d   : > { %v1708_v34 = vadd.f32 %v1707_v13, %v1706_v28 }
 0x49f   : > { %1807 = vmatpush.bf16.msra.mxu2 %v1761_v48  ;;  %1821 = vmatpush.bf16.msra.mxu3 %v1775_v43  ;;  %2764 = vrcp.f32 %v1708_v34  ;;  %v1741_v48 = vadd.f32 %v1740_v51, %v4886_v6 }
 0x4a3   : > { %1808 = vmatpush.bf16.msra.mxu2 %v1759_v30  ;;  %1822 = vmatpush.bf16.msra.mxu3 %v1773_v38  ;;  %v1742_v30 = vrot.slane %v1741_v48, 2  ;;  %v1852_v38 = vld [vmem:[%s4442_s7 + $0x10] sm:$0xff] }
 0x4a5   : > { %v2765_v32 = vpop.eup %2764  ;;  %v1743_v15 = vadd.f32 %v1742_v30, %v1741_v48 }
 0x4a7   : > { %1809 = vmatpush.bf16.msra.mxu2 %v1757_v25  ;;  %1823 = vmatpush.bf16.msra.mxu3 %v1771_v55  ;;  %v1744_v22 = vrot.slane %v1743_v15, 1  ;;  %v1860_v25 = vpack.c.bf16 %v1853_v33, %v1852_v38 }
 0x4a9   : > { %v1745_v4 = vadd.f32 %v1744_v22, %v1743_v15 }
 0x4ab   : > { %1810 = vmatpush.bf16.msra.mxu2 %v1755_v36  ;;  %1824 = vmatpush.bf16.msra.mxu3 %v1769_v29  ;;  %2766 = vrcp.f32 %v1745_v4 }
 0x4af   : > { %1811 = vmatpush.bf16.msra.mxu2 %v1753_v21  ;;  %1825 = vmatpush.bf16.msra.mxu3 %v1767_v5  ;;  %v1855_v21 = vld [vmem:[%s4442_s7 + $0x28] sm:$0xff] }
 0x4b0   : > { %v1861_v5 = vpack.c.bf16 %v1855_v21, %v1854_v53 }
 0x4b1   : > { %v2767_v27 = vpop.eup %2766 }
 0x4b3   : > { %1812 = vmatpush.bf16.msra.mxu2 %v1751_v45  ;;  %1826 = vmatpush.bf16.msra.mxu3 %v1765_v44  ;;  %v1862_v45 = vpack.c.bf16 %v1857_v56, %v1856_v9  ;;  %v1834_v44 = vld [vmem:[%s4441_s6] sm:$0xff] }
 0x4b4   : > { %v1843_v19 = vpack.c.bf16 %v1835_v40, %v1834_v44 }
 0x4b6   : > { %1827 = vmatmul.bf16.vlgmr.msra.gmra.mxu3 %v4857_v58 }
 0x4b7   : > { %1813 = vmatpush.bf16.msra.mxu2 %v1749_v23  ;;  %v1836_v23 = vld [vmem:[%s4441_s6 + $0x10] sm:$0xff] }
 0x4ba   : > { %1814 = vmatmul.bf16.vlgmr.msra.gmra.mxu2 %v4858_v16  ;;  %v1850_v16 = vld [vmem:[%s4442_s7] sm:$0xff] }
 0x4bb   : > { %v1859_v43 = vpack.c.bf16 %v1851_v2, %v1850_v16 }
 0x4d9   : > { %v1376_v8 = vpop.f32.mrf.mxu3 }
 0x4dd   : > { %v1363_v7 = vpop.f32.mrf.mxu2 }
 0x4de   : > { %v1377_v26 = vadd.f32 %v1376_v8, %v1363_v7  ;;  %v1837_v8 = vld [vmem:[%s4441_s6 + $0x18] sm:$0xff] }
 0x4df   : > { %v1844_v7 = vpack.c.bf16 %v1837_v8, %v1836_v23  ;;  %v2196_v8 = vld [vmem:[%s4444_s9] sm:$0xf] }
 0x4e0   : > { %v1848_v58 = vpack.c.bf16 %v1377_v26, %v1377_v26 }
 0x4e1   : > { %v1378_v63 = vpop.f32.mrf.mxu3 }
 0x4e2   : > { %v1969_v60 = vsel %vm456_vm2, %v1848_v58, 0  ;;  %v1838_v63 = vld [vmem:[%s4441_s6 + $0x20] sm:$0xff] }
 0x4e5   : > { %v1365_v54 = vpop.f32.mrf.mxu2 }
 0x4e6   : > { %v1839_v54 = vld [vmem:[%s4441_s6 + $0x28] sm:$0xff] }
 0x4f9   : > { %v1402_v35 = vpop.f32.mrf.mxu3 }
 0x4fd   : > { %v1389_v57 = vpop.f32.mrf.mxu2 }
 0x4fe   : > { %v1403_v49 = vadd.f32 %v1402_v35, %v1389_v57  ;;  %v1845_v35 = vpack.c.bf16 %v1839_v54, %v1838_v63  ;;  %v1840_v57 = vld [vmem:[%s4441_s6 + $0x30] sm:$0xff]  ;;  %v2204_v63 = vld [vmem:[%s4445_s10] sm:$0xf] }
 0x4ff   : > { %v1846_v3 = vpack.c.bf16 %v1841_v39, %v1840_v57 }
 0x500   : > { %v1849_v14 = vpack.c.bf16 %v1403_v49, %v1403_v49 }
 0x501   : > { %v1404_v20 = vpop.f32.mrf.mxu3 }
 0x502   : > { %v1972_v52 = vsel %vm456_vm2, %v1849_v14, 0 }
 0x505   : > { %v1391_v24 = vpop.f32.mrf.mxu2 }
 0x519   : > { %v1802_v47 = vpop.f32.mrf.mxu3 }
 0x51d   : > { %v1789_v42 = vpop.f32.mrf.mxu2 }
 0x51e   : > { %v1803_v61 = vadd.f32 %v1802_v47, %v1789_v42 }
 0x520   : > { %v1832_v41 = vmul.f32 %v2765_v32, %v1803_v61 }
 0x521   : > { %v1804_v17 = vpop.f32.mrf.mxu3 }
 0x522   : > { %v1864_v62 = vpack.c.bf16 %v1832_v41, %v1832_v41 }
 0x524   : > { %v1882_v46 = vsel %vm538_vm0, %v1864_v62, 0 }
 0x525   : > { %1894 = vmatpush.bf16.msrb.mxu2 %v1882_v46  ;;  %v1791_v37 = vpop.f32.mrf.mxu2 }
 0x528   : > { %2357 = vmatmul.msk.bf16.vlgmr.msrb.gmra.mxu2 %vm531_vm1, %v1859_v43 }
 0x529   : > { %1981 = vmatpush.bf16.msra.mxu2 %v1969_v60 }
 0x538   : > { %2358 = vmatmul.msk.bf16.gmra.mxu2 %vm531_vm1, %v1860_v25 }
 0x539   : > { %v1828_v31 = vpop.f32.mrf.mxu3 }
 0x53d   : > { %v1815_v55 = vpop.f32.mrf.mxu2 }
 0x53e   : > { %v1829_v18 = vadd.f32 %v1828_v31, %v1815_v55 }
 0x540   : > { %v1833_v36 = vmul.f32 %v2767_v27, %v1829_v18 }
 0x541   : > { %v1830_v59 = vpop.f32.mrf.mxu3 }
 0x542   : > { %v1865_v29 = vpack.c.bf16 %v1833_v36, %v1833_v36 }
 0x544   : > { %v1885_v10 = vsel %vm538_vm0, %v1865_v29, 0 }
 0x545   : > { %v1817_v50 = vpop.f32.mrf.mxu2  ;;  %1927 = vmatpush.bf16.msrb.mxu3 %v1885_v10 }
 0x548   : > { %2362 = vmatmul.msk.bf16.vlgmr.msrb.gmra.mxu3 %vm531_vm1, %v1859_v43  ;;  %2359 = vmatmul.msk.bf16.gmra.mxu2 %vm531_vm1, %v1861_v5 }
 0x549   : > { %2014 = vmatpush.bf16.msra.mxu3 %v1972_v52 }
 0x558   : > { %2363 = vmatmul.msk.bf16.gmra.mxu3 %vm531_vm1, %v1860_v25  ;;  %2360 = vmatmul.msk.bf16.gmra.mxu2 %vm531_vm1, %v1862_v45 }
 0x568   : > { %2364 = vmatmul.msk.bf16.gmra.mxu3 %vm531_vm1, %v1861_v5  ;;  %2361 = vmatmul.msk.bf16.gmra.mxu2 %vm531_vm1, %v1863_v0 }
 0x578   : > { %2365 = vmatmul.msk.bf16.gmra.mxu3 %vm531_vm1, %v1862_v45  ;;  %2367 = vmatmul.msk.bf16.vlgmr.msra.gmra.mxu2 %vm449_vm3, %v1843_v19 }
 0x588   : > { %2366 = vmatmul.msk.bf16.gmra.mxu3 %vm531_vm1, %v1863_v0  ;;  %2368 = vmatmul.msk.bf16.gmra.mxu2 %vm449_vm3, %v1844_v7 }
 0x598   : > { %2372 = vmatmul.msk.bf16.vlgmr.msra.gmra.mxu3 %vm449_vm3, %v1843_v19  ;;  %2369 = vmatmul.msk.bf16.gmra.mxu2 %vm449_vm3, %v1845_v35 }
 0x5a8   : > { %2373 = vmatmul.msk.bf16.gmra.mxu3 %vm449_vm3, %v1844_v7  ;;  %2370 = vmatmul.msk.bf16.gmra.mxu2 %vm449_vm3, %v1846_v3 }
 0x5ab   : > { %v1896_v20 = vpop.f32.mrf.mxu2 }
 0x5b3   : > { %v1898_v24 = vpop.f32.mrf.mxu2 }
 0x5b8   : > { %2374 = vmatmul.msk.bf16.gmra.mxu3 %vm449_vm3, %v1845_v35  ;;  %2371 = vmatmul.msk.bf16.gmra.mxu2 %vm449_vm3, %v1847_v12 }
 0x5bb   : > { %v1901_v28 = vpop.f32.mrf.mxu2 }
 0x5c3   : > { %v1903_v13 = vpop.f32.mrf.mxu2 }
 0x5c8   : > { %2375 = vmatmul.msk.bf16.gmra.mxu3 %vm449_vm3, %v1846_v3 }
 0x5cb   : > { %v1929_v34 = vpop.f32.mrf.mxu3  ;;  %v4342_v47 = vpop.f32.mrf.mxu2 }
 0x5d3   : > { %v1931_v26 = vpop.f32.mrf.mxu3  ;;  %v1908_v42 = vpop.f32.mrf.mxu2 }
 0x5d8   : > { %2376 = vmatmul.msk.bf16.gmra.mxu3 %vm449_vm3, %v1847_v12 }
 0x5db   : > { %v1934_v6 = vpop.f32.mrf.mxu3  ;;  %v1911_v51 = vpop.f32.mrf.mxu2 }
 0x5e3   : > { %v1936_v61 = vpop.f32.mrf.mxu3  ;;  %v1913_v32 = vpop.f32.mrf.mxu2 }
 0x5eb   : > { %v4345_v41 = vpop.f32.mrf.mxu3  ;;  %v1916_v58 = vpop.f32.mrf.mxu2 }
 0x5f3   : > { %v1941_v16 = vpop.f32.mrf.mxu3  ;;  %v1918_v2 = vpop.f32.mrf.mxu2 }
 0x5fb   : > { %v1944_v17 = vpop.f32.mrf.mxu3  ;;  %v1983_v48 = vpop.f32.mrf.mxu2 }
 0x5fc   : > { %v1984_v62 = vadd.f32 %v1983_v48, %v1896_v20  ;;  %v2044_v20 = vlaneseq }
 0x5fe   : > { %2040 = vrot.lane.b32.xlu0 %v1984_v62, %s2833_s13 }
 0x603   : > { %v1946_v46 = vpop.f32.mrf.mxu3  ;;  %v1985_v43 = vpop.f32.mrf.mxu2 }
 0x604   : > { %v1986_v60 = vadd.f32 %v1985_v43, %v1898_v24 }
 0x606   : > { %2059 = vrot.lane.b32.xlu2 %v1986_v60, %s2834_s14 }
 0x60b   : > { %v1949_v37 = vpop.f32.mrf.mxu3  ;;  %v1988_v30 = vpop.f32.mrf.mxu2 }
 0x60c   : > { %v1989_v49 = vadd.f32 %v1988_v30, %v1901_v28  ;;  %v4357_v28 = vand.u32 127, %v2044_v20 }
 0x60e   : > { %vm2063_vm5 = vcmp.lt.s32.totalorder %v4357_v28, 16  ;;  %vm2046_vm6 = vcmp.lt.s32.totalorder %v4357_v28, 17  ;;  %vm2081_vm7 = vcmp.lt.s32.totalorder %v4357_v28, 15  ;;  %vm2099_vm8 = vcmp.lt.s32.totalorder %v4357_v28, 1 }
 0x60f   : > { %vm2128_vm9 = vcmp.lt.s32.totalorder %v4357_v28, 127  ;;  %vm2146_vm10 = vcmp.lt.s32.totalorder %v4357_v28, 113  ;;  %vm2164_vm11 = vcmp.lt.s32.totalorder %v4357_v28, 112  ;;  %vm2182_vm12 = vcmp.lt.s32.totalorder %v4357_v28, 111 }
 0x613   : > { %v1951_v15 = vpop.f32.mrf.mxu3  ;;  %v1990_v22 = vpop.f32.mrf.mxu2 }
 0x614   : > { %v1991_v38 = vadd.f32 %v1990_v22, %v1903_v13  ;;  %v2377_v13 = vld [vmem:[%s4443_s8 + $0x2] sm:$0x3] }
 0x616   : > { %2095 = vrot.lane.b32.xlu2 %v1991_v38, %s2835_s19 }
 0x61b   : > { %v2016_v33 = vpop.f32.mrf.mxu3  ;;  %v4347_v25 = vpop.f32.mrf.mxu2 }
 0x61c   : > { %v2017_v4 = vadd.f32 %v2016_v33, %v1929_v34  ;;  %v2049_v34 = vld [vmem:[%s4443_s8] sm:$0x3] }
 0x61d   : > { %v2052_v2 = vperm.slane %v2049_v34, 1 }
 0x61e   : > { %2042 = vrot.lane.b32.xlu1 %v2017_v4, %s2833_s13  ;;  %s392_s13 = sand.u32 1, %s2822_s18  }
 0x623   : > { %v2018_v31 = vpop.f32.mrf.mxu3  ;;  %v1995_v18 = vpop.f32.mrf.mxu2 }
 0x624   : > { %v2019_v55 = vadd.f32 %v2018_v31, %v1931_v26  ;;  %v1996_v29 = vadd.f32 %v1995_v18, %v1908_v42  ;;  %v2378_v26 = vld [vmem:[%s4443_s8 + $0x4] sm:$0x3]  ;;  %v2069_v42 = vperm.slane %v2377_v13, 0 }
 0x625   : > { %v2088_v48 = vperm.slane %v2378_v26, 1 }
 0x626   : > { %2077 = vrot.lane.b32.xlu1 %v1989_v49, %s2836_s23  ;;  %2061 = vrot.lane.b32.xlu0 %v2019_v55, %s2834_s14  ;;  %v2380_v49 = vld [vmem:[%s4443_s8 + $0x8] sm:$0x3]  ;;  %s2312_s14 = sshll.u32 %s392_s13, 3 }
 0x62b   : > { %v2021_v27 = vpop.f32.mrf.mxu3  ;;  %v1998_v14 = vpop.f32.mrf.mxu2 }
 0x62c   : > { %v2022_v36 = vadd.f32 %v2021_v27, %v1934_v6  ;;  %v1999_v52 = vadd.f32 %v1998_v14, %v1911_v51  ;;  %v2070_v6 = vperm.slane %v2377_v13, 1  ;;  %v2051_v51 = vperm.slane %v2049_v34, 0  ;;  %v2384_v13 = vld [vmem:[%s4443_s8 + $0x10] sm:$0x3] }
 0x62e   : > { %2079 = vrot.lane.b32.xlu0 %v2022_v36, %s2836_s23 }
 0x633   : > { %v2023_v59 = vpop.f32.mrf.mxu3  ;;  %v2000_v53 = vpop.f32.mrf.mxu2 }
 0x634   : > { %v2024_v10 = vadd.f32 %v2023_v59, %v1936_v61  ;;  %v2001_v11 = vadd.f32 %v2000_v53, %v1913_v32  ;;  %v1994_v53 = vadd.f32 %v4347_v25, %v4342_v47 }
 0x636   : > { %2097 = vrot.lane.b32.xlu1 %v2024_v10, %s2835_s19  ;;  %2124 = vrot.lane.b32.xlu0 %v1996_v29, %s2837_s17  ;;  %s2392_s19 = sshll.u32 %s2922_s21, 3  ;;  %s2221_s21 = scalar_lea.sflag [#allocation3], %s392_s13 }
 0x63b   : > { %v4349_v21 = vpop.f32.mrf.mxu3  ;;  %v2003_v50 = vpop.f32.mrf.mxu2 }
 0x63c   : > { %v2004_v40 = vadd.f32 %v2003_v50, %v1916_v58  ;;  %v2027_v50 = vadd.f32 %v4349_v21, %v4345_v41 }
 0x63e   : > { %2142 = vrot.lane.b32.xlu1 %v1999_v52, %s2838_s26  ;;  %v2116_v52 = vperm.slane %v2380_v49, 0 }
 0x640   : > { %v2120_v21 = vmul.f32 %v2116_v52, %v1994_v53 }
 0x643   : > { %v2028_v5 = vpop.f32.mrf.mxu3  ;;  %v2005_v56 = vpop.f32.mrf.mxu2 }
 0x644   : > { %v2029_v9 = vadd.f32 %v2028_v5, %v1941_v16  ;;  %v2379_v16 = vld [vmem:[%s4443_s8 + $0x6] sm:$0x3]  ;;  %v2117_v5 = vperm.slane %v2380_v49, 1 }
 0x645   : > { %v2105_v22 = vperm.slane %v2379_v16, 0  ;;  %v2106_v38 = vperm.slane %v2379_v16, 1  ;;  %v2189_v16 = vperm.slane %v2384_v13, 1 }
 0x646   : > { %2126 = vrot.lane.b32.xlu2 %v2029_v9, %s2837_s17 }
 0x64b   : > { %v2031_v45 = vpop.f32.mrf.mxu3 }
 0x64c   : > { %v2032_v0 = vadd.f32 %v2031_v45, %v1944_v17  ;;  %v2087_v17 = vperm.slane %v2378_v26, 0  ;;  %v2381_v45 = vld [vmem:[%s4443_s8 + $0xa] sm:$0x3] }
 0x64e   : > { %2160 = vrot.lane.b32.xlu2 %v2001_v11, %s2839_s28  ;;  %2144 = vrot.lane.b32.xlu0 %v2032_v0, %s2838_s26  ;;  %v2382_v0 = vld [vmem:[%s4443_s8 + $0xc] sm:$0x3]  ;;  %s2232_s26 = scalar_lea.hbm %s4446_s11, %s2392_s19 }
 0x64f   : > { %s2236_s15 = sshll.u32 %s2232_s26, 4  ;;  %s2237_s15 = int_to_ptr.hbm [resolvable:$true] %s2236_s15 }
 0x650   : > { %s2782_s16 = sshra.s32 %s2237_s15, 4  ;;  %s2783_s16 = int_to_ptr.hbm [resolvable:$true] %s2782_s16 }
 0x651   : > { %s2784_s22 = scalar_lea.hbm %s2783_s16, 8  ;;  %p2789_p0 = scmp.lt.s32.totalorder %s2783_s16, %s4446_s11 }
 0x652   : > { %p2785_p11 = scmp.ne.s32.totalorder %s2783_s16, %s2784_s22  ;;  %p2790_p1 = scmp.lt.s32.totalorder %s2788_s29, %s2784_s22 }
 0x653   : > { %v2033_v44 = vpop.f32.mrf.mxu3 }
 0x654   : > { %v2034_v19 = vadd.f32 %v2033_v44, %v1946_v46  ;;  %p2786_p12 = pnand %p2785_p11, %p2939_p5  ;;  %p2791_p2 = por %p2790_p1, %p2789_p0 }
 0x656   : > { %2162 = vrot.lane.b32.xlu1 %v2034_v19, %s2839_s28  ;;  %2178 = vrot.lane.b32.xlu0 %v2004_v40, %s2840_s12  ;;  %v2121_v40 = vmul.f32 %v2117_v5, %v2027_v50  ;;  %v2134_v19 = vperm.slane %v2381_v45, 0  ;;  %s394_s28 = scalar_lea.vmem [#allocation2], %s2312_s14  ;;  %p2787_p13 = pneg %p2786_p12 }
 0x658   : > { %p2792_p3 = pnand %p2791_p2, %p2787_p13 }
 0x65b   : > { %v2036_v23 = vpop.f32.mrf.mxu3 }
 0x65c   : > { %v2037_v7 = vadd.f32 %v2036_v23, %v1949_v37  ;;  %v2135_v23 = vperm.slane %v2381_v45, 1 }
 0x65e   : > { %2199 = vperm.xlu1 %2442, %v2196_v8   ;;  %2180 = vrot.lane.b32.xlu2 %v2037_v7, %s2840_s12  ;;  %v2152_v7 = vperm.slane %v2382_v0, 0  ;;  %s2234_s12 = sshll.u32 %s394_s28, 4  ;;  %s2235_s12 = int_to_ptr.vmem [resolvable:$true] %s2234_s12 }
 0x65f   : > { %2207 = vperm.xlu0 %2441, %v2204_v63   ;;  %v2153_v63 = vperm.slane %v2382_v0, 1 }
 0x660   : > { %v2060_v3 = vpop.permute.xlu2 %2059 }
 0x663   : > { %v2038_v54 = vpop.f32.mrf.mxu3 }
 0x664   : > { %v2383_v54 = vld [vmem:[%s4443_s8 + $0xe] sm:$0x3] }
 0x670   : > { %v2041_v35 = vpop.permute.xlu0 %2040  ;;  %v2096_v1 = vpop.permute.xlu2 %2095 }
 0x690   : > { %v2043_v57 = vpop.permute.xlu1 %2042 }
 0x691   : > { %v2047_v46 = vsel %vm2046_vm6, %v2041_v35, %v2043_v57  ;;  %v2048_v43 = vsel %vm2046_vm6, %v2043_v57, %v2041_v35 }
 0x692   : > { %v2055_v55 = vmul.f32 %v2051_v51, %v2048_v43  ;;  %v2056_v18 = vmul.f32 %v2052_v2, %v2047_v46 }
 0x698   : > { %v2062_v39 = vpop.permute.xlu0 %2061  ;;  %v2078_v24 = vpop.permute.xlu1 %2077 }
 0x699   : > { %v2064_v61 = vsel %vm2063_vm5, %v2060_v3, %v2062_v39  ;;  %v2065_v32 = vsel %vm2063_vm5, %v2062_v39, %v2060_v3 }
 0x69a   : > { %v2073_v30 = vmul.f32 %v2069_v42, %v2065_v32  ;;  %v2074_v15 = vmul.f32 %v2070_v6, %v2064_v61 }
 0x69c   : > { %v2075_v14 = vadd.f32 %v2073_v30, %v2055_v55  ;;  %v2076_v59 = vadd.f32 %v2074_v15, %v2056_v18 }
 0x6a0   : > { %v2080_v12 = vpop.permute.xlu0 %2079  ;;  %v2127_v58 = vpop.permute.xlu2 %2126 }
 0x6a1   : > { %v2082_v60 = vsel %vm2081_vm7, %v2078_v24, %v2080_v12  ;;  %v2083_v37 = vsel %vm2081_vm7, %v2080_v12, %v2078_v24  ;;  %v2170_v24 = vperm.slane %v2383_v54, 0  ;;  %v2171_v12 = vperm.slane %v2383_v54, 1 }
 0x6a2   : > { %v2091_v27 = vmul.f32 %v2087_v17, %v2083_v37  ;;  %v2092_v36 = vmul.f32 %v2088_v48, %v2082_v60 }
 0x6a4   : > { %v2093_v9 = vadd.f32 %v2091_v27, %v2075_v14  ;;  %v2094_v56 = vadd.f32 %v2092_v36, %v2076_v59 }
 0x6a8   : > { %v2098_v62 = vpop.permute.xlu1 %2097  ;;  %v2125_v33 = vpop.permute.xlu0 %2124 }
 0x6a9   : > { %v2100_v4 = vsel %vm2099_vm8, %v2096_v1, %v2098_v62  ;;  %v2101_v31 = vsel %vm2099_vm8, %v2098_v62, %v2096_v1  ;;  %v2161_v11 = vpop.permute.xlu2 %2160  ;;  %v2129_v8 = vsel %vm2128_vm9, %v2125_v33, %v2127_v58  ;;  %v2130_v35 = vsel %vm2128_vm9, %v2127_v58, %v2125_v33 }
 0x6aa   : > { %v2109_v29 = vmul.f32 %v2105_v22, %v2101_v31  ;;  %v2110_v10 = vmul.f32 %v2106_v38, %v2100_v4  ;;  %v2138_v1 = vmul.f32 %v2134_v19, %v2129_v8  ;;  %v2139_v34 = vmul.f32 %v2135_v23, %v2130_v35 }
 0x6ab   : > { %v2188_v58 = vperm.slane %v2384_v13, 0 }
 0x6ac   : > { %v2111_v44 = vadd.f32 %v2109_v29, %v2093_v9  ;;  %v2112_v47 = vadd.f32 %v2110_v10, %v2094_v56 }
 0x6ae   : > { %v2122_v3 = vadd.f32 %v2120_v21, %v2111_v44  ;;  %v2123_v20 = vadd.f32 %v2121_v40, %v2112_v47 }
 0x6b0   : > { %v2143_v25 = vpop.permute.xlu1 %2142  ;;  %v2140_v51 = vadd.f32 %v2138_v1, %v2122_v3  ;;  %v2141_v61 = vadd.f32 %v2139_v34, %v2123_v20 }
 0x6b8   : > { %v2181_v6 = vpop.permute.xlu2 %2180 }
 0x6c0   : > { %v2145_v41 = vpop.permute.xlu0 %2144 }
 0x6c1   : > { %v2147_v57 = vsel %vm2146_vm10, %v2143_v25, %v2145_v41  ;;  %v2148_v39 = vsel %vm2146_vm10, %v2145_v41, %v2143_v25 }
 0x6c2   : > { %v2156_v26 = vmul.f32 %v2152_v7, %v2147_v57  ;;  %v2157_v42 = vmul.f32 %v2153_v63, %v2148_v39 }
 0x6c4   : > { %v2158_v43 = vadd.f32 %v2156_v26, %v2140_v51  ;;  %v2159_v60 = vadd.f32 %v2157_v42, %v2141_v61 }
 0x6c8   : > { %v2163_v32 = vpop.permute.xlu1 %2162  ;;  %v2179_v2 = vpop.permute.xlu0 %2178 }
 0x6c9   : > { %v2165_v17 = vsel %vm2164_vm11, %v2161_v11, %v2163_v32  ;;  %v2166_v48 = vsel %vm2164_vm11, %v2163_v32, %v2161_v11  ;;  %v2183_v62 = vsel %vm2182_vm12, %v2179_v2, %v2181_v6  ;;  %v2184_v46 = vsel %vm2182_vm12, %v2181_v6, %v2179_v2 }
 0x6ca   : > { %v2174_v37 = vmul.f32 %v2170_v24, %v2165_v17  ;;  %v2175_v30 = vmul.f32 %v2171_v12, %v2166_v48  ;;  %v2192_v15 = vmul.f32 %v2188_v58, %v2183_v62  ;;  %v2193_v22 = vmul.f32 %v2189_v16, %v2184_v46 }
 0x6cc   : > { %v2176_v38 = vadd.f32 %v2174_v37, %v2158_v43  ;;  %v2177_v33 = vadd.f32 %v2175_v30, %v2159_v60 }
 0x6ce   : > { %v2194_v4 = vadd.f32 %v2192_v15, %v2176_v38  ;;  %v2195_v31 = vadd.f32 %v2193_v22, %v2177_v33 }
 0x6d0   : > { %v2200_v49 = vpop.permute.xlu1 %2199 }
 0x6d1   : > { %v2202_v55 = vmul.f32 %v2200_v49, %v2194_v4  ;;  %v2203_v28 = vmul.f32 %v2200_v49, %v2195_v31  ;;  %v2208_v18 = vpop.permute.xlu0 %2207 }
 0x6d3   : > { %v2210_v27 = vadd.f32 %v2208_v18, %v2202_v55  ;;  %v2211_v36 = vadd.f32 %v2208_v18, %v2203_v28 }
 0x6d5   : > { %v2213_v14 = vmax.f32 %v2211_v36, 0.0  ;;  %v2212_v59 = vmax.f32 %v2210_v27, 0.0 }
 0x6d7   : > { %v2216_v29 = vrot.slane %v2213_v14, 4 }
 0x6d9   : > { %v2217_v10 = vsel %vm538_vm0, %v2212_v59, %v2216_v29 }
 0x6da   : > { %2219 = vst [vmem:[%s394_s28] sm:$0xff] %v2217_v10 }
 0x6db   : > { %2795 = shalt.err (!%p2792_p3)
}
 0x6dc   : > { %2393 = dma.vmem_to_hbm [thread:$0]  (%p2939_p5), %s2235_s12, 128, %s2237_s15, %s2221_s21  }
 0x6dd PF: > { %s4887_s13 = sld [smem:[#allocation5_spill]]  ;;  %p2399_p4 = scmp.ge.s32.totalorder %s2830_s20, 2 }
 0x6df   : > { %p2396_p7 = pnand %p2399_p4, %p2943_p6 }
 0x6e1   : > { %p2397_p8 = pneg %p2396_p7 }
 0x6e3   : > { %s2248_s23 = sand.u32 1, %s4887_s13  }
 0x6e4   : > { %s2249_s17 = scalar_lea.sflag [#allocation3], %s2248_s23 }
 0x6e5   : > { %2813 = dma.done.wait (%p2397_p8), %s2249_s17, 128  }
 0x6e6   : > { %2815 = vsyncadd (%p2397_p8), %s2249_s17, 4294967168  ;;  %s4889_s20 = sld [smem:[#allocation7_spill]]  ;;  %s4892_s17 = smov %s2822_s18 }
 0x6e7   : > { %s4890_s26 = sld [smem:[#allocation6_spill]] }
 0x6e8   : > { %s4891_s19 = sld [smem:[#allocation8_spill]] }
 0x6ec   : > { %p21_p9 = scmp.ge.s32.totalorder %s4889_s20, 4  }
 0x6ed   : > { %s4893_s18 = smov %s4890_s26 }
 0x6ee   :  { %23 = sbr.rel (!%p21_p9) target bundleno = 3 (0x3), region = 110 }
 0x6f3   :  { %2255 = vsyncpa [#allocation3], 1 }
 0x6f4   :  { %2257 = vsyncpa [#allocation3 + $0x1], 1 }

</bundles_post_ra>
